<compile_context>
chip_gen: v6e
topology: v6e:2x2x1
jax: 0.10.0
libtpu: 0.0.40
codegen_flags: <defaults>
</compile_context>

<pallas_src>
import functools

import jax
import jax.numpy as jnp
from jax import lax
from jax.experimental import pallas as pl
from jax.experimental.pallas import tpu as pltpu


def _round_up(v, m):
    return (v + m - 1) // m * m


def bigru_fc_kernel(x_ref,            # (B, T, I)      f32, batch-major (as given, no transpose)
                    wih_f_ref,        # (I, 3*Hp)      bf16
                    wih_b_ref,        # (I, 3*Hp)      bf16
                    w_bd_ref,         # (2*Hp, 3*Hp)   f32, rows 0:Hp = Whh_f, Hp:2Hp = Whh_b
                    gib_f_ref,        # (1, 3*Hp)      f32, bih_f + [bhh_f_r, bhh_f_z, 0]
                    gib_b_ref,        # (1, 3*Hp)      f32, bih_b + [bhh_b_r, bhh_b_z, 0]
                    bhn_ref,          # (2*B, Hp)      f32, rows 0:B = bhh_f_n, B:2B = bhh_b_n
                    wfc_top_ref,      # (Hp, OutP)     bf16, fc weight for fwd hidden states
                    wfc_bot_ref,      # (Hp, OutP)     bf16, fc weight for bwd hidden states
                    bfc_ref,          # (1, OutP)      f32
                    out_ref,          # (B, T, OutP)   f32, batch-major
                    gi_ref,           # scratch (2*B, T, 3*Hp) f32  (stacked input projections)
                    hf_ref,           # scratch (B, T, Hp) f32      (fwd hidden history)
                    hb_ref,           # scratch (B, T, Hp) f32      (bwd hidden history)
                    *, T, B, Hp):
    # ---- hoisted input projections: bf16 MXU matmuls, f32 accumulation; bhh_r/z pre-folded ----
    x2 = x_ref[...].reshape(B * T, -1).astype(jnp.bfloat16)        # free reshape, batch-major
    gi_f = jnp.dot(x2, wih_f_ref[...],
                   preferred_element_type=jnp.float32) + gib_f_ref[...]
    gi_b = jnp.dot(x2, wih_b_ref[...],
                   preferred_element_type=jnp.float32) + gib_b_ref[...]
    gi_f3 = gi_f.reshape(B, T, 3 * Hp)
    gi_b3 = gi_b.reshape(B, T, 3 * Hp)

    # Stack both directions on the sublane axis (bwd half time-reversed) so each recurrence
    # step reads ONE (2B, 3Hp) block: rows 0:B = fwd proj at time t, rows B:2B = bwd proj at
    # time T-1-t.  One-time prologue stores, outside the serial loop.
    gi_ref[0:B, :, :] = gi_f3
    for t in range(T):                                   # static trace-time loop
        gi_ref[B:2 * B, t, :] = gi_b3[:, T - 1 - t, :]

    # ---- hoisted recurrent weight / n-gate bias / direction row masks ----
    w_bd = w_bd_ref[...]                                 # (2Hp, 3Hp), recurrence stays f32
    bhn = bhn_ref[...]                                   # (2B, Hp)
    row = lax.broadcasted_iota(jnp.int32, (2 * B, 1), 0)
    m_f = (row < B).astype(jnp.float32)                  # rows 0:B  -> forward direction
    m_b = 1.0 - m_f                                      # rows B:2B -> backward direction

    def step(t, h):                                      # h: (2B, Hp) dense carry
        # block-diagonal embedding: fwd rows hit w_bd rows 0:Hp, bwd rows hit rows Hp:2Hp,
        # giving both directions' gate pre-activations from a single MXU matmul.
        h_emb = jnp.concatenate([h * m_f, h * m_b], axis=1)             # (2B, 2Hp)
        gh = jnp.dot(h_emb, w_bd, preferred_element_type=jnp.float32)   # (2B, 3Hp)
        gi = gi_ref[:, t, :]                                            # (2B, 3Hp)
        # all gate slices are 128-lane aligned (Hp is a multiple of 128)
        r = jax.nn.sigmoid(gi[:, 0:Hp] + gh[:, 0:Hp])
        z = jax.nn.sigmoid(gi[:, Hp:2 * Hp] + gh[:, Hp:2 * Hp])
        n = jnp.tanh(gi[:, 2 * Hp:3 * Hp] + r * (gh[:, 2 * Hp:3 * Hp] + bhn))
        h_new = (1.0 - z) * n + z * h                                   # (2B, Hp)
        hf_ref[:, t, :] = h_new[0:B]                     # fwd state belongs to time t
        hb_ref[:, T - 1 - t, :] = h_new[B:2 * B]         # bwd state belongs to time T-1-t
        return h_new

    h0 = jnp.zeros((2 * B, Hp), jnp.float32)
    lax.fori_loop(0, T, step, h0, unroll=min(T, 8))      # bounded unroll for large T

    # ---- FC over the whole sequence: two bf16 MXU matmuls, f32 accumulation ----
    hf = hf_ref[...].reshape(B * T, Hp).astype(jnp.bfloat16)
    hb = hb_ref[...].reshape(B * T, Hp).astype(jnp.bfloat16)
    y = (jnp.dot(hf, wfc_top_ref[...], preferred_element_type=jnp.float32)
         + jnp.dot(hb, wfc_bot_ref[...], preferred_element_type=jnp.float32)
         + bfc_ref[...])
    out_ref[...] = y.reshape(B, T, -1)                   # batch-major, lane-dense (OutP) store


def bigru_module_forward(x, params):
    """x: (B, T, I) float32 (batch_first, like the PyTorch module). Returns (B, T, 2H)."""
    B, T, I = x.shape
    H = params["whh_f"].shape[0]                     # whh_f: (H, 3H)
    Hp = _round_up(H, 128)                           # lane-aligned gate blocks
    OutP = _round_up(2 * H, 128)                     # lane-dense FC output width
    f32, bf16 = jnp.float32, jnp.bfloat16

    def pad_gates(w):                                # (..., 3H) -> (..., 3Hp), zero lanes per gate
        lead = w.shape[:-1]
        w3 = w.reshape(lead + (3, H))
        w3 = jnp.pad(w3, [(0, 0)] * len(lead) + [(0, 0), (0, Hp - H)])
        return w3.reshape(lead + (3 * Hp,))

    # input->gates weights: (I, 3H) -> (I, 3Hp), bf16 for the MXU
    wih_f = pad_gates(params["wih_f"]).astype(bf16)
    wih_b = pad_gates(params["wih_b"]).astype(bf16)

    # recurrent weights: (H, 3H) -> (Hp, 3Hp), stacked on rows so the fused fwd/bwd
    # recurrence is ONE matmul per step:  [h_f | 0 ; 0 | h_b] @ [Whh_f ; Whh_b]
    def pad_whh(w):
        return pad_gates(jnp.pad(w, ((0, Hp - H), (0, 0))))
    w_bd = jnp.concatenate([pad_whh(params["whh_f"]), pad_whh(params["whh_b"])], axis=0)

    # fold bhh_r, bhh_z into the hoisted input-projection bias; bhn stays in the loop
    # because torch applies r * (Whh_n h + bhn).
    def fold_bias(bih, bhh):
        bhh_rz = jnp.concatenate([bhh[:, :2 * H], jnp.zeros_like(bhh[:, 2 * H:])], axis=1)
        return pad_gates(bih + bhh_rz).astype(f32)
    gib_f = fold_bias(params["bih_f"], params["bhh_f"])
    gib_b = fold_bias(params["bih_b"], params["bhh_b"])

    def pad_h(v):                                    # (1, H) -> (1, Hp)
        return jnp.pad(v, ((0, 0), (0, Hp - H)))
    bhn = jnp.concatenate(
        [jnp.broadcast_to(pad_h(params["bhh_f"][:, 2 * H:]), (B, Hp)),
         jnp.broadcast_to(pad_h(params["bhh_b"][:, 2 * H:]), (B, Hp))], axis=0)

    # fc weight split by direction, padded to (Hp, OutP); bias padded to (1, OutP)
    def pad_fc(w):                                   # (H, 2H) -> (Hp, OutP)
        return jnp.pad(w, ((0, Hp - H), (0, OutP - 2 * H)))
    wfc_top = pad_fc(params["wfc"][:H, :]).astype(bf16)
    wfc_bot = pad_fc(params["wfc"][H:, :]).astype(bf16)
    bfc = jnp.pad(params["bfc"], ((0, 0), (0, OutP - 2 * H))).astype(f32)

    kernel = functools.partial(bigru_fc_kernel, T=T, B=B, Hp=Hp)
    vspec = pl.BlockSpec(memory_space=pltpu.MemorySpace.VMEM)

    out = pl.pallas_call(
        kernel,
        out_shape=jax.ShapeDtypeStruct((B, T, OutP), f32),
        in_specs=[vspec] * 10,
        out_specs=vspec,
        scratch_shapes=[pltpu.VMEM((2 * B, T, 3 * Hp), f32),   # stacked gi (fwd t / bwd T-1-t)
                        pltpu.VMEM((B, T, Hp), f32),           # h_fwd history
                        pltpu.VMEM((B, T, Hp), f32)],          # h_bwd history
        compiler_params=pltpu.CompilerParams(
            # above v5e/v6e/v7x scoped defaults, under v7x's 64 MiB physical VMEM
            vmem_limit_bytes=48 * 1024 * 1024),
    )(x, wih_f, wih_b, w_bd, gib_f, gib_b, bhn, wfc_top, wfc_bot, bfc)

    return out[:, :, :2 * H]                         # drop padded output lanes (free-ish slice)


def init_params(key, input_size, hidden_size):
    """Deterministic synthetic params; shapes mirror torch.nn.GRU/Linear (stored transposed)."""
    I, H = input_size, hidden_size
    k_gru = 1.0 / jnp.sqrt(jnp.float32(H))
    k_fc = 1.0 / jnp.sqrt(jnp.float32(2 * H))
    keys = jax.random.split(key, 10)

    def u(k, shape, scale):
        return jax.random.uniform(k, shape, jnp.float32, -scale, scale)

    return {
        # forward direction (torch weight_ih_l0 is (3H, I); stored transposed)
        "wih_f": u(keys[0], (I, 3 * H), k_gru),
        "whh_f": u(keys[1], (H, 3 * H), k_gru),
        "bih_f": u(keys[2], (1, 3 * H), k_gru),
        "bhh_f": u(keys[3], (1, 3 * H), k_gru),
        # backward direction (weight_ih_l0_reverse etc.)
        "wih_b": u(keys[4], (I, 3 * H), k_gru),
        "whh_b": u(keys[5], (H, 3 * H), k_gru),
        "bih_b": u(keys[6], (1, 3 * H), k_gru),
        "bhh_b": u(keys[7], (1, 3 * H), k_gru),
        # fc: torch Linear weight is (2H, 2H); stored transposed, bias (1, 2H)
        "wfc": u(keys[8], (2 * H, 2 * H), k_fc),
        "bfc": u(keys[9], (1, 2 * H), k_fc),
    }


def bigru_module_reference(x, params):
    """Pure-JAX reference (lax.scan) used to sanity-check the kernel."""
    H = params["whh_f"].shape[0]
    x_tmajor = jnp.transpose(x, (1, 0, 2))  # (T, B, I)
    B = x_tmajor.shape[1]

    def direction(wih, whh, bih, bhh, reverse):
        def step(h, x_t):
            gi = x_t @ wih + bih
            gh = h @ whh + bhh
            r = jax.nn.sigmoid(gi[:, :H] + gh[:, :H])
            z = jax.nn.sigmoid(gi[:, H:2 * H] + gh[:, H:2 * H])
            n = jnp.tanh(gi[:, 2 * H:] + r * gh[:, 2 * H:])
            h_new = (1.0 - z) * n + z * h
            return h_new, h_new

        _, hs = lax.scan(step, jnp.zeros((B, H), jnp.float32), x_tmajor,
                         reverse=reverse)
        return hs  # (T, B, H)

    h_f = direction(params["wih_f"], params["whh_f"],
                    params["bih_f"], params["bhh_f"], reverse=False)
    h_b = direction(params["wih_b"], params["whh_b"],
                    params["bih_b"], params["bhh_b"], reverse=True)
    hcat = jnp.concatenate([h_f, h_b], axis=-1)              # (T, B, 2H)
    y = hcat @ params["wfc"] + params["bfc"]                  # (T, B, 2H)
    return jnp.transpose(y, (1, 0, 2))                        # (B, T, 2H)


if __name__ == "__main__":
    B, T, I, H = 2, 8, 16, 32

    key = jax.random.PRNGKey(0)
    k_x, k_p = jax.random.split(key)
    x = jax.random.normal(k_x, (B, T, I), jnp.float32)
    params = init_params(k_p, I, H)

    out = bigru_module_forward(x, params)
    out = jax.block_until_ready(out)

    assert out.shape == (B, T, 2 * H), out.shape
    assert bool(jnp.all(jnp.isfinite(out)))

    ref = jax.block_until_ready(bigru_module_reference(x, params))
    # loose tolerance: feed-forward matmuls run in bf16 on the MXU (f32 accumulation)
    assert bool(jnp.allclose(out, ref, rtol=5e-2, atol=5e-2)), (
        float(jnp.max(jnp.abs(out - ref))))

    print("KERNEL_OK")
</pallas_src>

<mosaic_0001>
module attributes {stable_mosaic.version = 11 : i64} {
  func.func @bigru_fc_kernel(%arg0: memref<2x8x16xf32, #tpu.memory_space<vmem>>, %arg1: memref<16x384xbf16, #tpu.memory_space<vmem>>, %arg2: memref<16x384xbf16, #tpu.memory_space<vmem>>, %arg3: memref<256x384xf32, #tpu.memory_space<vmem>>, %arg4: memref<1x384xf32, #tpu.memory_space<vmem>>, %arg5: memref<1x384xf32, #tpu.memory_space<vmem>>, %arg6: memref<4x128xf32, #tpu.memory_space<vmem>>, %arg7: memref<128x128xbf16, #tpu.memory_space<vmem>>, %arg8: memref<128x128xbf16, #tpu.memory_space<vmem>>, %arg9: memref<1x128xf32, #tpu.memory_space<vmem>>, %arg10: memref<2x8x128xf32, #tpu.memory_space<vmem>>, %arg11: memref<4x8x384xf32, #tpu.memory_space<vmem>>, %arg12: memref<2x8x128xf32, #tpu.memory_space<vmem>>, %arg13: memref<2x8x128xf32, #tpu.memory_space<vmem>>) attributes {dimension_semantics = [], scalar_prefetch = 0 : i64, scratch_operands = 3 : i64, tpu.core_type = #tpu.core_type<tc>} {
    %c0 = arith.constant 0 : index
    %c0_0 = arith.constant 0 : index
    %c0_1 = arith.constant 0 : index
    %0 = vector.load %arg0[%c0, %c0_0, %c0_1] : memref<2x8x16xf32, #tpu.memory_space<vmem>>, vector<2x8x16xf32>
    %1 = vector.shape_cast %0 : vector<2x8x16xf32> to vector<16x16xf32>
    %2 = arith.truncf %1 : vector<16x16xf32> to vector<16x16xbf16>
    %c0_2 = arith.constant 0 : index
    %c0_3 = arith.constant 0 : index
    %3 = vector.load %arg1[%c0_2, %c0_3] : memref<16x384xbf16, #tpu.memory_space<vmem>>, vector<16x384xbf16>
    %cst = arith.constant dense<0.000000e+00> : vector<16x384xf32>
    %4 = tpu.matmul %2, %3, %cst {dimension_numbers = #tpu.dot_dimension_numbers<[1], [0], [0], [1], [0, 0, 1, 1], [], []>} : vector<16x16xbf16>, vector<16x384xbf16>, vector<16x384xf32> -> vector<16x384xf32>
    %c0_4 = arith.constant 0 : index
    %c0_5 = arith.constant 0 : index
    %5 = vector.load %arg4[%c0_4, %c0_5] : memref<1x384xf32, #tpu.memory_space<vmem>>, vector<1x384xf32>
    %6 = vector.broadcast %5 : vector<1x384xf32> to vector<16x384xf32>
    %7 = arith.addf %4, %6 : vector<16x384xf32>
    %c0_6 = arith.constant 0 : index
    %c0_7 = arith.constant 0 : index
    %8 = vector.load %arg2[%c0_6, %c0_7] : memref<16x384xbf16, #tpu.memory_space<vmem>>, vector<16x384xbf16>
    %cst_8 = arith.constant dense<0.000000e+00> : vector<16x384xf32>
    %9 = tpu.matmul %2, %8, %cst_8 {dimension_numbers = #tpu.dot_dimension_numbers<[1], [0], [0], [1], [0, 0, 1, 1], [], []>} : vector<16x16xbf16>, vector<16x384xbf16>, vector<16x384xf32> -> vector<16x384xf32>
    %c0_9 = arith.constant 0 : index
    %c0_10 = arith.constant 0 : index
    %10 = vector.load %arg5[%c0_9, %c0_10] : memref<1x384xf32, #tpu.memory_space<vmem>>, vector<1x384xf32>
    %11 = vector.broadcast %10 : vector<1x384xf32> to vector<16x384xf32>
    %12 = arith.addf %9, %11 : vector<16x384xf32>
    %13 = vector.shape_cast %7 : vector<16x384xf32> to vector<2x8x384xf32>
    %14 = vector.shape_cast %12 : vector<16x384xf32> to vector<2x8x384xf32>
    %c0_11 = arith.constant 0 : index
    %c0_12 = arith.constant 0 : index
    %c0_13 = arith.constant 0 : index
    %15 = vector.load %arg11[%c0_11, %c0_12, %c0_13] : memref<4x8x384xf32, #tpu.memory_space<vmem>>, vector<2x8x384xf32>
    tpu.vector_store %arg11[%c0_11, %c0_12, %c0_13], %13 {strides = array<i32>} : memref<4x8x384xf32, #tpu.memory_space<vmem>>, vector<2x8x384xf32>,
    %16 = vector.extract_strided_slice %14 {offsets = [0, 7, 0], sizes = [2, 1, 384], strides = [1, 1, 1]} : vector<2x8x384xf32> to vector<2x1x384xf32>
    %17 = vector.shape_cast %16 : vector<2x1x384xf32> to vector<2x384xf32>
    %c2 = arith.constant 2 : index
    %c0_14 = arith.constant 0 : index
    %c0_15 = arith.constant 0 : index
    %18 = vector.load %arg11[%c2, %c0_14, %c0_15] : memref<4x8x384xf32, #tpu.memory_space<vmem>>, vector<2x1x384xf32>
    %19 = vector.shape_cast %18 : vector<2x1x384xf32> to vector<2x384xf32>
    %20 = vector.shape_cast %17 : vector<2x384xf32> to vector<2x1x384xf32>
    tpu.vector_store %arg11[%c2, %c0_14, %c0_15], %20 {strides = array<i32>} : memref<4x8x384xf32, #tpu.memory_space<vmem>>, vector<2x1x384xf32>,
    %21 = vector.extract_strided_slice %14 {offsets = [0, 6, 0], sizes = [2, 1, 384], strides = [1, 1, 1]} : vector<2x8x384xf32> to vector<2x1x384xf32>
    %22 = vector.shape_cast %21 : vector<2x1x384xf32> to vector<2x384xf32>
    %c2_16 = arith.constant 2 : index
    %c1 = arith.constant 1 : index
    %c0_17 = arith.constant 0 : index
    %23 = vector.load %arg11[%c2_16, %c1, %c0_17] : memref<4x8x384xf32, #tpu.memory_space<vmem>>, vector<2x1x384xf32>
    %24 = vector.shape_cast %23 : vector<2x1x384xf32> to vector<2x384xf32>
    %25 = vector.shape_cast %22 : vector<2x384xf32> to vector<2x1x384xf32>
    tpu.vector_store %arg11[%c2_16, %c1, %c0_17], %25 {strides = array<i32>} : memref<4x8x384xf32, #tpu.memory_space<vmem>>, vector<2x1x384xf32>,
    %26 = vector.extract_strided_slice %14 {offsets = [0, 5, 0], sizes = [2, 1, 384], strides = [1, 1, 1]} : vector<2x8x384xf32> to vector<2x1x384xf32>
    %27 = vector.shape_cast %26 : vector<2x1x384xf32> to vector<2x384xf32>
    %c2_18 = arith.constant 2 : index
    %c2_19 = arith.constant 2 : index
    %c0_20 = arith.constant 0 : index
    %28 = vector.load %arg11[%c2_18, %c2_19, %c0_20] : memref<4x8x384xf32, #tpu.memory_space<vmem>>, vector<2x1x384xf32>
    %29 = vector.shape_cast %28 : vector<2x1x384xf32> to vector<2x384xf32>
    %30 = vector.shape_cast %27 : vector<2x384xf32> to vector<2x1x384xf32>
    tpu.vector_store %arg11[%c2_18, %c2_19, %c0_20], %30 {strides = array<i32>} : memref<4x8x384xf32, #tpu.memory_space<vmem>>, vector<2x1x384xf32>,
    %31 = vector.extract_strided_slice %14 {offsets = [0, 4, 0], sizes = [2, 1, 384], strides = [1, 1, 1]} : vector<2x8x384xf32> to vector<2x1x384xf32>
    %32 = vector.shape_cast %31 : vector<2x1x384xf32> to vector<2x384xf32>
    %c2_21 = arith.constant 2 : index
    %c3 = arith.constant 3 : index
    %c0_22 = arith.constant 0 : index
    %33 = vector.load %arg11[%c2_21, %c3, %c0_22] : memref<4x8x384xf32, #tpu.memory_space<vmem>>, vector<2x1x384xf32>
    %34 = vector.shape_cast %33 : vector<2x1x384xf32> to vector<2x384xf32>
    %35 = vector.shape_cast %32 : vector<2x384xf32> to vector<2x1x384xf32>
    tpu.vector_store %arg11[%c2_21, %c3, %c0_22], %35 {strides = array<i32>} : memref<4x8x384xf32, #tpu.memory_space<vmem>>, vector<2x1x384xf32>,
    %36 = vector.extract_strided_slice %14 {offsets = [0, 3, 0], sizes = [2, 1, 384], strides = [1, 1, 1]} : vector<2x8x384xf32> to vector<2x1x384xf32>
    %37 = vector.shape_cast %36 : vector<2x1x384xf32> to vector<2x384xf32>
    %c2_23 = arith.constant 2 : index
    %c4 = arith.constant 4 : index
    %c0_24 = arith.constant 0 : index
    %38 = vector.load %arg11[%c2_23, %c4, %c0_24] : memref<4x8x384xf32, #tpu.memory_space<vmem>>, vector<2x1x384xf32>
    %39 = vector.shape_cast %38 : vector<2x1x384xf32> to vector<2x384xf32>
    %40 = vector.shape_cast %37 : vector<2x384xf32> to vector<2x1x384xf32>
    tpu.vector_store %arg11[%c2_23, %c4, %c0_24], %40 {strides = array<i32>} : memref<4x8x384xf32, #tpu.memory_space<vmem>>, vector<2x1x384xf32>,
    %41 = vector.extract_strided_slice %14 {offsets = [0, 2, 0], sizes = [2, 1, 384], strides = [1, 1, 1]} : vector<2x8x384xf32> to vector<2x1x384xf32>
    %42 = vector.shape_cast %41 : vector<2x1x384xf32> to vector<2x384xf32>
    %c2_25 = arith.constant 2 : index
    %c5 = arith.constant 5 : index
    %c0_26 = arith.constant 0 : index
    %43 = vector.load %arg11[%c2_25, %c5, %c0_26] : memref<4x8x384xf32, #tpu.memory_space<vmem>>, vector<2x1x384xf32>
    %44 = vector.shape_cast %43 : vector<2x1x384xf32> to vector<2x384xf32>
    %45 = vector.shape_cast %42 : vector<2x384xf32> to vector<2x1x384xf32>
    tpu.vector_store %arg11[%c2_25, %c5, %c0_26], %45 {strides = array<i32>} : memref<4x8x384xf32, #tpu.memory_space<vmem>>, vector<2x1x384xf32>,
    %46 = vector.extract_strided_slice %14 {offsets = [0, 1, 0], sizes = [2, 1, 384], strides = [1, 1, 1]} : vector<2x8x384xf32> to vector<2x1x384xf32>
    %47 = vector.shape_cast %46 : vector<2x1x384xf32> to vector<2x384xf32>
    %c2_27 = arith.constant 2 : index
    %c6 = arith.constant 6 : index
    %c0_28 = arith.constant 0 : index
    %48 = vector.load %arg11[%c2_27, %c6, %c0_28] : memref<4x8x384xf32, #tpu.memory_space<vmem>>, vector<2x1x384xf32>
    %49 = vector.shape_cast %48 : vector<2x1x384xf32> to vector<2x384xf32>
    %50 = vector.shape_cast %47 : vector<2x384xf32> to vector<2x1x384xf32>
    tpu.vector_store %arg11[%c2_27, %c6, %c0_28], %50 {strides = array<i32>} : memref<4x8x384xf32, #tpu.memory_space<vmem>>, vector<2x1x384xf32>,
    %51 = vector.extract_strided_slice %14 {offsets = [0, 0, 0], sizes = [2, 1, 384], strides = [1, 1, 1]} : vector<2x8x384xf32> to vector<2x1x384xf32>
    %52 = vector.shape_cast %51 : vector<2x1x384xf32> to vector<2x384xf32>
    %c2_29 = arith.constant 2 : index
    %c7 = arith.constant 7 : index
    %c0_30 = arith.constant 0 : index
    %53 = vector.load %arg11[%c2_29, %c7, %c0_30] : memref<4x8x384xf32, #tpu.memory_space<vmem>>, vector<2x1x384xf32>
    %54 = vector.shape_cast %53 : vector<2x1x384xf32> to vector<2x384xf32>
    %55 = vector.shape_cast %52 : vector<2x384xf32> to vector<2x1x384xf32>
    tpu.vector_store %arg11[%c2_29, %c7, %c0_30], %55 {strides = array<i32>} : memref<4x8x384xf32, #tpu.memory_space<vmem>>, vector<2x1x384xf32>,
    %c0_31 = arith.constant 0 : index
    %c0_32 = arith.constant 0 : index
    %56 = vector.load %arg3[%c0_31, %c0_32] : memref<256x384xf32, #tpu.memory_space<vmem>>, vector<256x384xf32>
    %c0_33 = arith.constant 0 : index
    %c0_34 = arith.constant 0 : index
    %57 = vector.load %arg6[%c0_33, %c0_34] : memref<4x128xf32, #tpu.memory_space<vmem>>, vector<4x128xf32>
    %58 = tpu.iota {dimensions = array<i32: 0>} : vector<4x1xi32>
    %c2_i32 = arith.constant 2 : i32
    %59 = vector.broadcast %c2_i32 : i32 to vector<4x1xi32>
    %60 = arith.cmpi slt, %58, %59 : vector<4x1xi32>
    %61 = arith.extui %60 : vector<4x1xi1> to vector<4x1xi32>
    %62 = arith.sitofp %61 : vector<4x1xi32> to vector<4x1xf32>
    %cst_35 = arith.constant 1.000000e+00 : f32
    %63 = vector.broadcast %cst_35 : f32 to vector<4x1xf32>
    %64 = arith.subf %63, %62 : vector<4x1xf32>
    %cst_36 = arith.constant 0.000000e+00 : f32
    %65 = vector.broadcast %cst_36 : f32 to vector<4x128xf32>
    %c0_i32 = arith.constant 0 : i32
    %66 = vector.broadcast %62 : vector<4x1xf32> to vector<4x128xf32>
    %67 = arith.mulf %65, %66 : vector<4x128xf32>
    %68 = vector.broadcast %64 : vector<4x1xf32> to vector<4x128xf32>
    %69 = arith.mulf %65, %68 : vector<4x128xf32>
    %70 = tpu.concatenate %67, %69 in 1 : vector<4x128xf32>, vector<4x128xf32> -> vector<4x256xf32>
    %cst_37 = arith.constant dense<0.000000e+00> : vector<4x384xf32>
    %71 = tpu.matmul %70, %56, %cst_37 {dimension_numbers = #tpu.dot_dimension_numbers<[1], [0], [0], [1], [0, 0, 1, 1], [], []>} : vector<4x256xf32>, vector<256x384xf32>, vector<4x384xf32> -> vector<4x384xf32>
    %c0_38 = arith.constant 0 : index
    %72 = arith.index_cast %c0_i32 : i32 to index
    %c0_39 = arith.constant 0 : index
    %73 = vector.load %arg11[%c0_38, %72, %c0_39] : memref<4x8x384xf32, #tpu.memory_space<vmem>>, vector<4x1x384xf32>
    %74 = vector.shape_cast %73 : vector<4x1x384xf32> to vector<4x384xf32>
    %75 = vector.extract_strided_slice %74 {offsets = [0, 0], sizes = [4, 128], strides = [1, 1]} : vector<4x384xf32> to vector<4x128xf32>
    %76 = vector.extract_strided_slice %71 {offsets = [0, 0], sizes = [4, 128], strides = [1, 1]} : vector<4x384xf32> to vector<4x128xf32>
    %77 = arith.addf %75, %76 : vector<4x128xf32>
    %78 = arith.negf %77 : vector<4x128xf32>
    %79 = math.exp %78 : vector<4x128xf32>
    %cst_40 = arith.constant 1.000000e+00 : f32
    %80 = vector.broadcast %cst_40 : f32 to vector<4x128xf32>
    %81 = arith.addf %80, %79 : vector<4x128xf32>
    %82 = arith.divf %80, %81 : vector<4x128xf32>
    %83 = vector.extract_strided_slice %74 {offsets = [0, 128], sizes = [4, 128], strides = [1, 1]} : vector<4x384xf32> to vector<4x128xf32>
    %84 = vector.extract_strided_slice %71 {offsets = [0, 128], sizes = [4, 128], strides = [1, 1]} : vector<4x384xf32> to vector<4x128xf32>
    %85 = arith.addf %83, %84 : vector<4x128xf32>
    %86 = arith.negf %85 : vector<4x128xf32>
    %87 = math.exp %86 : vector<4x128xf32>
    %cst_41 = arith.constant 1.000000e+00 : f32
    %88 = vector.broadcast %cst_41 : f32 to vector<4x128xf32>
    %89 = arith.addf %88, %87 : vector<4x128xf32>
    %90 = arith.divf %88, %89 : vector<4x128xf32>
    %91 = vector.extract_strided_slice %74 {offsets = [0, 256], sizes = [4, 128], strides = [1, 1]} : vector<4x384xf32> to vector<4x128xf32>
    %92 = vector.extract_strided_slice %71 {offsets = [0, 256], sizes = [4, 128], strides = [1, 1]} : vector<4x384xf32> to vector<4x128xf32>
    %93 = arith.addf %92, %57 : vector<4x128xf32>
    %94 = arith.mulf %82, %93 : vector<4x128xf32>
    %95 = arith.addf %91, %94 : vector<4x128xf32>
    %96 = math.tanh %95 : vector<4x128xf32>
    %cst_42 = arith.constant 1.000000e+00 : f32
    %97 = vector.broadcast %cst_42 : f32 to vector<4x128xf32>
    %98 = arith.subf %97, %90 : vector<4x128xf32>
    %99 = arith.mulf %98, %96 : vector<4x128xf32>
    %100 = arith.mulf %90, %65 : vector<4x128xf32>
    %101 = arith.addf %99, %100 : vector<4x128xf32>
    %102 = vector.extract_strided_slice %101 {offsets = [0, 0], sizes = [2, 128], strides = [1, 1]} : vector<4x128xf32> to vector<2x128xf32>
    %c0_43 = arith.constant 0 : index
    %103 = arith.index_cast %c0_i32 : i32 to index
    %c0_44 = arith.constant 0 : index
    %104 = vector.load %arg12[%c0_43, %103, %c0_44] : memref<2x8x128xf32, #tpu.memory_space<vmem>>, vector<2x1x128xf32>
    %105 = vector.shape_cast %104 : vector<2x1x128xf32> to vector<2x128xf32>
    %106 = vector.shape_cast %102 : vector<2x128xf32> to vector<2x1x128xf32>
    tpu.vector_store %arg12[%c0_43, %103, %c0_44], %106 {strides = array<i32>} : memref<2x8x128xf32, #tpu.memory_space<vmem>>, vector<2x1x128xf32>,
    %107 = vector.extract_strided_slice %101 {offsets = [2, 0], sizes = [2, 128], strides = [1, 1]} : vector<4x128xf32> to vector<2x128xf32>
    %c7_i32 = arith.constant 7 : i32
    %108 = arith.subi %c7_i32, %c0_i32 : i32
    %c0_45 = arith.constant 0 : index
    %109 = arith.index_cast %108 : i32 to index
    %c0_46 = arith.constant 0 : index
    %110 = vector.load %arg13[%c0_45, %109, %c0_46] : memref<2x8x128xf32, #tpu.memory_space<vmem>>, vector<2x1x128xf32>
    %111 = vector.shape_cast %110 : vector<2x1x128xf32> to vector<2x128xf32>
    %112 = vector.shape_cast %107 : vector<2x128xf32> to vector<2x1x128xf32>
    tpu.vector_store %arg13[%c0_45, %109, %c0_46], %112 {strides = array<i32>} : memref<2x8x128xf32, #tpu.memory_space<vmem>>, vector<2x1x128xf32>,
    %c1_i32 = arith.constant 1 : i32
    %113 = vector.broadcast %62 : vector<4x1xf32> to vector<4x128xf32>
    %114 = arith.mulf %101, %113 : vector<4x128xf32>
    %115 = vector.broadcast %64 : vector<4x1xf32> to vector<4x128xf32>
    %116 = arith.mulf %101, %115 : vector<4x128xf32>
    %117 = tpu.concatenate %114, %116 in 1 : vector<4x128xf32>, vector<4x128xf32> -> vector<4x256xf32>
    %cst_47 = arith.constant dense<0.000000e+00> : vector<4x384xf32>
    %118 = tpu.matmul %117, %56, %cst_47 {dimension_numbers = #tpu.dot_dimension_numbers<[1], [0], [0], [1], [0, 0, 1, 1], [], []>} : vector<4x256xf32>, vector<256x384xf32>, vector<4x384xf32> -> vector<4x384xf32>
    %c0_48 = arith.constant 0 : index
    %119 = arith.index_cast %c1_i32 : i32 to index
    %c0_49 = arith.constant 0 : index
    %120 = vector.load %arg11[%c0_48, %119, %c0_49] : memref<4x8x384xf32, #tpu.memory_space<vmem>>, vector<4x1x384xf32>
    %121 = vector.shape_cast %120 : vector<4x1x384xf32> to vector<4x384xf32>
    %122 = vector.extract_strided_slice %121 {offsets = [0, 0], sizes = [4, 128], strides = [1, 1]} : vector<4x384xf32> to vector<4x128xf32>
    %123 = vector.extract_strided_slice %118 {offsets = [0, 0], sizes = [4, 128], strides = [1, 1]} : vector<4x384xf32> to vector<4x128xf32>
    %124 = arith.addf %122, %123 : vector<4x128xf32>
    %125 = arith.negf %124 : vector<4x128xf32>
    %126 = math.exp %125 : vector<4x128xf32>
    %cst_50 = arith.constant 1.000000e+00 : f32
    %127 = vector.broadcast %cst_50 : f32 to vector<4x128xf32>
    %128 = arith.addf %127, %126 : vector<4x128xf32>
    %129 = arith.divf %127, %128 : vector<4x128xf32>
    %130 = vector.extract_strided_slice %121 {offsets = [0, 128], sizes = [4, 128], strides = [1, 1]} : vector<4x384xf32> to vector<4x128xf32>
    %131 = vector.extract_strided_slice %118 {offsets = [0, 128], sizes = [4, 128], strides = [1, 1]} : vector<4x384xf32> to vector<4x128xf32>
    %132 = arith.addf %130, %131 : vector<4x128xf32>
    %133 = arith.negf %132 : vector<4x128xf32>
    %134 = math.exp %133 : vector<4x128xf32>
    %cst_51 = arith.constant 1.000000e+00 : f32
    %135 = vector.broadcast %cst_51 : f32 to vector<4x128xf32>
    %136 = arith.addf %135, %134 : vector<4x128xf32>
    %137 = arith.divf %135, %136 : vector<4x128xf32>
    %138 = vector.extract_strided_slice %121 {offsets = [0, 256], sizes = [4, 128], strides = [1, 1]} : vector<4x384xf32> to vector<4x128xf32>
    %139 = vector.extract_strided_slice %118 {offsets = [0, 256], sizes = [4, 128], strides = [1, 1]} : vector<4x384xf32> to vector<4x128xf32>
    %140 = arith.addf %139, %57 : vector<4x128xf32>
    %141 = arith.mulf %129, %140 : vector<4x128xf32>
    %142 = arith.addf %138, %141 : vector<4x128xf32>
    %143 = math.tanh %142 : vector<4x128xf32>
    %cst_52 = arith.constant 1.000000e+00 : f32
    %144 = vector.broadcast %cst_52 : f32 to vector<4x128xf32>
    %145 = arith.subf %144, %137 : vector<4x128xf32>
    %146 = arith.mulf %145, %143 : vector<4x128xf32>
    %147 = arith.mulf %137, %101 : vector<4x128xf32>
    %148 = arith.addf %146, %147 : vector<4x128xf32>
    %149 = vector.extract_strided_slice %148 {offsets = [0, 0], sizes = [2, 128], strides = [1, 1]} : vector<4x128xf32> to vector<2x128xf32>
    %c0_53 = arith.constant 0 : index
    %150 = arith.index_cast %c1_i32 : i32 to index
    %c0_54 = arith.constant 0 : index
    %151 = vector.load %arg12[%c0_53, %150, %c0_54] : memref<2x8x128xf32, #tpu.memory_space<vmem>>, vector<2x1x128xf32>
    %152 = vector.shape_cast %151 : vector<2x1x128xf32> to vector<2x128xf32>
    %153 = vector.shape_cast %149 : vector<2x128xf32> to vector<2x1x128xf32>
    tpu.vector_store %arg12[%c0_53, %150, %c0_54], %153 {strides = array<i32>} : memref<2x8x128xf32, #tpu.memory_space<vmem>>, vector<2x1x128xf32>,
    %154 = vector.extract_strided_slice %148 {offsets = [2, 0], sizes = [2, 128], strides = [1, 1]} : vector<4x128xf32> to vector<2x128xf32>
    %c7_i32_55 = arith.constant 7 : i32
    %155 = arith.subi %c7_i32_55, %c1_i32 : i32
    %c0_56 = arith.constant 0 : index
    %156 = arith.index_cast %155 : i32 to index
    %c0_57 = arith.constant 0 : index
    %157 = vector.load %arg13[%c0_56, %156, %c0_57] : memref<2x8x128xf32, #tpu.memory_space<vmem>>, vector<2x1x128xf32>
    %158 = vector.shape_cast %157 : vector<2x1x128xf32> to vector<2x128xf32>
    %159 = vector.shape_cast %154 : vector<2x128xf32> to vector<2x1x128xf32>
    tpu.vector_store %arg13[%c0_56, %156, %c0_57], %159 {strides = array<i32>} : memref<2x8x128xf32, #tpu.memory_space<vmem>>, vector<2x1x128xf32>,
    %c2_i32_58 = arith.constant 2 : i32
    %160 = vector.broadcast %62 : vector<4x1xf32> to vector<4x128xf32>
    %161 = arith.mulf %148, %160 : vector<4x128xf32>
    %162 = vector.broadcast %64 : vector<4x1xf32> to vector<4x128xf32>
    %163 = arith.mulf %148, %162 : vector<4x128xf32>
    %164 = tpu.concatenate %161, %163 in 1 : vector<4x128xf32>, vector<4x128xf32> -> vector<4x256xf32>
    %cst_59 = arith.constant dense<0.000000e+00> : vector<4x384xf32>
    %165 = tpu.matmul %164, %56, %cst_59 {dimension_numbers = #tpu.dot_dimension_numbers<[1], [0], [0], [1], [0, 0, 1, 1], [], []>} : vector<4x256xf32>, vector<256x384xf32>, vector<4x384xf32> -> vector<4x384xf32>
    %c0_60 = arith.constant 0 : index
    %166 = arith.index_cast %c2_i32_58 : i32 to index
    %c0_61 = arith.constant 0 : index
    %167 = vector.load %arg11[%c0_60, %166, %c0_61] : memref<4x8x384xf32, #tpu.memory_space<vmem>>, vector<4x1x384xf32>
    %168 = vector.shape_cast %167 : vector<4x1x384xf32> to vector<4x384xf32>
    %169 = vector.extract_strided_slice %168 {offsets = [0, 0], sizes = [4, 128], strides = [1, 1]} : vector<4x384xf32> to vector<4x128xf32>
    %170 = vector.extract_strided_slice %165 {offsets = [0, 0], sizes = [4, 128], strides = [1, 1]} : vector<4x384xf32> to vector<4x128xf32>
    %171 = arith.addf %169, %170 : vector<4x128xf32>
    %172 = arith.negf %171 : vector<4x128xf32>
    %173 = math.exp %172 : vector<4x128xf32>
    %cst_62 = arith.constant 1.000000e+00 : f32
    %174 = vector.broadcast %cst_62 : f32 to vector<4x128xf32>
    %175 = arith.addf %174, %173 : vector<4x128xf32>
    %176 = arith.divf %174, %175 : vector<4x128xf32>
    %177 = vector.extract_strided_slice %168 {offsets = [0, 128], sizes = [4, 128], strides = [1, 1]} : vector<4x384xf32> to vector<4x128xf32>
    %178 = vector.extract_strided_slice %165 {offsets = [0, 128], sizes = [4, 128], strides = [1, 1]} : vector<4x384xf32> to vector<4x128xf32>
    %179 = arith.addf %177, %178 : vector<4x128xf32>
    %180 = arith.negf %179 : vector<4x128xf32>
    %181 = math.exp %180 : vector<4x128xf32>
    %cst_63 = arith.constant 1.000000e+00 : f32
    %182 = vector.broadcast %cst_63 : f32 to vector<4x128xf32>
    %183 = arith.addf %182, %181 : vector<4x128xf32>
    %184 = arith.divf %182, %183 : vector<4x128xf32>
    %185 = vector.extract_strided_slice %168 {offsets = [0, 256], sizes = [4, 128], strides = [1, 1]} : vector<4x384xf32> to vector<4x128xf32>
    %186 = vector.extract_strided_slice %165 {offsets = [0, 256], sizes = [4, 128], strides = [1, 1]} : vector<4x384xf32> to vector<4x128xf32>
    %187 = arith.addf %186, %57 : vector<4x128xf32>
    %188 = arith.mulf %176, %187 : vector<4x128xf32>
    %189 = arith.addf %185, %188 : vector<4x128xf32>
    %190 = math.tanh %189 : vector<4x128xf32>
    %cst_64 = arith.constant 1.000000e+00 : f32
    %191 = vector.broadcast %cst_64 : f32 to vector<4x128xf32>
    %192 = arith.subf %191, %184 : vector<4x128xf32>
    %193 = arith.mulf %192, %190 : vector<4x128xf32>
    %194 = arith.mulf %184, %148 : vector<4x128xf32>
    %195 = arith.addf %193, %194 : vector<4x128xf32>
    %196 = vector.extract_strided_slice %195 {offsets = [0, 0], sizes = [2, 128], strides = [1, 1]} : vector<4x128xf32> to vector<2x128xf32>
    %c0_65 = arith.constant 0 : index
    %197 = arith.index_cast %c2_i32_58 : i32 to index
    %c0_66 = arith.constant 0 : index
    %198 = vector.load %arg12[%c0_65, %197, %c0_66] : memref<2x8x128xf32, #tpu.memory_space<vmem>>, vector<2x1x128xf32>
    %199 = vector.shape_cast %198 : vector<2x1x128xf32> to vector<2x128xf32>
    %200 = vector.shape_cast %196 : vector<2x128xf32> to vector<2x1x128xf32>
    tpu.vector_store %arg12[%c0_65, %197, %c0_66], %200 {strides = array<i32>} : memref<2x8x128xf32, #tpu.memory_space<vmem>>, vector<2x1x128xf32>,
    %201 = vector.extract_strided_slice %195 {offsets = [2, 0], sizes = [2, 128], strides = [1, 1]} : vector<4x128xf32> to vector<2x128xf32>
    %c7_i32_67 = arith.constant 7 : i32
    %202 = arith.subi %c7_i32_67, %c2_i32_58 : i32
    %c0_68 = arith.constant 0 : index
    %203 = arith.index_cast %202 : i32 to index
    %c0_69 = arith.constant 0 : index
    %204 = vector.load %arg13[%c0_68, %203, %c0_69] : memref<2x8x128xf32, #tpu.memory_space<vmem>>, vector<2x1x128xf32>
    %205 = vector.shape_cast %204 : vector<2x1x128xf32> to vector<2x128xf32>
    %206 = vector.shape_cast %201 : vector<2x128xf32> to vector<2x1x128xf32>
    tpu.vector_store %arg13[%c0_68, %203, %c0_69], %206 {strides = array<i32>} : memref<2x8x128xf32, #tpu.memory_space<vmem>>, vector<2x1x128xf32>,
    %c3_i32 = arith.constant 3 : i32
    %207 = vector.broadcast %62 : vector<4x1xf32> to vector<4x128xf32>
    %208 = arith.mulf %195, %207 : vector<4x128xf32>
    %209 = vector.broadcast %64 : vector<4x1xf32> to vector<4x128xf32>
    %210 = arith.mulf %195, %209 : vector<4x128xf32>
    %211 = tpu.concatenate %208, %210 in 1 : vector<4x128xf32>, vector<4x128xf32> -> vector<4x256xf32>
    %cst_70 = arith.constant dense<0.000000e+00> : vector<4x384xf32>
    %212 = tpu.matmul %211, %56, %cst_70 {dimension_numbers = #tpu.dot_dimension_numbers<[1], [0], [0], [1], [0, 0, 1, 1], [], []>} : vector<4x256xf32>, vector<256x384xf32>, vector<4x384xf32> -> vector<4x384xf32>
    %c0_71 = arith.constant 0 : index
    %213 = arith.index_cast %c3_i32 : i32 to index
    %c0_72 = arith.constant 0 : index
    %214 = vector.load %arg11[%c0_71, %213, %c0_72] : memref<4x8x384xf32, #tpu.memory_space<vmem>>, vector<4x1x384xf32>
    %215 = vector.shape_cast %214 : vector<4x1x384xf32> to vector<4x384xf32>
    %216 = vector.extract_strided_slice %215 {offsets = [0, 0], sizes = [4, 128], strides = [1, 1]} : vector<4x384xf32> to vector<4x128xf32>
    %217 = vector.extract_strided_slice %212 {offsets = [0, 0], sizes = [4, 128], strides = [1, 1]} : vector<4x384xf32> to vector<4x128xf32>
    %218 = arith.addf %216, %217 : vector<4x128xf32>
    %219 = arith.negf %218 : vector<4x128xf32>
    %220 = math.exp %219 : vector<4x128xf32>
    %cst_73 = arith.constant 1.000000e+00 : f32
    %221 = vector.broadcast %cst_73 : f32 to vector<4x128xf32>
    %222 = arith.addf %221, %220 : vector<4x128xf32>
    %223 = arith.divf %221, %222 : vector<4x128xf32>
    %224 = vector.extract_strided_slice %215 {offsets = [0, 128], sizes = [4, 128], strides = [1, 1]} : vector<4x384xf32> to vector<4x128xf32>
    %225 = vector.extract_strided_slice %212 {offsets = [0, 128], sizes = [4, 128], strides = [1, 1]} : vector<4x384xf32> to vector<4x128xf32>
    %226 = arith.addf %224, %225 : vector<4x128xf32>
    %227 = arith.negf %226 : vector<4x128xf32>
    %228 = math.exp %227 : vector<4x128xf32>
    %cst_74 = arith.constant 1.000000e+00 : f32
    %229 = vector.broadcast %cst_74 : f32 to vector<4x128xf32>
    %230 = arith.addf %229, %228 : vector<4x128xf32>
    %231 = arith.divf %229, %230 : vector<4x128xf32>
    %232 = vector.extract_strided_slice %215 {offsets = [0, 256], sizes = [4, 128], strides = [1, 1]} : vector<4x384xf32> to vector<4x128xf32>
    %233 = vector.extract_strided_slice %212 {offsets = [0, 256], sizes = [4, 128], strides = [1, 1]} : vector<4x384xf32> to vector<4x128xf32>
    %234 = arith.addf %233, %57 : vector<4x128xf32>
    %235 = arith.mulf %223, %234 : vector<4x128xf32>
    %236 = arith.addf %232, %235 : vector<4x128xf32>
    %237 = math.tanh %236 : vector<4x128xf32>
    %cst_75 = arith.constant 1.000000e+00 : f32
    %238 = vector.broadcast %cst_75 : f32 to vector<4x128xf32>
    %239 = arith.subf %238, %231 : vector<4x128xf32>
    %240 = arith.mulf %239, %237 : vector<4x128xf32>
    %241 = arith.mulf %231, %195 : vector<4x128xf32>
    %242 = arith.addf %240, %241 : vector<4x128xf32>
    %243 = vector.extract_strided_slice %242 {offsets = [0, 0], sizes = [2, 128], strides = [1, 1]} : vector<4x128xf32> to vector<2x128xf32>
    %c0_76 = arith.constant 0 : index
    %244 = arith.index_cast %c3_i32 : i32 to index
    %c0_77 = arith.constant 0 : index
    %245 = vector.load %arg12[%c0_76, %244, %c0_77] : memref<2x8x128xf32, #tpu.memory_space<vmem>>, vector<2x1x128xf32>
    %246 = vector.shape_cast %245 : vector<2x1x128xf32> to vector<2x128xf32>
    %247 = vector.shape_cast %243 : vector<2x128xf32> to vector<2x1x128xf32>
    tpu.vector_store %arg12[%c0_76, %244, %c0_77], %247 {strides = array<i32>} : memref<2x8x128xf32, #tpu.memory_space<vmem>>, vector<2x1x128xf32>,
    %248 = vector.extract_strided_slice %242 {offsets = [2, 0], sizes = [2, 128], strides = [1, 1]} : vector<4x128xf32> to vector<2x128xf32>
    %c7_i32_78 = arith.constant 7 : i32
    %249 = arith.subi %c7_i32_78, %c3_i32 : i32
    %c0_79 = arith.constant 0 : index
    %250 = arith.index_cast %249 : i32 to index
    %c0_80 = arith.constant 0 : index
    %251 = vector.load %arg13[%c0_79, %250, %c0_80] : memref<2x8x128xf32, #tpu.memory_space<vmem>>, vector<2x1x128xf32>
    %252 = vector.shape_cast %251 : vector<2x1x128xf32> to vector<2x128xf32>
    %253 = vector.shape_cast %248 : vector<2x128xf32> to vector<2x1x128xf32>
    tpu.vector_store %arg13[%c0_79, %250, %c0_80], %253 {strides = array<i32>} : memref<2x8x128xf32, #tpu.memory_space<vmem>>, vector<2x1x128xf32>,
    %c4_i32 = arith.constant 4 : i32
    %254 = vector.broadcast %62 : vector<4x1xf32> to vector<4x128xf32>
    %255 = arith.mulf %242, %254 : vector<4x128xf32>
    %256 = vector.broadcast %64 : vector<4x1xf32> to vector<4x128xf32>
    %257 = arith.mulf %242, %256 : vector<4x128xf32>
    %258 = tpu.concatenate %255, %257 in 1 : vector<4x128xf32>, vector<4x128xf32> -> vector<4x256xf32>
    %cst_81 = arith.constant dense<0.000000e+00> : vector<4x384xf32>
    %259 = tpu.matmul %258, %56, %cst_81 {dimension_numbers = #tpu.dot_dimension_numbers<[1], [0], [0], [1], [0, 0, 1, 1], [], []>} : vector<4x256xf32>, vector<256x384xf32>, vector<4x384xf32> -> vector<4x384xf32>
    %c0_82 = arith.constant 0 : index
    %260 = arith.index_cast %c4_i32 : i32 to index
    %c0_83 = arith.constant 0 : index
    %261 = vector.load %arg11[%c0_82, %260, %c0_83] : memref<4x8x384xf32, #tpu.memory_space<vmem>>, vector<4x1x384xf32>
    %262 = vector.shape_cast %261 : vector<4x1x384xf32> to vector<4x384xf32>
    %263 = vector.extract_strided_slice %262 {offsets = [0, 0], sizes = [4, 128], strides = [1, 1]} : vector<4x384xf32> to vector<4x128xf32>
    %264 = vector.extract_strided_slice %259 {offsets = [0, 0], sizes = [4, 128], strides = [1, 1]} : vector<4x384xf32> to vector<4x128xf32>
    %265 = arith.addf %263, %264 : vector<4x128xf32>
    %266 = arith.negf %265 : vector<4x128xf32>
    %267 = math.exp %266 : vector<4x128xf32>
    %cst_84 = arith.constant 1.000000e+00 : f32
    %268 = vector.broadcast %cst_84 : f32 to vector<4x128xf32>
    %269 = arith.addf %268, %267 : vector<4x128xf32>
    %270 = arith.divf %268, %269 : vector<4x128xf32>
    %271 = vector.extract_strided_slice %262 {offsets = [0, 128], sizes = [4, 128], strides = [1, 1]} : vector<4x384xf32> to vector<4x128xf32>
    %272 = vector.extract_strided_slice %259 {offsets = [0, 128], sizes = [4, 128], strides = [1, 1]} : vector<4x384xf32> to vector<4x128xf32>
    %273 = arith.addf %271, %272 : vector<4x128xf32>
    %274 = arith.negf %273 : vector<4x128xf32>
    %275 = math.exp %274 : vector<4x128xf32>
    %cst_85 = arith.constant 1.000000e+00 : f32
    %276 = vector.broadcast %cst_85 : f32 to vector<4x128xf32>
    %277 = arith.addf %276, %275 : vector<4x128xf32>
    %278 = arith.divf %276, %277 : vector<4x128xf32>
    %279 = vector.extract_strided_slice %262 {offsets = [0, 256], sizes = [4, 128], strides = [1, 1]} : vector<4x384xf32> to vector<4x128xf32>
    %280 = vector.extract_strided_slice %259 {offsets = [0, 256], sizes = [4, 128], strides = [1, 1]} : vector<4x384xf32> to vector<4x128xf32>
    %281 = arith.addf %280, %57 : vector<4x128xf32>
    %282 = arith.mulf %270, %281 : vector<4x128xf32>
    %283 = arith.addf %279, %282 : vector<4x128xf32>
    %284 = math.tanh %283 : vector<4x128xf32>
    %cst_86 = arith.constant 1.000000e+00 : f32
    %285 = vector.broadcast %cst_86 : f32 to vector<4x128xf32>
    %286 = arith.subf %285, %278 : vector<4x128xf32>
    %287 = arith.mulf %286, %284 : vector<4x128xf32>
    %288 = arith.mulf %278, %242 : vector<4x128xf32>
    %289 = arith.addf %287, %288 : vector<4x128xf32>
    %290 = vector.extract_strided_slice %289 {offsets = [0, 0], sizes = [2, 128], strides = [1, 1]} : vector<4x128xf32> to vector<2x128xf32>
    %c0_87 = arith.constant 0 : index
    %291 = arith.index_cast %c4_i32 : i32 to index
    %c0_88 = arith.constant 0 : index
    %292 = vector.load %arg12[%c0_87, %291, %c0_88] : memref<2x8x128xf32, #tpu.memory_space<vmem>>, vector<2x1x128xf32>
    %293 = vector.shape_cast %292 : vector<2x1x128xf32> to vector<2x128xf32>
    %294 = vector.shape_cast %290 : vector<2x128xf32> to vector<2x1x128xf32>
    tpu.vector_store %arg12[%c0_87, %291, %c0_88], %294 {strides = array<i32>} : memref<2x8x128xf32, #tpu.memory_space<vmem>>, vector<2x1x128xf32>,
    %295 = vector.extract_strided_slice %289 {offsets = [2, 0], sizes = [2, 128], strides = [1, 1]} : vector<4x128xf32> to vector<2x128xf32>
    %c7_i32_89 = arith.constant 7 : i32
    %296 = arith.subi %c7_i32_89, %c4_i32 : i32
    %c0_90 = arith.constant 0 : index
    %297 = arith.index_cast %296 : i32 to index
    %c0_91 = arith.constant 0 : index
    %298 = vector.load %arg13[%c0_90, %297, %c0_91] : memref<2x8x128xf32, #tpu.memory_space<vmem>>, vector<2x1x128xf32>
    %299 = vector.shape_cast %298 : vector<2x1x128xf32> to vector<2x128xf32>
    %300 = vector.shape_cast %295 : vector<2x128xf32> to vector<2x1x128xf32>
    tpu.vector_store %arg13[%c0_90, %297, %c0_91], %300 {strides = array<i32>} : memref<2x8x128xf32, #tpu.memory_space<vmem>>, vector<2x1x128xf32>,
    %c5_i32 = arith.constant 5 : i32
    %301 = vector.broadcast %62 : vector<4x1xf32> to vector<4x128xf32>
    %302 = arith.mulf %289, %301 : vector<4x128xf32>
    %303 = vector.broadcast %64 : vector<4x1xf32> to vector<4x128xf32>
    %304 = arith.mulf %289, %303 : vector<4x128xf32>
    %305 = tpu.concatenate %302, %304 in 1 : vector<4x128xf32>, vector<4x128xf32> -> vector<4x256xf32>
    %cst_92 = arith.constant dense<0.000000e+00> : vector<4x384xf32>
    %306 = tpu.matmul %305, %56, %cst_92 {dimension_numbers = #tpu.dot_dimension_numbers<[1], [0], [0], [1], [0, 0, 1, 1], [], []>} : vector<4x256xf32>, vector<256x384xf32>, vector<4x384xf32> -> vector<4x384xf32>
    %c0_93 = arith.constant 0 : index
    %307 = arith.index_cast %c5_i32 : i32 to index
    %c0_94 = arith.constant 0 : index
    %308 = vector.load %arg11[%c0_93, %307, %c0_94] : memref<4x8x384xf32, #tpu.memory_space<vmem>>, vector<4x1x384xf32>
    %309 = vector.shape_cast %308 : vector<4x1x384xf32> to vector<4x384xf32>
    %310 = vector.extract_strided_slice %309 {offsets = [0, 0], sizes = [4, 128], strides = [1, 1]} : vector<4x384xf32> to vector<4x128xf32>
    %311 = vector.extract_strided_slice %306 {offsets = [0, 0], sizes = [4, 128], strides = [1, 1]} : vector<4x384xf32> to vector<4x128xf32>
    %312 = arith.addf %310, %311 : vector<4x128xf32>
    %313 = arith.negf %312 : vector<4x128xf32>
    %314 = math.exp %313 : vector<4x128xf32>
    %cst_95 = arith.constant 1.000000e+00 : f32
    %315 = vector.broadcast %cst_95 : f32 to vector<4x128xf32>
    %316 = arith.addf %315, %314 : vector<4x128xf32>
    %317 = arith.divf %315, %316 : vector<4x128xf32>
    %318 = vector.extract_strided_slice %309 {offsets = [0, 128], sizes = [4, 128], strides = [1, 1]} : vector<4x384xf32> to vector<4x128xf32>
    %319 = vector.extract_strided_slice %306 {offsets = [0, 128], sizes = [4, 128], strides = [1, 1]} : vector<4x384xf32> to vector<4x128xf32>
    %320 = arith.addf %318, %319 : vector<4x128xf32>
    %321 = arith.negf %320 : vector<4x128xf32>
    %322 = math.exp %321 : vector<4x128xf32>
    %cst_96 = arith.constant 1.000000e+00 : f32
    %323 = vector.broadcast %cst_96 : f32 to vector<4x128xf32>
    %324 = arith.addf %323, %322 : vector<4x128xf32>
    %325 = arith.divf %323, %324 : vector<4x128xf32>
    %326 = vector.extract_strided_slice %309 {offsets = [0, 256], sizes = [4, 128], strides = [1, 1]} : vector<4x384xf32> to vector<4x128xf32>
    %327 = vector.extract_strided_slice %306 {offsets = [0, 256], sizes = [4, 128], strides = [1, 1]} : vector<4x384xf32> to vector<4x128xf32>
    %328 = arith.addf %327, %57 : vector<4x128xf32>
    %329 = arith.mulf %317, %328 : vector<4x128xf32>
    %330 = arith.addf %326, %329 : vector<4x128xf32>
    %331 = math.tanh %330 : vector<4x128xf32>
    %cst_97 = arith.constant 1.000000e+00 : f32
    %332 = vector.broadcast %cst_97 : f32 to vector<4x128xf32>
    %333 = arith.subf %332, %325 : vector<4x128xf32>
    %334 = arith.mulf %333, %331 : vector<4x128xf32>
    %335 = arith.mulf %325, %289 : vector<4x128xf32>
    %336 = arith.addf %334, %335 : vector<4x128xf32>
    %337 = vector.extract_strided_slice %336 {offsets = [0, 0], sizes = [2, 128], strides = [1, 1]} : vector<4x128xf32> to vector<2x128xf32>
    %c0_98 = arith.constant 0 : index
    %338 = arith.index_cast %c5_i32 : i32 to index
    %c0_99 = arith.constant 0 : index
    %339 = vector.load %arg12[%c0_98, %338, %c0_99] : memref<2x8x128xf32, #tpu.memory_space<vmem>>, vector<2x1x128xf32>
    %340 = vector.shape_cast %339 : vector<2x1x128xf32> to vector<2x128xf32>
    %341 = vector.shape_cast %337 : vector<2x128xf32> to vector<2x1x128xf32>
    tpu.vector_store %arg12[%c0_98, %338, %c0_99], %341 {strides = array<i32>} : memref<2x8x128xf32, #tpu.memory_space<vmem>>, vector<2x1x128xf32>,
    %342 = vector.extract_strided_slice %336 {offsets = [2, 0], sizes = [2, 128], strides = [1, 1]} : vector<4x128xf32> to vector<2x128xf32>
    %c7_i32_100 = arith.constant 7 : i32
    %343 = arith.subi %c7_i32_100, %c5_i32 : i32
    %c0_101 = arith.constant 0 : index
    %344 = arith.index_cast %343 : i32 to index
    %c0_102 = arith.constant 0 : index
    %345 = vector.load %arg13[%c0_101, %344, %c0_102] : memref<2x8x128xf32, #tpu.memory_space<vmem>>, vector<2x1x128xf32>
    %346 = vector.shape_cast %345 : vector<2x1x128xf32> to vector<2x128xf32>
    %347 = vector.shape_cast %342 : vector<2x128xf32> to vector<2x1x128xf32>
    tpu.vector_store %arg13[%c0_101, %344, %c0_102], %347 {strides = array<i32>} : memref<2x8x128xf32, #tpu.memory_space<vmem>>, vector<2x1x128xf32>,
    %c6_i32 = arith.constant 6 : i32
    %348 = vector.broadcast %62 : vector<4x1xf32> to vector<4x128xf32>
    %349 = arith.mulf %336, %348 : vector<4x128xf32>
    %350 = vector.broadcast %64 : vector<4x1xf32> to vector<4x128xf32>
    %351 = arith.mulf %336, %350 : vector<4x128xf32>
    %352 = tpu.concatenate %349, %351 in 1 : vector<4x128xf32>, vector<4x128xf32> -> vector<4x256xf32>
    %cst_103 = arith.constant dense<0.000000e+00> : vector<4x384xf32>
    %353 = tpu.matmul %352, %56, %cst_103 {dimension_numbers = #tpu.dot_dimension_numbers<[1], [0], [0], [1], [0, 0, 1, 1], [], []>} : vector<4x256xf32>, vector<256x384xf32>, vector<4x384xf32> -> vector<4x384xf32>
    %c0_104 = arith.constant 0 : index
    %354 = arith.index_cast %c6_i32 : i32 to index
    %c0_105 = arith.constant 0 : index
    %355 = vector.load %arg11[%c0_104, %354, %c0_105] : memref<4x8x384xf32, #tpu.memory_space<vmem>>, vector<4x1x384xf32>
    %356 = vector.shape_cast %355 : vector<4x1x384xf32> to vector<4x384xf32>
    %357 = vector.extract_strided_slice %356 {offsets = [0, 0], sizes = [4, 128], strides = [1, 1]} : vector<4x384xf32> to vector<4x128xf32>
    %358 = vector.extract_strided_slice %353 {offsets = [0, 0], sizes = [4, 128], strides = [1, 1]} : vector<4x384xf32> to vector<4x128xf32>
    %359 = arith.addf %357, %358 : vector<4x128xf32>
    %360 = arith.negf %359 : vector<4x128xf32>
    %361 = math.exp %360 : vector<4x128xf32>
    %cst_106 = arith.constant 1.000000e+00 : f32
    %362 = vector.broadcast %cst_106 : f32 to vector<4x128xf32>
    %363 = arith.addf %362, %361 : vector<4x128xf32>
    %364 = arith.divf %362, %363 : vector<4x128xf32>
    %365 = vector.extract_strided_slice %356 {offsets = [0, 128], sizes = [4, 128], strides = [1, 1]} : vector<4x384xf32> to vector<4x128xf32>
    %366 = vector.extract_strided_slice %353 {offsets = [0, 128], sizes = [4, 128], strides = [1, 1]} : vector<4x384xf32> to vector<4x128xf32>
    %367 = arith.addf %365, %366 : vector<4x128xf32>
    %368 = arith.negf %367 : vector<4x128xf32>
    %369 = math.exp %368 : vector<4x128xf32>
    %cst_107 = arith.constant 1.000000e+00 : f32
    %370 = vector.broadcast %cst_107 : f32 to vector<4x128xf32>
    %371 = arith.addf %370, %369 : vector<4x128xf32>
    %372 = arith.divf %370, %371 : vector<4x128xf32>
    %373 = vector.extract_strided_slice %356 {offsets = [0, 256], sizes = [4, 128], strides = [1, 1]} : vector<4x384xf32> to vector<4x128xf32>
    %374 = vector.extract_strided_slice %353 {offsets = [0, 256], sizes = [4, 128], strides = [1, 1]} : vector<4x384xf32> to vector<4x128xf32>
    %375 = arith.addf %374, %57 : vector<4x128xf32>
    %376 = arith.mulf %364, %375 : vector<4x128xf32>
    %377 = arith.addf %373, %376 : vector<4x128xf32>
    %378 = math.tanh %377 : vector<4x128xf32>
    %cst_108 = arith.constant 1.000000e+00 : f32
    %379 = vector.broadcast %cst_108 : f32 to vector<4x128xf32>
    %380 = arith.subf %379, %372 : vector<4x128xf32>
    %381 = arith.mulf %380, %378 : vector<4x128xf32>
    %382 = arith.mulf %372, %336 : vector<4x128xf32>
    %383 = arith.addf %381, %382 : vector<4x128xf32>
    %384 = vector.extract_strided_slice %383 {offsets = [0, 0], sizes = [2, 128], strides = [1, 1]} : vector<4x128xf32> to vector<2x128xf32>
    %c0_109 = arith.constant 0 : index
    %385 = arith.index_cast %c6_i32 : i32 to index
    %c0_110 = arith.constant 0 : index
    %386 = vector.load %arg12[%c0_109, %385, %c0_110] : memref<2x8x128xf32, #tpu.memory_space<vmem>>, vector<2x1x128xf32>
    %387 = vector.shape_cast %386 : vector<2x1x128xf32> to vector<2x128xf32>
    %388 = vector.shape_cast %384 : vector<2x128xf32> to vector<2x1x128xf32>
    tpu.vector_store %arg12[%c0_109, %385, %c0_110], %388 {strides = array<i32>} : memref<2x8x128xf32, #tpu.memory_space<vmem>>, vector<2x1x128xf32>,
    %389 = vector.extract_strided_slice %383 {offsets = [2, 0], sizes = [2, 128], strides = [1, 1]} : vector<4x128xf32> to vector<2x128xf32>
    %c7_i32_111 = arith.constant 7 : i32
    %390 = arith.subi %c7_i32_111, %c6_i32 : i32
    %c0_112 = arith.constant 0 : index
    %391 = arith.index_cast %390 : i32 to index
    %c0_113 = arith.constant 0 : index
    %392 = vector.load %arg13[%c0_112, %391, %c0_113] : memref<2x8x128xf32, #tpu.memory_space<vmem>>, vector<2x1x128xf32>
    %393 = vector.shape_cast %392 : vector<2x1x128xf32> to vector<2x128xf32>
    %394 = vector.shape_cast %389 : vector<2x128xf32> to vector<2x1x128xf32>
    tpu.vector_store %arg13[%c0_112, %391, %c0_113], %394 {strides = array<i32>} : memref<2x8x128xf32, #tpu.memory_space<vmem>>, vector<2x1x128xf32>,
    %c7_i32_114 = arith.constant 7 : i32
    %395 = vector.broadcast %62 : vector<4x1xf32> to vector<4x128xf32>
    %396 = arith.mulf %383, %395 : vector<4x128xf32>
    %397 = vector.broadcast %64 : vector<4x1xf32> to vector<4x128xf32>
    %398 = arith.mulf %383, %397 : vector<4x128xf32>
    %399 = tpu.concatenate %396, %398 in 1 : vector<4x128xf32>, vector<4x128xf32> -> vector<4x256xf32>
    %cst_115 = arith.constant dense<0.000000e+00> : vector<4x384xf32>
    %400 = tpu.matmul %399, %56, %cst_115 {dimension_numbers = #tpu.dot_dimension_numbers<[1], [0], [0], [1], [0, 0, 1, 1], [], []>} : vector<4x256xf32>, vector<256x384xf32>, vector<4x384xf32> -> vector<4x384xf32>
    %c0_116 = arith.constant 0 : index
    %401 = arith.index_cast %c7_i32_114 : i32 to index
    %c0_117 = arith.constant 0 : index
    %402 = vector.load %arg11[%c0_116, %401, %c0_117] : memref<4x8x384xf32, #tpu.memory_space<vmem>>, vector<4x1x384xf32>
    %403 = vector.shape_cast %402 : vector<4x1x384xf32> to vector<4x384xf32>
    %404 = vector.extract_strided_slice %403 {offsets = [0, 0], sizes = [4, 128], strides = [1, 1]} : vector<4x384xf32> to vector<4x128xf32>
    %405 = vector.extract_strided_slice %400 {offsets = [0, 0], sizes = [4, 128], strides = [1, 1]} : vector<4x384xf32> to vector<4x128xf32>
    %406 = arith.addf %404, %405 : vector<4x128xf32>
    %407 = arith.negf %406 : vector<4x128xf32>
    %408 = math.exp %407 : vector<4x128xf32>
    %cst_118 = arith.constant 1.000000e+00 : f32
    %409 = vector.broadcast %cst_118 : f32 to vector<4x128xf32>
    %410 = arith.addf %409, %408 : vector<4x128xf32>
    %411 = arith.divf %409, %410 : vector<4x128xf32>
    %412 = vector.extract_strided_slice %403 {offsets = [0, 128], sizes = [4, 128], strides = [1, 1]} : vector<4x384xf32> to vector<4x128xf32>
    %413 = vector.extract_strided_slice %400 {offsets = [0, 128], sizes = [4, 128], strides = [1, 1]} : vector<4x384xf32> to vector<4x128xf32>
    %414 = arith.addf %412, %413 : vector<4x128xf32>
    %415 = arith.negf %414 : vector<4x128xf32>
    %416 = math.exp %415 : vector<4x128xf32>
    %cst_119 = arith.constant 1.000000e+00 : f32
    %417 = vector.broadcast %cst_119 : f32 to vector<4x128xf32>
    %418 = arith.addf %417, %416 : vector<4x128xf32>
    %419 = arith.divf %417, %418 : vector<4x128xf32>
    %420 = vector.extract_strided_slice %403 {offsets = [0, 256], sizes = [4, 128], strides = [1, 1]} : vector<4x384xf32> to vector<4x128xf32>
    %421 = vector.extract_strided_slice %400 {offsets = [0, 256], sizes = [4, 128], strides = [1, 1]} : vector<4x384xf32> to vector<4x128xf32>
    %422 = arith.addf %421, %57 : vector<4x128xf32>
    %423 = arith.mulf %411, %422 : vector<4x128xf32>
    %424 = arith.addf %420, %423 : vector<4x128xf32>
    %425 = math.tanh %424 : vector<4x128xf32>
    %cst_120 = arith.constant 1.000000e+00 : f32
    %426 = vector.broadcast %cst_120 : f32 to vector<4x128xf32>
    %427 = arith.subf %426, %419 : vector<4x128xf32>
    %428 = arith.mulf %427, %425 : vector<4x128xf32>
    %429 = arith.mulf %419, %383 : vector<4x128xf32>
    %430 = arith.addf %428, %429 : vector<4x128xf32>
    %431 = vector.extract_strided_slice %430 {offsets = [0, 0], sizes = [2, 128], strides = [1, 1]} : vector<4x128xf32> to vector<2x128xf32>
    %c0_121 = arith.constant 0 : index
    %432 = arith.index_cast %c7_i32_114 : i32 to index
    %c0_122 = arith.constant 0 : index
    %433 = vector.load %arg12[%c0_121, %432, %c0_122] : memref<2x8x128xf32, #tpu.memory_space<vmem>>, vector<2x1x128xf32>
    %434 = vector.shape_cast %433 : vector<2x1x128xf32> to vector<2x128xf32>
    %435 = vector.shape_cast %431 : vector<2x128xf32> to vector<2x1x128xf32>
    tpu.vector_store %arg12[%c0_121, %432, %c0_122], %435 {strides = array<i32>} : memref<2x8x128xf32, #tpu.memory_space<vmem>>, vector<2x1x128xf32>,
    %436 = vector.extract_strided_slice %430 {offsets = [2, 0], sizes = [2, 128], strides = [1, 1]} : vector<4x128xf32> to vector<2x128xf32>
    %c7_i32_123 = arith.constant 7 : i32
    %437 = arith.subi %c7_i32_123, %c7_i32_114 : i32
    %c0_124 = arith.constant 0 : index
    %438 = arith.index_cast %437 : i32 to index
    %c0_125 = arith.constant 0 : index
    %439 = vector.load %arg13[%c0_124, %438, %c0_125] : memref<2x8x128xf32, #tpu.memory_space<vmem>>, vector<2x1x128xf32>
    %440 = vector.shape_cast %439 : vector<2x1x128xf32> to vector<2x128xf32>
    %441 = vector.shape_cast %436 : vector<2x128xf32> to vector<2x1x128xf32>
    tpu.vector_store %arg13[%c0_124, %438, %c0_125], %441 {strides = array<i32>} : memref<2x8x128xf32, #tpu.memory_space<vmem>>, vector<2x1x128xf32>,
    %c8_i32 = arith.constant 8 : i32
    %c0_126 = arith.constant 0 : index
    %c0_127 = arith.constant 0 : index
    %c0_128 = arith.constant 0 : index
    %442 = vector.load %arg12[%c0_126, %c0_127, %c0_128] : memref<2x8x128xf32, #tpu.memory_space<vmem>>, vector<2x8x128xf32>
    %443 = vector.shape_cast %442 : vector<2x8x128xf32> to vector<16x128xf32>
    %444 = arith.truncf %443 : vector<16x128xf32> to vector<16x128xbf16>
    %c0_129 = arith.constant 0 : index
    %c0_130 = arith.constant 0 : index
    %c0_131 = arith.constant 0 : index
    %445 = vector.load %arg13[%c0_129, %c0_130, %c0_131] : memref<2x8x128xf32, #tpu.memory_space<vmem>>, vector<2x8x128xf32>
    %446 = vector.shape_cast %445 : vector<2x8x128xf32> to vector<16x128xf32>
    %447 = arith.truncf %446 : vector<16x128xf32> to vector<16x128xbf16>
    %c0_132 = arith.constant 0 : index
    %c0_133 = arith.constant 0 : index
    %448 = vector.load %arg7[%c0_132, %c0_133] : memref<128x128xbf16, #tpu.memory_space<vmem>>, vector<128x128xbf16>
    %cst_134 = arith.constant dense<0.000000e+00> : vector<16x128xf32>
    %449 = tpu.matmul %444, %448, %cst_134 {dimension_numbers = #tpu.dot_dimension_numbers<[1], [0], [0], [1], [0, 0, 1, 1], [], []>} : vector<16x128xbf16>, vector<128x128xbf16>, vector<16x128xf32> -> vector<16x128xf32>
    %c0_135 = arith.constant 0 : index
    %c0_136 = arith.constant 0 : index
    %450 = vector.load %arg8[%c0_135, %c0_136] : memref<128x128xbf16, #tpu.memory_space<vmem>>, vector<128x128xbf16>
    %cst_137 = arith.constant dense<0.000000e+00> : vector<16x128xf32>
    %451 = tpu.matmul %447, %450, %cst_137 {dimension_numbers = #tpu.dot_dimension_numbers<[1], [0], [0], [1], [0, 0, 1, 1], [], []>} : vector<16x128xbf16>, vector<128x128xbf16>, vector<16x128xf32> -> vector<16x128xf32>
    %452 = arith.addf %449, %451 : vector<16x128xf32>
    %c0_138 = arith.constant 0 : index
    %c0_139 = arith.constant 0 : index
    %453 = vector.load %arg9[%c0_138, %c0_139] : memref<1x128xf32, #tpu.memory_space<vmem>>, vector<1x128xf32>
    %454 = vector.broadcast %453 : vector<1x128xf32> to vector<16x128xf32>
    %455 = arith.addf %452, %454 : vector<16x128xf32>
    %456 = vector.shape_cast %455 : vector<16x128xf32> to vector<2x8x128xf32>
    %c0_140 = arith.constant 0 : index
    %c0_141 = arith.constant 0 : index
    %c0_142 = arith.constant 0 : index
    %457 = vector.load %arg10[%c0_140, %c0_141, %c0_142] : memref<2x8x128xf32, #tpu.memory_space<vmem>>, vector<2x8x128xf32>
    tpu.vector_store %arg10[%c0_140, %c0_141, %c0_142], %456 {strides = array<i32>} : memref<2x8x128xf32, #tpu.memory_space<vmem>>, vector<2x8x128xf32>,
    return
  }
}

</mosaic_0001>

<bundles_post_ra>
// kernel: tpu_custom_call.1
= control target key start
LH: loop header
LB: loop body
LE: loop exit
PB: predicated region body
PF: predicated region fallthrough
CT: control target
= control target key end

     0   :  { %15 = vsyncpa [#allocation6], 0  ;;  %s7529_s0 = inlined_call_operand.hbm [shape: f32[2,8,16], index: 0, kind: input, shape index: {}]   ;;  %s7530_s1 = inlined_call_operand.hbm [shape: bf16[16,384], index: 1, kind: input, shape index: {}]   ;;  %s7531_s2 = inlined_call_operand.hbm [shape: bf16[16,384], index: 2, kind: input, shape index: {}]   ;;  %s7532_s3 = inlined_call_operand.hbm [shape: f32[256,384], index: 3, kind: input, shape index: {}]   ;;  %s7533_s4 = inlined_call_operand.vmem [shape: f32[1,384], index: 4, kind: input, shape index: {}]   ;;  %s7534_s5 = inlined_call_operand.hbm [shape: f32[1,384], index: 5, kind: input, shape index: {}]   ;;  %s7535_s6 = inlined_call_operand.vmem [shape: f32[4,128], index: 6, kind: input, shape index: {}]   ;;  %s7536_s7 = inlined_call_operand.hbm [shape: bf16[128,128], index: 7, kind: input, shape index: {}]   ;;  %s7537_s8 = inlined_call_operand.hbm [shape: bf16[128,128], index: 8, kind: input, shape index: {}]   ;;  %s7538_s9 = inlined_call_operand.vmem [shape: f32[1,128], index: 9, kind: input, shape index: {}]   ;;  %s7539_s10 = inlined_call_operand.hbm [shape: f32[2,8,128], index: 10, kind: output, shape index: {}]  }
   0x1   :  { %16 = vsyncpa [#allocation9], 0 }
   0x2   :  { %17 = vsyncpa [#allocation12], 0 }
   0x3   :  { %18 = vsyncpa [#allocation15], 0 }
   0x4   :  { %19 = vsyncpa [#allocation7], 0  ;;  %s5397_s13 = smov [#allocation8]  }
   0x5   :  { %s37_s14 = sshll.u32 %s5397_s13, 4  ;;  %s38_s14 = int_to_ptr.vmem [resolvable:$true] %s37_s14 }
   0x6   :  { %s5235_s15 = scalar_lea.vmem %s38_s14, 384  ;;  %p5240_p1 = scmp.lt.s32.totalorder %s38_s14, %s38_s14 }
   0x7   :  { %p5236_p0 = scmp.ne.s32.totalorder %s38_s14, %s5235_s15  ;;  %p5241_p2 = scmp.lt.s32.totalorder %s5235_s15, %s5235_s15 }
   0x9   :  { %p5242_p3 = por %p5241_p2, %p5240_p1 }
   0xb   :  { %p5243_p4 = pnand %p5242_p3, %p5236_p0 }
   0xd   :  { %5246 = shalt.err (!%p5243_p4)
}
   0xe   :  { %s5398_s16 = smov 192   ;;  %s5399_s17 = smov 12  }
   0xf   :  { %43 = dma.hbm_to_vmem [thread:$0]  %s7530_s1, 384, %s38_s14, [#allocation9], %s5398_s16, %s5398_s16, %s5399_s17  }
  0x10   :  { %s5400_s20 = smov [#allocation11]  }
  0x11   :  { %s61_s21 = sshll.u32 %s5400_s20, 4  ;;  %s62_s21 = int_to_ptr.vmem [resolvable:$true] %s61_s21 }
  0x12   :  { %s5255_s22 = scalar_lea.vmem %s62_s21, 12288  ;;  %p5260_p6 = scmp.lt.s32.totalorder %s62_s21, %s62_s21 }
  0x13   :  { %p5256_p5 = scmp.ne.s32.totalorder %s62_s21, %s5255_s22  ;;  %p5261_p7 = scmp.lt.s32.totalorder %s5255_s22, %s5255_s22 }
  0x15   :  { %p5262_p8 = por %p5261_p7, %p5260_p6 }
  0x17   :  { %p5263_p9 = pnand %p5262_p8, %p5256_p5 }
  0x19   :  { %5266 = shalt.err (!%p5263_p9)
}
  0x1a   :  { %s5401_s23 = smov 384   ;;  %s5402_s24 = smov 24  }
  0x1b   :  { %67 = dma.hbm_to_vmem [thread:$0]  %s7532_s3, 12288, %s62_s21, [#allocation12], %s5401_s23, %s5401_s23, %s5402_s24  }
  0x1c   :  { %s5403_s27 = smov [#allocation14]  }
  0x1d   :  { %s87_s28 = sshll.u32 %s5403_s27, 4  ;;  %s88_s28 = int_to_ptr.vmem [resolvable:$true] %s87_s28 }
  0x1e   :  { %s5275_s1 = scalar_lea.vmem %s88_s28, 1024  ;;  %p5280_p11 = scmp.lt.s32.totalorder %s88_s28, %s88_s28 }
  0x1f   :  { %p5276_p10 = scmp.ne.s32.totalorder %s88_s28, %s5275_s1  ;;  %p5281_p12 = scmp.lt.s32.totalorder %s5275_s1, %s5275_s1 }
  0x21   :  { %p5282_p13 = por %p5281_p12, %p5280_p11 }
  0x23   :  { %p5283_p0 = pnand %p5282_p13, %p5276_p10 }
  0x25   :  { %5286 = shalt.err (!%p5283_p0)
}
  0x26   :  { %s5404_s29 = smov 64   ;;  %s5405_s30 = smov 4  }
  0x27   :  { %93 = dma.hbm_to_vmem [thread:$0]  %s7536_s7, 1024, %s88_s28, [#allocation15], %s5404_s29, %s5404_s29, %s5405_s30  }
  0x28   :  { %s5406_s3 = smov [#allocation5]  }
  0x29   :  { %s25_s13 = sshll.u32 %s5406_s3, 4  ;;  %s26_s13 = int_to_ptr.vmem [resolvable:$true] %s25_s13 }
  0x2a   :  { %s5295_s14 = scalar_lea.vmem %s26_s13, 256  ;;  %p5300_p2 = scmp.lt.s32.totalorder %s26_s13, %s26_s13 }
  0x2b   :  { %p5296_p1 = scmp.ne.s32.totalorder %s26_s13, %s5295_s14  ;;  %p5301_p3 = scmp.lt.s32.totalorder %s5295_s14, %s5295_s14 }
  0x2d   :  { %p5302_p4 = por %p5301_p3, %p5300_p2 }
  0x2f   :  { %p5303_p5 = pnand %p5302_p4, %p5296_p1 }
  0x31   :  { %5306 = shalt.err (!%p5303_p5)
}
  0x32   :  { %s5407_s15 = smov 128   ;;  %s5408_s18 = smov 8  }
  0x33   :  { %31 = dma.hbm_to_vmem [thread:$0]  %s7529_s0, 256, %s26_s13, [#allocation6], %s5407_s15, %s5407_s15, %s5408_s18  }
  0x34   :  { %s5409_s7 = smov [#allocation10]   ;;  %s5410_s22 = smov [#allocation13]  }
  0x35   :  { %s49_s21 = sshll.u32 %s5409_s7, 4  ;;  %s76_s23 = sshll.u32 %s5410_s22, 4  ;;  %s50_s21 = int_to_ptr.vmem [resolvable:$true] %s49_s21  ;;  %s77_s23 = int_to_ptr.vmem [resolvable:$true] %s76_s23 }
  0x36   :  { %s5315_s24 = scalar_lea.vmem %s50_s21, 384  ;;  %p5320_p7 = scmp.lt.s32.totalorder %s50_s21, %s50_s21 }
  0x37   :  { %p5316_p6 = scmp.ne.s32.totalorder %s50_s21, %s5315_s24  ;;  %p5321_p8 = scmp.lt.s32.totalorder %s5315_s24, %s5315_s24 }
  0x39   :  { %p5322_p9 = por %p5321_p8, %p5320_p7 }
  0x3b   :  { %p5323_p10 = pnand %p5322_p9, %p5316_p6 }
  0x3d   :  { %5326 = shalt.err (!%p5323_p10)
}
  0x3e   :  { %55 = dma.hbm_to_vmem [thread:$0]  %s7531_s2, 384, %s50_s21, [#allocation9], %s5398_s16, %s5398_s16, %s5399_s17  }
  0x3f   :  { %s5335_s0 = scalar_lea.vmem %s77_s23, 48  ;;  %s5339_s27 = scalar_lea.vmem %s77_s23, 64 }
  0x40   :  { %p5336_p11 = scmp.ne.s32.totalorder %s77_s23, %s5335_s0  ;;  %p5340_p12 = scmp.lt.s32.totalorder %s77_s23, %s77_s23 }
  0x41   :  { %p5341_p13 = scmp.lt.s32.totalorder %s5339_s27, %s5335_s0 }
  0x43   :  { %p5342_p0 = por %p5341_p13, %p5340_p12 }
  0x45   :  { %p5343_p1 = pnand %p5342_p0, %p5336_p11 }
  0x47   :  { %5346 = shalt.err (!%p5343_p1)
}
  0x48   :  { %79 = dma.hbm_to_vmem [thread:$0]  %s7534_s5, 48, %s77_s23, [#allocation12]  }
  0x49   :  { %s5411_s11 = smov [#allocation16]  }
  0x4a   :  { %s99_s12 = sshll.u32 %s5411_s11, 4  ;;  %s100_s12 = int_to_ptr.vmem [resolvable:$true] %s99_s12 }
  0x4b   :  { %s5355_s3 = scalar_lea.vmem %s100_s12, 1024  ;;  %p5360_p3 = scmp.lt.s32.totalorder %s100_s12, %s100_s12 }
  0x4c   :  { %p5356_p2 = scmp.ne.s32.totalorder %s100_s12, %s5355_s3  ;;  %p5361_p4 = scmp.lt.s32.totalorder %s5355_s3, %s5355_s3 }
  0x4e   :  { %p5362_p5 = por %p5361_p4, %p5360_p3 }
  0x50   :  { %p5363_p6 = pnand %p5362_p5, %p5356_p2 }
  0x52   :  { %5366 = shalt.err (!%p5363_p6)
}
  0x53   :  { %105 = dma.hbm_to_vmem [thread:$0]  %s7537_s8, 1024, %s100_s12, [#allocation15], %s5404_s29, %s5404_s29, %s5405_s30  }
  0x54   :  { %5387 = dma.done.wait [#allocation6], 256  }
  0x55   :  { %5388 = vsyncadd [#allocation6], 4294967040 }
  0x56   :  { %5389 = dma.done.wait [#allocation9], 768  }
  0x57   :  { %5390 = vsyncadd [#allocation9], 4294966528 }
  0x58   :  { %5391 = dma.done.wait [#allocation12], 12336  }
  0x59   :  { %5392 = vsyncadd [#allocation12], 4294954960 }
  0x5a   :  { %5393 = dma.done.wait [#allocation15], 2048  }
  0x5b   :  { %5394 = vsyncadd [#allocation15], 4294965248  ;;  %v7540_v0 = vmov 0.0   ;;  %v5413_v1 = vmov 0   ;;  %v7542_v2 = vlaneseq  ;;  %vm5414_vm0 = vmmov 0   ;;  %v130_v7 = vld [vmem:[#allocation5] sm:$0xff] }
  0x5c   :  { %4617 = vmatprep.subr.bf16.mxu1 %v7540_v0  ;;  %206 = vmatprep.mubr.bf16.mxu0 %v5413_v1  ;;  %v4689_v4 = vld [vmem:[#allocation8 + $0x4] ss:$12 sps:$4 sm:$0xff]   ;;  %v4691_v5 = vld [vmem:[#allocation8] ss:$12 sps:$4 sm:$0xff]   ;;  %v4692_v6 = vld [vmem:[#allocation8 + $0x8] ss:$12 sps:$4 sm:$0xff]  }
  0x5d   :  { %4619 = vmatprep.mubr.msk.bf16.mxu1 %vm5414_vm0, %v7540_v0  ;;  %v5512_v3 = vshrl.u32 %v7542_v2, 7  ;;  %188 = vmatprep.subr.bf16.mxu0 %v4689_v4  ;;  %v131_v8 = vld [vmem:[#allocation5 + $0x8] sm:$0xff]  ;;  %vm170_vm2 = vcmask 130048   ;;  %v4696_v12 = vld [vmem:[#allocation10 + $0x8] ss:$12 sps:$4 sm:$0xff]   ;;  %v5539_v20 = vld [vmem:[#allocation11 + $0x140] sm:$0xff] }
  0x5e   :  { %189 = vmatpush1.bf16.msra.mxu0 %v4691_v5  ;;  %v132_v9 = vpack.c.bf16 %v131_v8, %v130_v7  ;;  %v4693_v10 = vld [vmem:[#allocation10] ss:$12 sps:$4 sm:$0xff]   ;;  %4618 = vmatpush3.bf16.msra.mxu1 %v4692_v6  ;;  %v4695_v11 = vld [vmem:[#allocation10 + $0x4] ss:$12 sps:$4 sm:$0xff]   ;;  %v5548_v23 = vld [vmem:[#allocation11 + $0x120] sm:$0xff]  ;;  %s5416_s20 = smov [#allocation17]  }
  0x5f   :  { %7856 = vst [vmem:[#allocation23_spill] sm:$0xff] %v5512_v3  ;;  %vm692_vm1 = vcmp.lt.s32.totalorder %v5512_v3, 2  ;;  %4623 = vmatprep.subr.bf16.mxu1 %v7540_v0  ;;  %309 = vmatprep.subr.bf16.mxu0 %v4695_v11  ;;  %v5520_v14 = vld [vmem:[#allocation11 + $0x170] sm:$0xff]  ;;  %v5529_v16 = vld [vmem:[#allocation11 + $0x168] sm:$0xff]  ;;  %v5532_v18 = vld [vmem:[#allocation11 + $0x158] sm:$0xff]  ;;  %s4193_s7 = sshll.u32 %s5416_s20, 4  ;;  %s4194_s7 = int_to_ptr.vmem [resolvable:$true] %s4193_s7 }
  0x60   :  { %v5517_v13 = vsel %vm692_vm1, 1.0, %v7540_v0  ;;  %7858 = vst [vmem:[#allocation25_spill] sm:$0xff] %v5520_v14  ;;  %v5535_v19 = vld [vmem:[#allocation11 + $0x150] sm:$0xff]  ;;  %v5542_v21 = vld [vmem:[#allocation11 + $0x138] sm:$0xff]  ;;  %v5545_v22 = vld [vmem:[#allocation11 + $0x128] sm:$0xff]  ;;  %s5367_s21 = scalar_lea.vmem %s4194_s7, 256  ;;  %p5372_p8 = scmp.lt.s32.totalorder %s4194_s7, %s4194_s7 }
  0x61   :  { %7857 = vst [vmem:[#allocation24_spill] sm:$0xff] %v5517_v13  ;;  %4226 = vmatmul.mubr.msk.bf16.vlgmr.msra.gmra.mxu0 %vm170_vm2, %v132_v9  ;;  %4620 = vmatmul.mubr.msk.bf16.vlgmr.msra.gmra.mxu1 %vm170_vm2, %v132_v9  ;;  %v5524_v15 = vsub.f32 1.0, %v5517_v13  ;;  %v5551_v24 = vld [vmem:[#allocation11 + $0x110] sm:$0xff]  ;;  %v5554_v25 = vld [vmem:[#allocation11 + $0x108] sm:$0xff]  ;;  %v5557_v26 = vld [vmem:[#allocation11 + $0xf8] sm:$0xff]  ;;  %p5368_p7 = scmp.ne.s32.totalorder %s4194_s7, %s5367_s21  ;;  %p5373_p9 = scmp.lt.s32.totalorder %s5367_s21, %s5367_s21 }
  0x62   :  { %310 = vmatpush1.bf16.msra.mxu0 %v4693_v10  ;;  %327 = vmatprep.mubr.bf16.mxu0 %v5413_v1  ;;  %v5560_v27 = vld [vmem:[#allocation11 + $0xf0] sm:$0xff]  ;;  %v5563_v28 = vld [vmem:[#allocation11 + $0xe0] sm:$0xff]  ;;  %v5566_v29 = vld [vmem:[#allocation11 + $0xd8] sm:$0xff] }
  0x63   :  { %4624 = vmatpush3.bf16.msra.mxu1 %v4696_v12  ;;  %7859 = vst [vmem:[#allocation26_spill] sm:$0xff] %v5524_v15  ;;  %698 = vmatprep.subr.mxu0 %v5520_v14  ;;  %v697_v17 = vmul.f32 0.0, %v5524_v15  ;;  %v5569_v30 = vld [vmem:[#allocation11 + $0xc8] sm:$0xff]  ;;  %v5571_v31 = vld [vmem:[#allocation11 + $0x2f8] sm:$0xff]  ;;  %v5574_v32 = vld [vmem:[#allocation11 + $0xc0] sm:$0xff]  ;;  %p5374_p10 = por %p5373_p9, %p5372_p8 }
  0x64   :  { %4625 = vmatprep.mubr.msk.bf16.mxu1 %vm5414_vm0, %v7540_v0  ;;  %4319 = vmatprep.subr.mxu1 %v5571_v31  ;;  %v5577_v33 = vld [vmem:[#allocation11 + $0x178] sm:$0xff]  ;;  %v5579_v34 = vld [vmem:[#allocation11 + $0x2e0] sm:$0xff]  ;;  %v5582_v35 = vld [vmem:[#allocation11 + $0xb0] sm:$0xff] }
  0x65   :  { %v5585_v36 = vld [vmem:[#allocation11 + $0x160] sm:$0xff]  ;;  %v5588_v37 = vld [vmem:[#allocation11 + $0xa8] sm:$0xff]  ;;  %v5596_v40 = vld [vmem:[#allocation11 + $0x98] sm:$0xff]  ;;  %p5375_p11 = pnand %p5374_p10, %p5368_p7 }
  0x66   :  { %v5591_v38 = vld [vmem:[#allocation11 + $0x2c8] sm:$0xff]  ;;  %v5599_v41 = vld [vmem:[#allocation11 + $0x2b0] sm:$0xff]  ;;  %v5608_v44 = vld [vmem:[#allocation11 + $0x80] sm:$0xff] }
  0x67   :  { %v5593_v39 = vld [vmem:[#allocation11 + $0x148] sm:$0xff]  ;;  %v5602_v42 = vld [vmem:[#allocation11 + $0x90] sm:$0xff]  ;;  %v5611_v45 = vld [vmem:[#allocation11 + $0x298] sm:$0xff] }
  0x68   :  { %v5605_v43 = vld [vmem:[#allocation11 + $0x130] sm:$0xff]  ;;  %v5614_v46 = vld [vmem:[#allocation11 + $0x78] sm:$0xff]  ;;  %v5620_v48 = vld [vmem:[#allocation11 + $0x68] sm:$0xff] }
  0x69   :  { %4231 = vmatmul.mubr.msk.bf16.vlgmr.msra.gmra.mxu0 %vm170_vm2, %v132_v9  ;;  %4626 = vmatmul.mubr.msk.bf16.vlgmr.msra.gmra.mxu1 %vm170_vm2, %v132_v9  ;;  %v5617_v47 = vld [vmem:[#allocation11 + $0x118] sm:$0xff]  ;;  %v5623_v49 = vld [vmem:[#allocation11 + $0x280] sm:$0xff]  ;;  %v5628_v51 = vld [vmem:[#allocation11 + $0x50] sm:$0xff] }
  0x6a   :  { %699 = vmatpush1.msra.mxu0 %v5529_v16  ;;  %762 = vmatprep.mubr.f32.mxu0 %v697_v17  ;;  %v5626_v50 = vld [vmem:[#allocation11 + $0x60] sm:$0xff]  ;;  %v5634_v53 = vld [vmem:[#allocation11 + $0x48] sm:$0xff]  ;;  %v5636_v54 = vld [vmem:[#allocation11 + $0x38] sm:$0xff] }
  0x6b   :  { %700 = vmatprep.subr.mxu0 %v5532_v18  ;;  %833 = vmatprep.mubr.f32.mxu1 %v697_v17  ;;  %v5631_v52 = vld [vmem:[#allocation11 + $0x100] sm:$0xff]  ;;  %v5639_v55 = vld [vmem:[#allocation11 + $0x268] sm:$0xff]  ;;  %v5642_v56 = vld [vmem:[#allocation11 + $0x30] sm:$0xff] }
  0x6c   :  { %701 = vmatpush1.msra.mxu0 %v5535_v19  ;;  %4320 = vmatpush3.msra.mxu1 %v5577_v33  ;;  %v5645_v57 = vld [vmem:[#allocation11 + $0xe8] sm:$0xff]  ;;  %v5647_v58 = vld [vmem:[#allocation11 + $0x250] sm:$0xff]  ;;  %v5650_v59 = vld [vmem:[#allocation11 + $0x20] sm:$0xff] }
  0x6d   :  { %702 = vmatprep.subr.mxu0 %v5539_v20  ;;  %4321 = vmatprep.subr.mxu1 %v5579_v34  ;;  %v5653_v60 = vld [vmem:[#allocation11 + $0xd0] sm:$0xff]  ;;  %v5655_v61 = vld [vmem:[#allocation11 + $0x238] sm:$0xff]  ;;  %v5664_v1 = vld [vmem:[#allocation11 + $0x8] sm:$0xff] }
  0x6e   :  { %703 = vmatpush1.msra.mxu0 %v5542_v21  ;;  %4322 = vmatpush3.msra.mxu1 %v5585_v36  ;;  %7860 = vst [vmem:[#allocation27_spill] sm:$0xff] %v5655_v61  ;;  %v5658_v62 = vld [vmem:[#allocation11 + $0x18] sm:$0xff]  ;;  %v5667_v4 = vld [vmem:[#allocation11 + $0x220] sm:$0xff]  ;;  %v5676_v7 = vld [vmem:[#allocation11 + $0x2f0] sm:$0xff] }
  0x6f   :  { %704 = vmatprep.subr.mxu0 %v5545_v22  ;;  %4323 = vmatprep.subr.mxu1 %v5591_v38  ;;  %v5661_v63 = vld [vmem:[#allocation11 + $0xb8] sm:$0xff]  ;;  %7862 = vst [vmem:[#allocation29_spill] sm:$0xff] %v5667_v4  ;;  %v5670_v5 = vld [vmem:[#allocation11] sm:$0xff]  ;;  %v5679_v8 = vld [vmem:[#allocation11 + $0x208] sm:$0xff] }
  0x70   :  { %705 = vmatpush1.msra.mxu0 %v5548_v23  ;;  %4324 = vmatpush3.msra.mxu1 %v5593_v39  ;;  %7861 = vst [vmem:[#allocation28_spill] sm:$0xff] %v5661_v63  ;;  %v5673_v6 = vld [vmem:[#allocation11 + $0xa0] sm:$0xff]  ;;  %7864 = vst [vmem:[#allocation31_spill] sm:$0xff] %v5679_v8  ;;  %v5682_v9 = vld [vmem:[#allocation11 + $0x2e8] sm:$0xff] }
  0x71   :  { %706 = vmatprep.subr.mxu0 %v5551_v24  ;;  %4325 = vmatprep.subr.mxu1 %v5599_v41  ;;  %7863 = vst [vmem:[#allocation30_spill] sm:$0xff] %v5673_v6  ;;  %v5685_v10 = vld [vmem:[#allocation11 + $0x88] sm:$0xff]  ;;  %v5688_v11 = vld [vmem:[#allocation11 + $0x2d8] sm:$0xff]  ;;  %v5691_v12 = vld [vmem:[#allocation11 + $0x1f0] sm:$0xff] }
  0x72   :  { %707 = vmatpush1.msra.mxu0 %v5554_v25  ;;  %4326 = vmatpush3.msra.mxu1 %v5605_v43  ;;  %7865 = vst [vmem:[#allocation32_spill] sm:$0xff] %v5685_v10  ;;  %7866 = vst [vmem:[#allocation33_spill] sm:$0xff] %v5691_v12  ;;  %v5694_v17 = vld [vmem:[#allocation11 + $0x2d0] sm:$0xff]  ;;  %v5700_v2 = vld [vmem:[#allocation11 + $0x2c0] sm:$0xff] }
  0x73   :  { %708 = vmatprep.subr.mxu0 %v5557_v26  ;;  %4327 = vmatprep.subr.mxu1 %v5611_v45  ;;  %v5697_v0 = vld [vmem:[#allocation11 + $0x70] sm:$0xff]  ;;  %7868 = vst [vmem:[#allocation35_spill] sm:$0xff] %v5700_v2  ;;  %v5703_v15 = vld [vmem:[#allocation11 + $0x1d8] sm:$0xff] }
  0x74   :  { %709 = vmatpush1.msra.mxu0 %v5560_v27  ;;  %4328 = vmatpush3.msra.mxu1 %v5617_v47  ;;  %7867 = vst [vmem:[#allocation34_spill] sm:$0xff] %v5697_v0  ;;  %7869 = vst [vmem:[#allocation36_spill] sm:$0xff] %v5703_v15  ;;  %v5710_v3 = vld [vmem:[#allocation11 + $0x2b8] sm:$0xff] }
  0x75   :  { %710 = vmatprep.subr.mxu0 %v5563_v28  ;;  %4329 = vmatprep.subr.mxu1 %v5623_v49  ;;  %7870 = vst [vmem:[#allocation37_spill] sm:$0xff] %v5710_v3 }
  0x76   :  { %711 = vmatpush1.msra.mxu0 %v5566_v29  ;;  %4330 = vmatpush3.msra.mxu1 %v5631_v52 }
  0x77   :  { %712 = vmatprep.subr.mxu0 %v5569_v30  ;;  %4331 = vmatprep.subr.mxu1 %v5639_v55 }
  0x78   :  { %713 = vmatpush1.msra.mxu0 %v5574_v32  ;;  %4332 = vmatpush3.msra.mxu1 %v5645_v57 }
  0x79   :  { %714 = vmatprep.subr.mxu0 %v5582_v35  ;;  %4333 = vmatprep.subr.mxu1 %v5647_v58 }
  0x7a   :  { %715 = vmatpush1.msra.mxu0 %v5588_v37  ;;  %4334 = vmatpush3.msra.mxu1 %v5653_v60 }
  0x7b   :  { %716 = vmatprep.subr.mxu0 %v5596_v40  ;;  %4335 = vmatprep.subr.mxu1 %v5655_v61  ;;  %v5731_v61 = vld [vmem:[#allocation11 + $0x1a8] sm:$0xff] }
  0x7c   :  { %717 = vmatpush1.msra.mxu0 %v5602_v42  ;;  %4336 = vmatpush3.msra.mxu1 %v5661_v63  ;;  %v5719_v63 = vld [vmem:[#allocation11 + $0x1c0] sm:$0xff]  ;;  %7877 = vst [vmem:[#allocation44_spill] sm:$0xff] %v5731_v61 }
  0x7d   :  { %718 = vmatprep.subr.mxu0 %v5608_v44  ;;  %4337 = vmatprep.subr.mxu1 %v5667_v4  ;;  %v5713_v4 = vld [vmem:[#allocation11 + $0x58] sm:$0xff]  ;;  %7873 = vst [vmem:[#allocation40_spill] sm:$0xff] %v5719_v63 }
  0x7e   :  { %719 = vmatpush1.msra.mxu0 %v5614_v46  ;;  %4338 = vmatpush3.msra.mxu1 %v5673_v6  ;;  %7871 = vst [vmem:[#allocation38_spill] sm:$0xff] %v5713_v4  ;;  %v5716_v6 = vld [vmem:[#allocation11 + $0x2a8] sm:$0xff] }
  0x7f   :  { %720 = vmatprep.subr.mxu0 %v5620_v48  ;;  %4339 = vmatprep.subr.mxu1 %v5679_v8  ;;  %7872 = vst [vmem:[#allocation39_spill] sm:$0xff] %v5716_v6  ;;  %v5722_v8 = vld [vmem:[#allocation11 + $0x2a0] sm:$0xff] }
  0x80   :  { %721 = vmatpush1.msra.mxu0 %v5626_v50  ;;  %4340 = vmatpush3.msra.mxu1 %v5685_v10  ;;  %7874 = vst [vmem:[#allocation41_spill] sm:$0xff] %v5722_v8  ;;  %v5725_v10 = vld [vmem:[#allocation11 + $0x40] sm:$0xff] }
  0x81   :  { %722 = vmatprep.subr.mxu0 %v5628_v51  ;;  %4341 = vmatprep.subr.mxu1 %v5691_v12  ;;  %7875 = vst [vmem:[#allocation42_spill] sm:$0xff] %v5725_v10  ;;  %v5728_v12 = vld [vmem:[#allocation11 + $0x290] sm:$0xff] }
  0x82   :  { %723 = vmatpush1.msra.mxu0 %v5634_v53  ;;  %4342 = vmatpush3.msra.mxu1 %v5697_v0  ;;  %7876 = vst [vmem:[#allocation43_spill] sm:$0xff] %v5728_v12  ;;  %v5734_v0 = vld [vmem:[#allocation11 + $0x288] sm:$0xff] }
  0x83   :  { %724 = vmatprep.subr.mxu0 %v5636_v54  ;;  %4343 = vmatprep.subr.mxu1 %v5703_v15  ;;  %v5740_v15 = vld [vmem:[#allocation11 + $0x278] sm:$0xff] }
  0x84   :  { %725 = vmatpush1.msra.mxu0 %v5642_v56  ;;  %4344 = vmatpush3.msra.mxu1 %v5713_v4  ;;  %v5746_v4 = vld [vmem:[#allocation11 + $0x270] sm:$0xff] }
  0x85   :  { %726 = vmatprep.subr.mxu0 %v5650_v59  ;;  %4345 = vmatprep.subr.mxu1 %v5719_v63  ;;  %v5752_v63 = vld [vmem:[#allocation11 + $0x260] sm:$0xff] }
  0x86   :  { %727 = vmatpush1.msra.mxu0 %v5658_v62  ;;  %4346 = vmatpush3.msra.mxu1 %v5725_v10  ;;  %v696_v10 = vmul.f32 0.0, %v5517_v13  ;;  %v5772_v13 = vld [vmem:[#allocation11 + $0x228] sm:$0xff] }
  0x87   :  { %728 = vmatprep.subr.mxu0 %v5664_v1  ;;  %4347 = vmatprep.subr.mxu1 %v5731_v61  ;;  %v5765_v61 = vld [vmem:[#allocation11 + $0x240] sm:$0xff] }
  0x88   :  { %729 = vmatpush1.msra.mxu0 %v5670_v5 }
  0x89   :  { %730 = vmatprep.subr.mxu0 %v5676_v7 }
  0x8a   :  { %731 = vmatpush2.msra.mxu0 %v5682_v9 }
  0x8b   :  { %732 = vmatprep.subr.mxu0 %v5688_v11 }
  0x8c   :  { %733 = vmatpush2.msra.mxu0 %v5694_v17 }
  0x8d   :  { %734 = vmatprep.subr.mxu0 %v5700_v2  ;;  %v5737_v2 = vld [vmem:[#allocation11 + $0x28] sm:$0xff] }
  0x8e   :  { %735 = vmatpush2.msra.mxu0 %v5710_v3  ;;  %7878 = vst [vmem:[#allocation45_spill] sm:$0xff] %v5737_v2  ;;  %v5743_v3 = vld [vmem:[#allocation11 + $0x190] sm:$0xff]  ;;  %4348 = vmatpush3.msra.mxu1 %v5737_v2 }
  0x8f   :  { %736 = vmatprep.subr.mxu0 %v5716_v6  ;;  %7879 = vst [vmem:[#allocation46_spill] sm:$0xff] %v5743_v3  ;;  %v5749_v6 = vld [vmem:[#allocation11 + $0x10] sm:$0xff]  ;;  %4349 = vmatprep.subr.mxu1 %v5743_v3 }
  0x90   :  { %737 = vmatpush2.msra.mxu0 %v5722_v8  ;;  %7880 = vst [vmem:[#allocation47_spill] sm:$0xff] %v5749_v6  ;;  %v5756_v8 = vld [vmem:[#allocation11 + $0x258] sm:$0xff]  ;;  %4350 = vmatpush3.msra.mxu1 %v5749_v6  ;;  %v5768_v2 = vld [vmem:[#allocation11 + $0x230] sm:$0xff] }
  0x91   :  { %738 = vmatprep.subr.mxu0 %v5728_v12  ;;  %v5761_v12 = vld [vmem:[#allocation11 + $0x248] sm:$0xff]  ;;  %834 = vmatmul.mubr.f32.vlgmr.msra.gmra.mxu1 %v696_v10  ;;  %v5776_v6 = vld [vmem:[#allocation11 + $0x218] sm:$0xff]  ;;  %v5780_v3 = vld [vmem:[#allocation11 + $0x210] sm:$0xff] }
  0x92   :  { %739 = vmatpush2.msra.mxu0 %v5734_v0  ;;  %1150 = vmatprep.subr.mxu1 %v5520_v14  ;;  %v5784_v14 = vld [vmem:[#allocation11 + $0x200] sm:$0xff] }
  0x93   :  { %740 = vmatprep.subr.mxu0 %v5740_v15  ;;  %1151 = vmatpush1.msra.mxu1 %v5529_v16  ;;  %v5788_v16 = vld [vmem:[#allocation11 + $0x1f8] sm:$0xff] }
  0x94   :  { %741 = vmatpush2.msra.mxu0 %v5746_v4  ;;  %1152 = vmatprep.subr.mxu1 %v5532_v18  ;;  %v5792_v18 = vld [vmem:[#allocation11 + $0x1e8] sm:$0xff] }
  0x95   :  { %742 = vmatprep.subr.mxu0 %v5752_v63  ;;  %1153 = vmatpush1.msra.mxu1 %v5535_v19  ;;  %v5796_v19 = vld [vmem:[#allocation11 + $0x1e0] sm:$0xff] }
  0x96   :  { %743 = vmatpush2.msra.mxu0 %v5756_v8  ;;  %1154 = vmatprep.subr.mxu1 %v5539_v20  ;;  %v5800_v20 = vld [vmem:[#allocation11 + $0x1d0] sm:$0xff] }
  0x97   :  { %744 = vmatprep.subr.mxu0 %v5761_v12  ;;  %1155 = vmatpush1.msra.mxu1 %v5542_v21  ;;  %v5804_v21 = vld [vmem:[#allocation11 + $0x1c8] sm:$0xff] }
  0x98   :  { %745 = vmatpush2.msra.mxu0 %v5765_v61  ;;  %1156 = vmatprep.subr.mxu1 %v5545_v22  ;;  %v5808_v22 = vld [vmem:[#allocation11 + $0x1b8] sm:$0xff] }
  0x99   :  { %746 = vmatprep.subr.mxu0 %v5768_v2  ;;  %1157 = vmatpush1.msra.mxu1 %v5548_v23  ;;  %v5812_v23 = vld [vmem:[#allocation11 + $0x1b0] sm:$0xff] }
  0x9a   :  { %747 = vmatpush2.msra.mxu0 %v5772_v13  ;;  %1158 = vmatprep.subr.mxu1 %v5551_v24  ;;  %v5816_v24 = vld [vmem:[#allocation11 + $0x1a0] sm:$0xff] }
  0x9b   :  { %748 = vmatprep.subr.mxu0 %v5776_v6  ;;  %1159 = vmatpush1.msra.mxu1 %v5554_v25  ;;  %v5820_v25 = vld [vmem:[#allocation11 + $0x198] sm:$0xff] }
  0x9c   :  { %749 = vmatpush2.msra.mxu0 %v5780_v3  ;;  %1160 = vmatprep.subr.mxu1 %v5557_v26  ;;  %7881 = vst [vmem:[#allocation48_spill] sm:$0xff] %v5820_v25  ;;  %v5824_v26 = vld [vmem:[#allocation11 + $0x188] sm:$0xff] }
  0x9d   :  { %750 = vmatprep.subr.mxu0 %v5784_v14  ;;  %1161 = vmatpush1.msra.mxu1 %v5560_v27  ;;  %7882 = vst [vmem:[#allocation49_spill] sm:$0xff] %v5824_v26  ;;  %v5828_v27 = vld [vmem:[#allocation11 + $0x180] sm:$0xff] }
  0x9e   :  { %751 = vmatpush2.msra.mxu0 %v5788_v16  ;;  %1162 = vmatprep.subr.mxu1 %v5563_v28  ;;  %7883 = vst [vmem:[#allocation50_spill] sm:$0xff] %v5828_v27  ;;  %v7884_v28 = vld [vmem:[#allocation27_spill] sm:$0xff] }
  0x9f   :  { %752 = vmatprep.subr.mxu0 %v5792_v18  ;;  %1163 = vmatpush1.msra.mxu1 %v5566_v29  ;;  %v7885_v29 = vld [vmem:[#allocation35_spill] sm:$0xff] }
  0xa0   :  { %753 = vmatpush2.msra.mxu0 %v5796_v19  ;;  %1164 = vmatprep.subr.mxu1 %v5569_v30  ;;  %v7886_v30 = vld [vmem:[#allocation28_spill] sm:$0xff] }
  0xa1   :  { %754 = vmatprep.subr.mxu0 %v5800_v20  ;;  %1165 = vmatpush1.msra.mxu1 %v5574_v32  ;;  %v7887_v32 = vld [vmem:[#allocation37_spill] sm:$0xff] }
  0xa2   :  { %755 = vmatpush2.msra.mxu0 %v5804_v21  ;;  %1166 = vmatprep.subr.mxu1 %v5582_v35  ;;  %v7890_v35 = vld [vmem:[#allocation30_spill] sm:$0xff] }
  0xa3   :  { %756 = vmatprep.subr.mxu0 %v5808_v22  ;;  %1167 = vmatpush1.msra.mxu1 %v5588_v37  ;;  %v7892_v37 = vld [vmem:[#allocation31_spill] sm:$0xff] }
  0xa4   :  { %757 = vmatpush2.msra.mxu0 %v5812_v23  ;;  %1168 = vmatprep.subr.mxu1 %v5596_v40  ;;  %v7895_v40 = vld [vmem:[#allocation33_spill] sm:$0xff] }
  0xa5   :  { %758 = vmatprep.subr.mxu0 %v5816_v24  ;;  %1169 = vmatpush1.msra.mxu1 %v5602_v42  ;;  %v7897_v42 = vld [vmem:[#allocation36_spill] sm:$0xff] }
  0xa6   :  { %759 = vmatpush2.msra.mxu0 %v5820_v25  ;;  %1170 = vmatprep.subr.mxu1 %v5608_v44  ;;  %v7899_v44 = vld [vmem:[#allocation40_spill] sm:$0xff] }
  0xa7   :  { %760 = vmatprep.subr.mxu0 %v5824_v26  ;;  %1171 = vmatpush1.msra.mxu1 %v5614_v46  ;;  %v7901_v46 = vld [vmem:[#allocation44_spill] sm:$0xff] }
  0xa8   :  { %761 = vmatpush2.msra.mxu0 %v5828_v27  ;;  %1172 = vmatprep.subr.mxu1 %v5620_v48  ;;  %v7903_v48 = vld [vmem:[#allocation46_spill] sm:$0xff] }
  0xa9   :  { %763 = vmatmul.mubr.f32.vlgmr.msra.gmra.mxu0 %v696_v10  ;;  %4354 = vmatprep.subr.mxu0 %v5571_v31 }
  0xaa   :  { %4355 = vmatpush3.msra.mxu0 %v5577_v33  ;;  %1173 = vmatpush1.msra.mxu1 %v5626_v50  ;;  %v7888_v33 = vld [vmem:[#allocation29_spill] sm:$0xff] }
  0xab   :  { %4356 = vmatprep.subr.mxu0 %v5579_v34  ;;  %1174 = vmatprep.subr.mxu1 %v5628_v51  ;;  %v7889_v34 = vld [vmem:[#allocation39_spill] sm:$0xff]  ;;  %v7905_v50 = vld [vmem:[#allocation25_spill] sm:$0xff] }
  0xac   :  { %4357 = vmatpush3.msra.mxu0 %v5585_v36  ;;  %1175 = vmatpush1.msra.mxu1 %v5634_v53  ;;  %v7891_v36 = vld [vmem:[#allocation41_spill] sm:$0xff]  ;;  %v7906_v51 = vld [vmem:[#allocation23_spill] sm:$0xff]  ;;  %v137_v53 = vld [vmem:[%s7533_s4] sm:$0x7] }
  0xad   :  { %4358 = vmatprep.subr.mxu0 %v5591_v38  ;;  %1176 = vmatprep.subr.mxu1 %v5636_v54  ;;  %v7893_v38 = vld [vmem:[#allocation43_spill] sm:$0xff]  ;;  %v5923_v54 = vsub.s32 2, %v7906_v51 }
  0xae   :  { %4359 = vmatpush3.msra.mxu0 %v5593_v39  ;;  %1177 = vmatpush1.msra.mxu1 %v5642_v56  ;;  %v7894_v39 = vld [vmem:[#allocation32_spill] sm:$0xff] }
  0xaf   :  { %4360 = vmatprep.subr.mxu0 %v5599_v41  ;;  %1178 = vmatprep.subr.mxu1 %v5650_v59  ;;  %v7896_v41 = vld [vmem:[#allocation34_spill] sm:$0xff]  ;;  %v5415_v59 = vmov 1966171168  }
  0xb0   :  { %4361 = vmatpush3.msra.mxu0 %v5605_v43  ;;  %1179 = vmatpush1.msra.mxu1 %v5658_v62  ;;  %v7898_v43 = vld [vmem:[#allocation38_spill] sm:$0xff] }
  0xb1   :  { %4362 = vmatprep.subr.mxu0 %v5611_v45  ;;  %1180 = vmatprep.subr.mxu1 %v5664_v1  ;;  %v7900_v45 = vld [vmem:[#allocation42_spill] sm:$0xff] }
  0xb2   :  { %4363 = vmatpush3.msra.mxu0 %v5617_v47  ;;  %1181 = vmatpush1.msra.mxu1 %v5670_v5  ;;  %v7902_v47 = vld [vmem:[#allocation45_spill] sm:$0xff] }
  0xb3   :  { %4364 = vmatprep.subr.mxu0 %v5623_v49  ;;  %1182 = vmatprep.subr.mxu1 %v5676_v7  ;;  %v7904_v49 = vld [vmem:[#allocation47_spill] sm:$0xff] }
  0xb4   :  { %4365 = vmatpush3.msra.mxu0 %v5631_v52  ;;  %1183 = vmatpush2.msra.mxu1 %v5682_v9  ;;  %v5917_v52 = vsub.s32 0, %v7906_v51 }
  0xb5   :  { %4366 = vmatprep.subr.mxu0 %v5639_v55  ;;  %1184 = vmatprep.subr.mxu1 %v5688_v11  ;;  %v5926_v55 = vsub.s32 1, %v7906_v51 }
  0xb6   :  { %4367 = vmatpush3.msra.mxu0 %v5645_v57  ;;  %1185 = vmatpush2.msra.mxu1 %v5694_v17  ;;  %v142_v56 = vrot.slane %v137_v53, %v5917_v52  ;;  %v150_v57 = vrot.slane %v137_v53, %v5923_v54  ;;  %v262_v17 = vld [vmem:[#allocation13] sm:$0x7] }
  0xb7   :  { %4368 = vmatprep.subr.mxu0 %v5647_v58  ;;  %1186 = vmatprep.subr.mxu1 %v7885_v29  ;;  %v146_v58 = vrot.slane %v137_v53, %v5926_v55  ;;  %v271_v53 = vrot.slane %v262_v17, %v5926_v55 }
  0xb8   :  { %4369 = vmatpush3.msra.mxu0 %v5653_v60  ;;  %1187 = vmatpush2.msra.mxu1 %v7887_v32  ;;  %v394_v60 = vunpack.c.l.s4 %v5415_v59 }
  0xb9   :  { %4370 = vmatprep.subr.mxu0 %v7884_v28  ;;  %1188 = vmatprep.subr.mxu1 %v7889_v34 }
  0xba   :  { %4371 = vmatpush3.msra.mxu0 %v7886_v30  ;;  %1189 = vmatpush2.msra.mxu1 %v7891_v36  ;;  %v395_v28 = vunpack.c.0.s8 %v394_v60 }
  0xbb   :  { %4372 = vmatprep.subr.mxu0 %v7888_v33  ;;  %1190 = vmatprep.subr.mxu1 %v7893_v38 }
  0xbc   :  { %4373 = vmatpush3.msra.mxu0 %v7890_v35  ;;  %1191 = vmatpush2.msra.mxu1 %v5734_v0  ;;  %v5935_v59 = vsub.s32 %v395_v28, %v7906_v51 }
  0xbd   :  { %4374 = vmatprep.subr.mxu0 %v7892_v37  ;;  %1192 = vmatprep.subr.mxu1 %v5740_v15  ;;  %v275_v37 = vrot.slane %v262_v17, %v5923_v54 }
  0xbe   :  { %4375 = vmatpush3.msra.mxu0 %v7894_v39  ;;  %1193 = vmatpush2.msra.mxu1 %v5746_v4 }
  0xbf   :  { %4376 = vmatprep.subr.mxu0 %v7895_v40  ;;  %1194 = vmatprep.subr.mxu1 %v5752_v63 }
  0xc0   :  { %4377 = vmatpush3.msra.mxu0 %v7896_v41  ;;  %1195 = vmatpush2.msra.mxu1 %v5756_v8 }
  0xc1   :  { %4378 = vmatprep.subr.mxu0 %v7897_v42  ;;  %1196 = vmatprep.subr.mxu1 %v5761_v12 }
  0xc2   :  { %4379 = vmatpush3.msra.mxu0 %v7898_v43  ;;  %1197 = vmatpush2.msra.mxu1 %v5765_v61 }
  0xc3   :  { %4380 = vmatprep.subr.mxu0 %v7899_v44  ;;  %1198 = vmatprep.subr.mxu1 %v5768_v2 }
  0xc4   :  { %4381 = vmatpush3.msra.mxu0 %v7900_v45  ;;  %1199 = vmatpush2.msra.mxu1 %v5772_v13 }
  0xc5   :  { %4382 = vmatprep.subr.mxu0 %v7901_v46  ;;  %1200 = vmatprep.subr.mxu1 %v5776_v6 }
  0xc6   :  { %4383 = vmatpush3.msra.mxu0 %v7902_v47  ;;  %1201 = vmatpush2.msra.mxu1 %v5780_v3 }
  0xc7   :  { %4384 = vmatprep.subr.mxu0 %v7903_v48  ;;  %1202 = vmatprep.subr.mxu1 %v5784_v14 }
  0xc8   :  { %4385 = vmatpush3.msra.mxu0 %v7904_v49  ;;  %1203 = vmatpush2.msra.mxu1 %v5788_v16 }
  0xc9   :  { %1561 = vmatprep.subr.mxu0 %v7905_v50  ;;  %1204 = vmatprep.subr.mxu1 %v5792_v18  ;;  %v267_v50 = vrot.slane %v262_v17, %v5917_v52 }
  0xca   :  { %1205 = vmatpush2.msra.mxu1 %v5796_v19 }
  0xcb   :  { %1206 = vmatprep.subr.mxu1 %v5800_v20 }
  0xcc   :  { %1207 = vmatpush2.msra.mxu1 %v5804_v21 }
  0xcd   :  { %1208 = vmatprep.subr.mxu1 %v5808_v22 }
  0xce   :  { %1209 = vmatpush2.msra.mxu1 %v5812_v23 }
  0xcf   :  { %1210 = vmatprep.subr.mxu1 %v5816_v24 }
  0xd0   :  { %1211 = vmatpush2.msra.mxu1 %v5820_v25 }
  0xd1   :  { %1212 = vmatprep.subr.mxu1 %v5824_v26 }
  0xd2   :  { %1213 = vmatpush2.msra.mxu1 %v5828_v27 }
  0xd3   :  { %4389 = vmatprep.subr.mxu1 %v5571_v31 }
 0x121   :  { %v208_v31 = vpop.f32.mrf.mxu0  ;;  %v251_v1 = vpop.f32.mrf.mxu1 }
 0x122   :  { %v209_v62 = vadd.f32 %v208_v31, %v142_v56  ;;  %v252_v7 = vadd.f32 %v251_v1, %v150_v57 }
 0x123   :  { %v210_v5 = vpop.f32.mrf.mxu0  ;;  %v4621_v10 = vpop.f32.mrf.mxu1 }
 0x124   :  { %379 = vst [vmem:[#allocation2] sm:$0xff] %v209_v62  ;;  %v211_v9 = vadd.f32 %v210_v5, %v146_v58  ;;  %381 = vst [vmem:[#allocation2 + $0x10] sm:$0xff] %v252_v7 }
 0x125   :  { %v212_v11 = vpop.f32.mrf.mxu0  ;;  %v254_v30 = vpop.f32.mrf.mxu1 }
 0x126   :  { %380 = vst [vmem:[#allocation2 + $0x8] sm:$0xff] %v211_v9  ;;  %v213_v29 = vadd.f32 %v212_v11, %v142_v56  ;;  %v255_v35 = vadd.f32 %v254_v30, %v150_v57 }
 0x127   :  { %v214_v33 = vpop.f32.mrf.mxu0  ;;  %v4622_v40 = vpop.f32.mrf.mxu1 }
 0x128   :  { %382 = vst [vmem:[#allocation2 + $0x18] sm:$0xff] %v213_v29  ;;  %v215_v39 = vadd.f32 %v214_v33, %v146_v58  ;;  %384 = vst [vmem:[#allocation2 + $0x28] sm:$0xff] %v255_v35 }
 0x129   :  { %v329_v31 = vpop.f32.mrf.mxu0  ;;  %v372_v60 = vpop.f32.mrf.mxu1 }
 0x12a   :  { %383 = vst [vmem:[#allocation2 + $0x20] sm:$0xff] %v215_v39  ;;  %v373_v62 = vadd.f32 %v372_v60, %v275_v37  ;;  %v330_v1 = vadd.f32 %v329_v31, %v267_v50  ;;  %v7907_v31 = vlaneseq }
 0x12b   :  { %v331_v56 = vpop.f32.mrf.mxu0  ;;  %v4627_v5 = vpop.f32.mrf.mxu1 }
 0x12c   :  { %v332_v57 = vadd.f32 %v331_v56, %v271_v53  ;;  %v392_v7 = vcombine.high %v373_v62, %v373_v62  ;;  %v406_v11 = vrot.slane %v373_v62, %v5935_v59  ;;  %vm5942_vm3 = vcmp.lt.s32.totalorder %v7907_v31, 384 }
 0x12d   :  { %v333_v9 = vpop.f32.mrf.mxu0  ;;  %v375_v29 = vpop.f32.mrf.mxu1 }
 0x12e   :  { %v391_v58 = vcombine.high %v330_v1, %v332_v57  ;;  %v509_v10 = vcombine.low %v330_v1, %v332_v57  ;;  %v413_v17 = vrot.slane %v392_v7, %v5935_v59  ;;  %v376_v33 = vadd.f32 %v375_v29, %v275_v37 }
 0x12f   :  { %v335_v30 = vpop.f32.mrf.mxu0  ;;  %v4628_v40 = vpop.f32.mrf.mxu1  ;;  %v334_v56 = vadd.f32 %v333_v9, %v267_v50 }
 0x130   :  { %v399_v28 = vrot.slane %v391_v58, %v5935_v59  ;;  %v516_v35 = vrot.slane %v509_v10, %v5935_v59  ;;  %v336_v39 = vadd.f32 %v335_v30, %v271_v53  ;;  %v424_v1 = vcombine.high %v376_v33, %v376_v33 }
 0x131   :  { %v438_v37 = vrot.slane %v376_v33, %v5935_v59 }
 0x132   :  { %v414_v57 = vcombine.high %v399_v28, %v413_v17  ;;  %v467_v62 = vcombine.low %v399_v28, %v413_v17  ;;  %v517_v5 = vcombine.high %v516_v35, %v406_v11  ;;  %v551_v27 = vcombine.low %v516_v35, %v406_v11 }
 0x133   :  { %v423_v7 = vcombine.high %v334_v56, %v336_v39  ;;  %v526_v26 = vcombine.low %v334_v56, %v336_v39  ;;  %v445_v58 = vrot.slane %v424_v1, %v5935_v59 }
 0x134   :  { %v421_v53 = vrot.slane %v414_v57, %v5935_v59  ;;  %v474_v10 = vrot.slane %v467_v62, %v5935_v59  ;;  %v524_v29 = vrot.slane %v517_v5, %v5935_v59  ;;  %v558_v30 = vrot.slane %v551_v27, %v5935_v59 }
 0x135   :  { %v431_v50 = vrot.slane %v423_v7, %v5935_v59  ;;  %v533_v9 = vrot.slane %v526_v26, %v5935_v59 }
 0x136   :  { %v422_v17 = vcombine.high %v421_v53, %v421_v53  ;;  %v475_v11 = vcombine.high %v474_v10, %v474_v10  ;;  %496 = vst.msk [vmem:[#allocation2 + $0x32] ss:$8 sm:$0x7] %vm5942_vm3, %v421_v53  ;;  %504 = vst.msk [vmem:[#allocation2 + $0x33] ss:$8 sm:$0x7] %vm5942_vm3, %v474_v10  ;;  %v525_v33 = vcombine.high %v524_v29, %v524_v29 }
 0x137   :  { %v559_v28 = vcombine.high %v558_v30, %v558_v30  ;;  %580 = vst.msk [vmem:[#allocation2 + $0x36] ss:$8 sm:$0x7] %vm5942_vm3, %v524_v29  ;;  %588 = vst.msk [vmem:[#allocation2 + $0x37] ss:$8 sm:$0x7] %vm5942_vm3, %v558_v30  ;;  %v446_v27 = vcombine.high %v431_v50, %v445_v58  ;;  %v476_v35 = vcombine.low %v431_v50, %v445_v58 }
 0x138   :  { %v534_v39 = vcombine.high %v533_v9, %v438_v37  ;;  %v560_v26 = vcombine.low %v533_v9, %v438_v37  ;;  %462 = vst.msk [vmem:[#allocation2 + $0x30] ss:$8 sm:$0x7] %vm5942_vm3, %v422_v17  ;;  %488 = vst.msk [vmem:[#allocation2 + $0x31] ss:$8 sm:$0x7] %vm5942_vm3, %v475_v11 }
 0x139   :  { %546 = vst.msk [vmem:[#allocation2 + $0x34] ss:$8 sm:$0x7] %vm5942_vm3, %v525_v33  ;;  %572 = vst.msk [vmem:[#allocation2 + $0x35] ss:$8 sm:$0x7] %vm5942_vm3, %v559_v28  ;;  %v453_v40 = vrot.slane %v446_v27, %v5935_v59  ;;  %v483_v31 = vrot.slane %v476_v35, %v5935_v59 }
 0x13a   :  { %v541_v56 = vrot.slane %v534_v39, %v5935_v59  ;;  %v567_v1 = vrot.slane %v560_v26, %v5935_v59  ;;  %v5993_v50 = vld [vmem:[#allocation2] ss:$8 sm:$0x7] }
 0x13b   :  { %v454_v57 = vcombine.high %v453_v40, %v453_v40  ;;  %v484_v62 = vcombine.high %v483_v31, %v483_v31  ;;  %499 = vst.msk [vmem:[#allocation2 + $0x4a] ss:$8 sm:$0x7] %vm5942_vm3, %v453_v40  ;;  %507 = vst.msk [vmem:[#allocation2 + $0x4b] ss:$8 sm:$0x7] %vm5942_vm3, %v483_v31 }
 0x13c   :  { %v542_v5 = vcombine.high %v541_v56, %v541_v56  ;;  %v568_v7 = vcombine.high %v567_v1, %v567_v1  ;;  %583 = vst.msk [vmem:[#allocation2 + $0x4e] ss:$8 sm:$0x7] %vm5942_vm3, %v541_v56  ;;  %591 = vst.msk [vmem:[#allocation2 + $0x4f] ss:$8 sm:$0x7] %vm5942_vm3, %v567_v1 }
 0x13d   :  { %465 = vst.msk [vmem:[#allocation2 + $0x48] ss:$8 sm:$0x7] %vm5942_vm3, %v454_v57  ;;  %491 = vst.msk [vmem:[#allocation2 + $0x49] ss:$8 sm:$0x7] %vm5942_vm3, %v484_v62 }
 0x13e   :  { %549 = vst.msk [vmem:[#allocation2 + $0x4c] ss:$8 sm:$0x7] %vm5942_vm3, %v542_v5  ;;  %575 = vst.msk [vmem:[#allocation2 + $0x4d] ss:$8 sm:$0x7] %vm5942_vm3, %v568_v7 }
 0x13f   :  { %v5997_v28 = vld [vmem:[#allocation2 + $0x18] ss:$8 sm:$0x7]  ;;  %v907_v56 = vrot.slane %v5993_v50, 1 }
 0x140   :  { %v5999_v60 = vld [vmem:[#allocation2 + $0x30] ss:$8 sm:$0x7] }
 0x144   :  { %v6004_v31 = vld [vmem:[#allocation2 + $0x48] ss:$8 sm:$0x7] }
 0x169   :  { %v764_v37 = vpop.f32.mrf.mxu0 }
 0x16a   :  { %v853_v58 = vrot.slane %v764_v37, %v5935_v59  ;;  %v908_v37 = vrot.slane %v5997_v28, 1 }
 0x16b   :  { %v766_v53 = vpop.f32.mrf.mxu0 }
 0x16c   :  { %v854_v10 = vcombine.high %v853_v58, %v853_v58  ;;  %v861_v29 = vrot.slane %v853_v58, %v5935_v59  ;;  %v922_v30 = vrot.slane %v766_v53, %v5935_v59 }
 0x16e   :  { %v868_v9 = vrot.slane %v854_v10, %v5935_v59  ;;  %v869_v17 = vcombine.high %v861_v29, %v861_v29  ;;  %v875_v11 = vadd.f32 %v861_v29, %v5993_v50  ;;  %v923_v33 = vcombine.high %v922_v30, %v922_v30 }
 0x16f   :  { %v930_v27 = vrot.slane %v922_v30, %v5935_v59  ;;  %v909_v10 = vrot.slane %v5999_v60, 1  ;;  %v910_v30 = vrot.slane %v6004_v31, 1 }
 0x170   :  { %v870_v35 = vcombine.high %v868_v9, %v868_v9  ;;  %v876_v39 = vadd.f32 %v868_v9, %v5997_v28  ;;  %v877_v26 = vadd.f32 %v869_v17, %v5999_v60  ;;  %v4234_v40 = vmul.f32 -1.442695, %v875_v11 }
 0x171   :  { %v937_v1 = vrot.slane %v923_v33, %v5935_v59  ;;  %v938_v57 = vcombine.high %v930_v27, %v930_v27  ;;  %v944_v29 = vadd.f32 %v930_v27, %v907_v56  ;;  %v4351_v33 = vpop.f32.mrf.mxu1  ;;  %v6015_v27 = vld [vmem:[%s7535_s6] sm:$0xf] }
 0x172   :  { %v878_v62 = vadd.f32 %v870_v35, %v6004_v31  ;;  %4713 = vpow2.f32 %v4234_v40  ;;  %v4235_v5 = vmul.f32 -1.442695, %v876_v39  ;;  %v4236_v7 = vmul.f32 -1.442695, %v877_v26  ;;  %7910 = vst [vmem:[#allocation27_spill] sm:$0xff] %v6015_v27 }
 0x173   :  { %v939_v58 = vcombine.high %v937_v1, %v937_v1  ;;  %v945_v9 = vadd.f32 %v937_v1, %v908_v37  ;;  %v946_v17 = vadd.f32 %v938_v57, %v909_v10  ;;  %v4238_v35 = vmul.f32 -1.442695, %v944_v29  ;;  %v4352_v25 = vpop.f32.mrf.mxu1 }
 0x174   :  { %4715 = vpow2.f32 %v4235_v5  ;;  %v4237_v53 = vmul.f32 -1.442695, %v878_v62  ;;  %v4353_v62 = vadd.f32 %v4352_v25, %v4351_v33 }
 0x175   :  { %4717 = vpow2.f32 %v4236_v7  ;;  %v947_v11 = vadd.f32 %v939_v58, %v910_v30  ;;  %v4239_v40 = vmul.f32 -1.442695, %v945_v9  ;;  %v4240_v39 = vmul.f32 -1.442695, %v946_v17 }
 0x176   :  { %4719 = vpow2.f32 %v4237_v53  ;;  %v972_v37 = vadd.f32 %v4353_v62, %v6015_v27 }
 0x177   :  { %v4241_v26 = vmul.f32 -1.442695, %v947_v11  ;;  %4721 = vpow2.f32 %v4238_v35 }
 0x178   :  { %4723 = vpow2.f32 %v4239_v40  ;;  %v980_v25 = vrot.slane %v972_v37, %v5935_v59 }
 0x179   :  { %4725 = vpow2.f32 %v4240_v39 }
 0x17a   :  { %4727 = vpow2.f32 %v4241_v26  ;;  %v981_v9 = vcombine.high %v980_v25, %v980_v25  ;;  %v988_v40 = vrot.slane %v980_v25, %v5935_v59 }
 0x17c   :  { %v995_v26 = vrot.slane %v981_v9, %v5935_v59  ;;  %v996_v37 = vcombine.high %v988_v40, %v988_v40 }
 0x17f   :  { %v4714_v5 = vpop.eup %4713 }
 0x180   :  { %v891_v56 = vadd.f32 1.0, %v4714_v5 }
 0x181   :  { %v4716_v1 = vpop.eup %4715 }
 0x182   :  { %v4718_v57 = vpop.eup %4717  ;;  %v892_v7 = vadd.f32 1.0, %v4716_v1  ;;  %4729 = vrcp.f32 %v891_v56  ;;  %v1006_v56 = vrot.slane %v5993_v50, 2 }
 0x183   :  { %v4720_v58 = vpop.eup %4719  ;;  %v893_v53 = vadd.f32 1.0, %v4718_v57 }
 0x184   :  { %v894_v10 = vadd.f32 1.0, %v4720_v58  ;;  %4731 = vrcp.f32 %v892_v7  ;;  %v4722_v29 = vpop.eup %4721  ;;  %v1007_v7 = vrot.slane %v5997_v28, 2 }
 0x185   :  { %4733 = vrcp.f32 %v893_v53  ;;  %v4724_v30 = vpop.eup %4723  ;;  %v960_v33 = vadd.f32 1.0, %v4722_v29  ;;  %v997_v53 = vcombine.high %v995_v26, %v995_v26 }
 0x186   :  { %4735 = vrcp.f32 %v894_v10  ;;  %v4726_v17 = vpop.eup %4725  ;;  %v961_v35 = vadd.f32 1.0, %v4724_v30  ;;  %v1008_v30 = vrot.slane %v5999_v60, 2 }
 0x187   :  { %v4728_v11 = vpop.eup %4727  ;;  %v962_v39 = vadd.f32 1.0, %v4726_v17  ;;  %4737 = vrcp.f32 %v960_v33  ;;  %v1009_v17 = vrot.slane %v6004_v31, 2 }
 0x188   :  { %v963_v5 = vadd.f32 1.0, %v4728_v11  ;;  %4739 = vrcp.f32 %v961_v35  ;;  %v1057_v35 = vsub.s32 3, %v7906_v51 }
 0x189   :  { %4741 = vrcp.f32 %v962_v39 }
 0x18a   :  { %4743 = vrcp.f32 %v963_v5  ;;  %v7911_v5 = vld [vmem:[#allocation24_spill] sm:$0xff] }
 0x18b   :  { %v6031_v31 = vrot.slane %v7911_v5, %v5917_v52  ;;  %v6039_v51 = vrot.slane %v7911_v5, %v5926_v55 }
 0x18f   :  { %v4730_v62 = vpop.eup %4729 }
 0x190   :  { %v1002_v1 = vmul.f32 %v4730_v62, %v988_v40 }
 0x191   :  { %v4732_v57 = vpop.eup %4731 }
 0x192   :  { %v4734_v58 = vpop.eup %4733  ;;  %v1003_v10 = vmul.f32 %v4732_v57, %v995_v26  ;;  %v1014_v29 = vadd.f32 %v1006_v56, %v1002_v1  ;;  %v6027_v1 = vrot.slane %v7911_v5, %v1057_v35 }
 0x193   :  { %v4736_v25 = vpop.eup %4735  ;;  %v1004_v9 = vmul.f32 %v4734_v58, %v996_v37 }
 0x194   :  { %v1005_v50 = vmul.f32 %v4736_v25, %v997_v53  ;;  %v1015_v11 = vadd.f32 %v1007_v7, %v1003_v10  ;;  %4745 = vtanh.f32 %v1014_v29  ;;  %v4738_v28 = vpop.eup %4737  ;;  %v7912_v53 = vld [vmem:[#allocation26_spill] sm:$0xff] }
 0x195   :  { %v1016_v33 = vadd.f32 %v1008_v30, %v1004_v9  ;;  %v4740_v40 = vpop.eup %4739  ;;  %v1022_v56 = vsub.f32 1.0, %v4738_v28  ;;  %v1030_v37 = vmul.f32 0.0, %v4738_v28  ;;  %v6035_v10 = vrot.slane %v7912_v53, %v5917_v52 }
 0x196   :  { %v1017_v62 = vadd.f32 %v1009_v17, %v1005_v50  ;;  %4747 = vtanh.f32 %v1015_v11  ;;  %v4742_v39 = vpop.eup %4741  ;;  %v1023_v57 = vsub.f32 1.0, %v4740_v40  ;;  %v6043_v29 = vrot.slane %v7912_v53, %v5926_v55 }
 0x197   :  { %4749 = vtanh.f32 %v1016_v33  ;;  %v4744_v26 = vpop.eup %4743  ;;  %v1024_v25 = vsub.f32 1.0, %v4742_v39  ;;  %v1031_v50 = vmul.f32 0.0, %v4740_v40  ;;  %v6049_v52 = vrot.slane %v7911_v5, %v5923_v54 }
 0x198   :  { %4751 = vtanh.f32 %v1017_v62  ;;  %v1025_v9 = vsub.f32 1.0, %v4744_v26  ;;  %v6053_v62 = vrot.slane %v7912_v53, %v5923_v54  ;;  %v6056_v55 = vrot.slane %v7912_v53, %v1057_v35 }
 0x199   :  { %7913 = vst [vmem:[#allocation35_spill] sm:$0xff] %v6049_v52  ;;  %v1033_v27 = vmul.f32 0.0, %v4744_v26 }
 0x1a1   :  { %v4746_v60 = vpop.eup %4745 }
 0x1a2   :  { %v1026_v7 = vmul.f32 %v4746_v60, %v1022_v56  ;;  %v1032_v56 = vmul.f32 0.0, %v4742_v39 }
 0x1a3   :  { %v4748_v58 = vpop.eup %4747 }
 0x1a4   :  { %v4750_v30 = vpop.eup %4749  ;;  %v1027_v17 = vmul.f32 %v4748_v58, %v1023_v57  ;;  %v6045_v11 = vadd.f32 %v1030_v37, %v1026_v7 }
 0x1a5   :  { %v4752_v33 = vpop.eup %4751  ;;  %v1028_v28 = vmul.f32 %v4750_v30, %v1024_v25 }
 0x1a6   :  { %v1029_v60 = vmul.f32 %v4752_v33, %v1025_v9  ;;  %v6058_v57 = vadd.f32 %v1031_v50, %v1027_v17  ;;  %1038 = vst [vmem:[#allocation3] sm:$0x1] %v6045_v11  ;;  %v1088_v5 = vmul.f32 %v6035_v10, %v6045_v11  ;;  %v1063_v35 = vmul.f32 %v6031_v31, %v6045_v11 }
 0x1a7   :  { %v6061_v40 = vadd.f32 %v1032_v56, %v1028_v28 }
 0x1a8   :  { %v6065_v7 = vadd.f32 %v1033_v27, %v1029_v60  ;;  %1039 = vst [vmem:[#allocation3 + $0x8] sm:$0x1] %v6058_v57  ;;  %v1089_v54 = vmul.f32 %v6043_v29, %v6058_v57  ;;  %v1064_v39 = vmul.f32 %v6039_v51, %v6058_v57 }
 0x1a9   :  { %1040 = vst [vmem:[#allocation4 + $0x7] sm:$0x1] %v6061_v40  ;;  %v1090_v26 = vmul.f32 %v6053_v62, %v6061_v40  ;;  %v1065_v27 = vmul.f32 %v6049_v52, %v6061_v40 }
 0x1aa   :  { %1041 = vst [vmem:[#allocation4 + $0xf] sm:$0x1] %v6065_v7  ;;  %v1091_v37 = vmul.f32 %v6056_v55, %v6065_v7  ;;  %v1125_v58 = vcombine.low %v1088_v5, %v1089_v54  ;;  %v1066_v53 = vmul.f32 %v6027_v1, %v6065_v7  ;;  %v1096_v25 = vcombine.low %v1063_v35, %v1064_v39  ;;  %v6090_v54 = vld [vmem:[#allocation11 + $0x168] sm:$0xff]  ;;  %v6093_v35 = vld [vmem:[#allocation11 + $0x178] sm:$0xff] }
 0x1ab   :  { %v6096_v39 = vld [vmem:[#allocation11 + $0x158] sm:$0xff] }
 0x1ac   :  { %v1126_v30 = vcombine.low %v1090_v26, %v1091_v37  ;;  %v1097_v9 = vcombine.low %v1065_v27, %v1066_v53  ;;  %v1133_v17 = vrot.slane %v1125_v58, %v5935_v59  ;;  %v1104_v33 = vrot.slane %v1096_v25, %v5935_v59  ;;  %v6099_v26 = vld [vmem:[#allocation11 + $0x2e0] sm:$0xff]  ;;  %v6102_v27 = vld [vmem:[#allocation11 + $0x150] sm:$0xff]  ;;  %v6111_v58 = vld [vmem:[#allocation11 + $0x2c8] sm:$0xff] }
 0x1ad   :  { %v6108_v37 = vld [vmem:[#allocation11 + $0x140] sm:$0xff]  ;;  %v6114_v53 = vld [vmem:[#allocation11 + $0x138] sm:$0xff]  ;;  %v6117_v25 = vld [vmem:[#allocation11 + $0x148] sm:$0xff] }
 0x1ae   :  { %v1140_v50 = vrot.slane %v1126_v30, %v5935_v59  ;;  %v1111_v28 = vrot.slane %v1097_v9, %v5935_v59  ;;  %v6120_v30 = vld [vmem:[#allocation11 + $0x128] sm:$0xff]  ;;  %v6123_v9 = vld [vmem:[#allocation11 + $0x2b0] sm:$0xff] }
 0x1b0   :  { %v1141_v56 = vcombine.low %v1133_v17, %v1140_v50  ;;  %v1112_v60 = vcombine.low %v1104_v33, %v1111_v28  ;;  %v6126_v17 = vld [vmem:[#allocation11 + $0x120] sm:$0xff]  ;;  %v6129_v50 = vld [vmem:[#allocation11 + $0x130] sm:$0xff]  ;;  %v6135_v28 = vld [vmem:[#allocation11 + $0x298] sm:$0xff] }
 0x1b1   :  { %7914 = vst [vmem:[#allocation28_spill] sm:$0xff] %v6129_v50  ;;  %v6132_v33 = vld [vmem:[#allocation11 + $0x110] sm:$0xff]  ;;  %7916 = vst [vmem:[#allocation29_spill] sm:$0xff] %v6135_v28 }
 0x1b2   :  { %v1148_v52 = vrot.slane %v1141_v56, %v5935_v59  ;;  %v1119_v5 = vrot.slane %v1112_v60, %v5935_v59  ;;  %7915 = vst [vmem:[#allocation37_spill] sm:$0xff] %v6132_v33  ;;  %v6138_v56 = vld [vmem:[#allocation11 + $0x108] sm:$0xff]  ;;  %v6141_v60 = vld [vmem:[#allocation11 + $0x118] sm:$0xff] }
 0x1b3   :  { %7917 = vst [vmem:[#allocation39_spill] sm:$0xff] %v6138_v56  ;;  %7918 = vst [vmem:[#allocation30_spill] sm:$0xff] %v6141_v60 }
 0x1b4   :  { %1214 = vmatprep.mubr.f32.mxu1 %v1148_v52  ;;  %1285 = vmatprep.mubr.f32.mxu0 %v1148_v52  ;;  %v6105_v52 = vld [vmem:[#allocation11 + $0x160] sm:$0xff] }
 0x1b5   :  { %1215 = vmatmul.mubr.f32.vlgmr.msra.gmra.mxu1 %v1119_v5  ;;  %1286 = vmatmul.mubr.f32.vlgmr.msra.gmra.mxu0 %v1119_v5  ;;  %v6144_v5 = vld [vmem:[#allocation11 + $0xf8] sm:$0xff] }
 0x1b6   :  { %1562 = vmatpush1.msra.mxu0 %v6090_v54  ;;  %4390 = vmatpush3.msra.mxu1 %v6093_v35  ;;  %7919 = vst [vmem:[#allocation41_spill] sm:$0xff] %v6144_v5 }
 0x1b7   :  { %1563 = vmatprep.subr.mxu0 %v6096_v39  ;;  %4391 = vmatprep.subr.mxu1 %v6099_v26 }
 0x1b8   :  { %1564 = vmatpush1.msra.mxu0 %v6102_v27  ;;  %4392 = vmatpush3.msra.mxu1 %v6105_v52 }
 0x1b9   :  { %1565 = vmatprep.subr.mxu0 %v6108_v37  ;;  %4393 = vmatprep.subr.mxu1 %v6111_v58 }
 0x1ba   :  { %1566 = vmatpush1.msra.mxu0 %v6114_v53  ;;  %4394 = vmatpush3.msra.mxu1 %v6117_v25 }
 0x1bb   :  { %1567 = vmatprep.subr.mxu0 %v6120_v30  ;;  %4395 = vmatprep.subr.mxu1 %v6123_v9 }
 0x1bc   :  { %1568 = vmatpush1.msra.mxu0 %v6126_v17  ;;  %4396 = vmatpush3.msra.mxu1 %v6129_v50  ;;  %v6147_v50 = vld [vmem:[#allocation11 + $0x280] sm:$0xff] }
 0x1bd   :  { %1569 = vmatprep.subr.mxu0 %v6132_v33  ;;  %4397 = vmatprep.subr.mxu1 %v6135_v28  ;;  %7920 = vst [vmem:[#allocation31_spill] sm:$0xff] %v6147_v50  ;;  %v6150_v33 = vld [vmem:[#allocation11 + $0xf0] sm:$0xff]  ;;  %v6153_v28 = vld [vmem:[#allocation11 + $0x100] sm:$0xff] }
 0x1be   :  { %1570 = vmatpush1.msra.mxu0 %v6138_v56  ;;  %4398 = vmatpush3.msra.mxu1 %v6141_v60  ;;  %7921 = vst [vmem:[#allocation43_spill] sm:$0xff] %v6150_v33  ;;  %7922 = vst [vmem:[#allocation32_spill] sm:$0xff] %v6153_v28  ;;  %v6156_v56 = vld [vmem:[#allocation11 + $0xe0] sm:$0xff]  ;;  %v6159_v60 = vld [vmem:[#allocation11 + $0x268] sm:$0xff] }
 0x1bf   :  { %1571 = vmatprep.subr.mxu0 %v6144_v5  ;;  %4399 = vmatprep.subr.mxu1 %v6147_v50  ;;  %7923 = vst [vmem:[#allocation33_spill] sm:$0xff] %v6156_v56  ;;  %7924 = vst [vmem:[#allocation34_spill] sm:$0xff] %v6159_v60  ;;  %v6162_v5 = vld [vmem:[#allocation11 + $0xd8] sm:$0xff]  ;;  %v6165_v50 = vld [vmem:[#allocation11 + $0xe8] sm:$0xff] }
 0x1c0   :  { %1572 = vmatpush1.msra.mxu0 %v6150_v33  ;;  %4400 = vmatpush3.msra.mxu1 %v6153_v28  ;;  %7925 = vst [vmem:[#allocation36_spill] sm:$0xff] %v6162_v5  ;;  %7926 = vst [vmem:[#allocation38_spill] sm:$0xff] %v6165_v50  ;;  %v6168_v33 = vld [vmem:[#allocation11 + $0xc8] sm:$0xff]  ;;  %v6171_v28 = vld [vmem:[#allocation11 + $0x250] sm:$0xff] }
 0x1c1   :  { %1573 = vmatprep.subr.mxu0 %v6156_v56  ;;  %4401 = vmatprep.subr.mxu1 %v6159_v60  ;;  %7927 = vst [vmem:[#allocation40_spill] sm:$0xff] %v6168_v33  ;;  %7928 = vst [vmem:[#allocation42_spill] sm:$0xff] %v6171_v28  ;;  %v6174_v56 = vld [vmem:[#allocation11 + $0xc0] sm:$0xff]  ;;  %v6177_v60 = vld [vmem:[#allocation11 + $0xd0] sm:$0xff] }
 0x1c2   :  { %1574 = vmatpush1.msra.mxu0 %v6162_v5  ;;  %4402 = vmatpush3.msra.mxu1 %v6165_v50  ;;  %7929 = vst [vmem:[#allocation44_spill] sm:$0xff] %v6174_v56  ;;  %7930 = vst [vmem:[#allocation45_spill] sm:$0xff] %v6177_v60  ;;  %v6180_v5 = vld [vmem:[#allocation11 + $0xb0] sm:$0xff]  ;;  %v6183_v50 = vld [vmem:[#allocation11 + $0x238] sm:$0xff] }
 0x1c3   :  { %1575 = vmatprep.subr.mxu0 %v6168_v33  ;;  %4403 = vmatprep.subr.mxu1 %v6171_v28  ;;  %7931 = vst [vmem:[#allocation46_spill] sm:$0xff] %v6180_v5  ;;  %7932 = vst [vmem:[#allocation47_spill] sm:$0xff] %v6183_v50  ;;  %v6186_v33 = vld [vmem:[#allocation11 + $0xa8] sm:$0xff]  ;;  %v6189_v28 = vld [vmem:[#allocation11 + $0xb8] sm:$0xff] }
 0x1c4   :  { %1576 = vmatpush1.msra.mxu0 %v6174_v56  ;;  %4404 = vmatpush3.msra.mxu1 %v6177_v60  ;;  %7933 = vst [vmem:[#allocation25_spill] sm:$0xff] %v6186_v33  ;;  %7934 = vst [vmem:[#allocation23_spill] sm:$0xff] %v6189_v28  ;;  %v6192_v56 = vld [vmem:[#allocation11 + $0x98] sm:$0xff]  ;;  %v6195_v60 = vld [vmem:[#allocation11 + $0x220] sm:$0xff] }
 0x1c5   :  { %1577 = vmatprep.subr.mxu0 %v6180_v5  ;;  %4405 = vmatprep.subr.mxu1 %v6183_v50  ;;  %7935 = vst [vmem:[#allocation24_spill] sm:$0xff] %v6192_v56  ;;  %7936 = vst [vmem:[#allocation26_spill] sm:$0xff] %v6195_v60  ;;  %v6198_v5 = vld [vmem:[#allocation11 + $0x90] sm:$0xff]  ;;  %v6201_v50 = vld [vmem:[#allocation11 + $0xa0] sm:$0xff] }
 0x1c6   :  { %1578 = vmatpush1.msra.mxu0 %v6186_v33  ;;  %4406 = vmatpush3.msra.mxu1 %v6189_v28  ;;  %7937 = vst [vmem:[#allocation51_spill] sm:$0xff] %v6198_v5  ;;  %7938 = vst [vmem:[#allocation52_spill] sm:$0xff] %v6201_v50  ;;  %v6204_v33 = vld [vmem:[#allocation11 + $0x80] sm:$0xff]  ;;  %v6207_v28 = vld [vmem:[#allocation11 + $0x208] sm:$0xff] }
 0x1c7   :  { %1579 = vmatprep.subr.mxu0 %v6192_v56  ;;  %4407 = vmatprep.subr.mxu1 %v6195_v60  ;;  %7939 = vst [vmem:[#allocation53_spill] sm:$0xff] %v6204_v33  ;;  %7940 = vst [vmem:[#allocation54_spill] sm:$0xff] %v6207_v28  ;;  %v6210_v56 = vld [vmem:[#allocation11 + $0x78] sm:$0xff]  ;;  %v6213_v60 = vld [vmem:[#allocation11 + $0x88] sm:$0xff] }
 0x1c8   :  { %1580 = vmatpush1.msra.mxu0 %v6198_v5  ;;  %4408 = vmatpush3.msra.mxu1 %v6201_v50  ;;  %7941 = vst [vmem:[#allocation55_spill] sm:$0xff] %v6210_v56  ;;  %7942 = vst [vmem:[#allocation56_spill] sm:$0xff] %v6213_v60  ;;  %v6216_v5 = vld [vmem:[#allocation11 + $0x68] sm:$0xff]  ;;  %v6219_v50 = vld [vmem:[#allocation11 + $0x1f0] sm:$0xff] }
 0x1c9   :  { %1581 = vmatprep.subr.mxu0 %v6204_v33  ;;  %4409 = vmatprep.subr.mxu1 %v6207_v28  ;;  %7943 = vst [vmem:[#allocation57_spill] sm:$0xff] %v6216_v5  ;;  %7944 = vst [vmem:[#allocation58_spill] sm:$0xff] %v6219_v50  ;;  %v6222_v33 = vld [vmem:[#allocation11 + $0x60] sm:$0xff]  ;;  %v6226_v28 = vld [vmem:[#allocation11 + $0x50] sm:$0xff] }
 0x1ca   :  { %1582 = vmatpush1.msra.mxu0 %v6210_v56  ;;  %4410 = vmatpush3.msra.mxu1 %v6213_v60  ;;  %7945 = vst [vmem:[#allocation59_spill] sm:$0xff] %v6222_v33  ;;  %7946 = vst [vmem:[#allocation60_spill] sm:$0xff] %v6226_v28  ;;  %v6230_v60 = vld [vmem:[#allocation11 + $0x48] sm:$0xff] }
 0x1cb   :  { %1583 = vmatprep.subr.mxu0 %v6216_v5  ;;  %4411 = vmatprep.subr.mxu1 %v6219_v50  ;;  %7947 = vst [vmem:[#allocation61_spill] sm:$0xff] %v6230_v60  ;;  %v6234_v5 = vld [vmem:[#allocation11 + $0x38] sm:$0xff] }
 0x1cc   :  { %1584 = vmatpush1.msra.mxu0 %v6222_v33  ;;  %4412 = vmatpush3.msra.mxu1 %v7896_v41  ;;  %7948 = vst [vmem:[#allocation62_spill] sm:$0xff] %v6234_v5  ;;  %v6238_v33 = vld [vmem:[#allocation11 + $0x30] sm:$0xff]  ;;  %v6242_v41 = vld [vmem:[#allocation11 + $0x20] sm:$0xff] }
 0x1cd   :  { %1585 = vmatprep.subr.mxu0 %v6226_v28  ;;  %4413 = vmatprep.subr.mxu1 %v7897_v42  ;;  %7949 = vst [vmem:[#allocation63_spill] sm:$0xff] %v6238_v33  ;;  %7950 = vst [vmem:[#allocation64_spill] sm:$0xff] %v6242_v41  ;;  %v6246_v42 = vld [vmem:[#allocation11 + $0x18] sm:$0xff] }
 0x1ce   :  { %1586 = vmatpush1.msra.mxu0 %v6230_v60  ;;  %4414 = vmatpush3.msra.mxu1 %v7898_v43  ;;  %7951 = vst [vmem:[#allocation65_spill] sm:$0xff] %v6246_v42  ;;  %v6250_v43 = vld [vmem:[#allocation11 + $0x8] sm:$0xff] }
 0x1cf   :  { %1587 = vmatprep.subr.mxu0 %v6234_v5  ;;  %4415 = vmatprep.subr.mxu1 %v7899_v44  ;;  %7952 = vst [vmem:[#allocation66_spill] sm:$0xff] %v6250_v43  ;;  %v6254_v44 = vld [vmem:[#allocation11] sm:$0xff] }
 0x1d0   :  { %1588 = vmatpush1.msra.mxu0 %v6238_v33  ;;  %4416 = vmatpush3.msra.mxu1 %v7900_v45  ;;  %7953 = vst [vmem:[#allocation67_spill] sm:$0xff] %v6254_v44  ;;  %v6258_v45 = vld [vmem:[#allocation11 + $0x2f0] sm:$0xff] }
 0x1d1   :  { %1589 = vmatprep.subr.mxu0 %v6242_v41  ;;  %4417 = vmatprep.subr.mxu1 %v7901_v46  ;;  %7954 = vst [vmem:[#allocation68_spill] sm:$0xff] %v6258_v45  ;;  %v6261_v46 = vld [vmem:[#allocation11 + $0x170] sm:$0xff] }
 0x1d2   :  { %1590 = vmatpush1.msra.mxu0 %v6246_v42  ;;  %4418 = vmatpush3.msra.mxu1 %v7902_v47  ;;  %7955 = vst [vmem:[#allocation69_spill] sm:$0xff] %v6261_v46  ;;  %v6264_v47 = vld [vmem:[#allocation11 + $0x2e8] sm:$0xff] }
 0x1d3   :  { %1591 = vmatprep.subr.mxu0 %v6250_v43  ;;  %4419 = vmatprep.subr.mxu1 %v7903_v48  ;;  %7956 = vst [vmem:[#allocation70_spill] sm:$0xff] %v6264_v47  ;;  %v6267_v43 = vld [vmem:[#allocation11 + $0x2d8] sm:$0xff]  ;;  %v6270_v48 = vld [vmem:[#allocation11 + $0x2d0] sm:$0xff] }
 0x1d4   :  { %1592 = vmatpush1.msra.mxu0 %v6254_v44  ;;  %4420 = vmatpush3.msra.mxu1 %v7904_v49  ;;  %7957 = vst [vmem:[#allocation71_spill] sm:$0xff] %v6267_v43  ;;  %7958 = vst [vmem:[#allocation72_spill] sm:$0xff] %v6270_v48  ;;  %v6273_v49 = vld [vmem:[#allocation11 + $0x2c0] sm:$0xff] }
 0x1d5   :  { %1593 = vmatprep.subr.mxu0 %v6258_v45  ;;  %1972 = vmatprep.subr.mxu1 %v6261_v46  ;;  %7959 = vst [vmem:[#allocation73_spill] sm:$0xff] %v6273_v49 }
 0x1d6   :  { %1594 = vmatpush2.msra.mxu0 %v6264_v47 }
 0x1d7   :  { %1595 = vmatprep.subr.mxu0 %v6267_v43 }
 0x1d8   :  { %1596 = vmatpush2.msra.mxu0 %v6270_v48 }
 0x1d9   :  { %1597 = vmatprep.subr.mxu0 %v6273_v49 }
 0x1da   :  { %1598 = vmatpush2.msra.mxu0 %v7887_v32 }
 0x1db   :  { %1599 = vmatprep.subr.mxu0 %v7889_v34 }
 0x1dc   :  { %1600 = vmatpush2.msra.mxu0 %v7891_v36  ;;  %v6320_v36 = vld [vmem:[#allocation2 + $0x49] ss:$8 sm:$0x7] }
 0x1dd   :  { %1601 = vmatprep.subr.mxu0 %v7893_v38 }
 0x1de   :  { %1602 = vmatpush2.msra.mxu0 %v5734_v0  ;;  %v7960_v0 = vld [vmem:[#allocation48_spill] sm:$0xff] }
 0x1df   :  { %1603 = vmatprep.subr.mxu0 %v5740_v15 }
 0x1e0   :  { %1604 = vmatpush2.msra.mxu0 %v5746_v4 }
 0x1e1   :  { %1605 = vmatprep.subr.mxu0 %v5752_v63 }
 0x1e2   :  { %1606 = vmatpush2.msra.mxu0 %v5756_v8  ;;  %v6309_v8 = vld [vmem:[#allocation2 + $0x1] ss:$8 sm:$0x7] }
 0x1e3   :  { %1607 = vmatprep.subr.mxu0 %v5761_v12  ;;  %v1360_v38 = vrot.slane %v6309_v8, 1 }
 0x1e4   :  { %1608 = vmatpush2.msra.mxu0 %v5765_v61 }
 0x1e5   :  { %1609 = vmatprep.subr.mxu0 %v5768_v2  ;;  %v7961_v2 = vld [vmem:[#allocation49_spill] sm:$0xff] }
 0x1e6   :  { %1610 = vmatpush2.msra.mxu0 %v5772_v13  ;;  %v6303_v13 = vld [vmem:[#allocation11 + $0x2f8] sm:$0xff] }
 0x1e7   :  { %1611 = vmatprep.subr.mxu0 %v5776_v6  ;;  %7963 = vst [vmem:[#allocation48_spill] sm:$0xff] %v6303_v13 }
 0x1e8   :  { %1612 = vmatpush2.msra.mxu0 %v5780_v3  ;;  %v7962_v3 = vld [vmem:[#allocation50_spill] sm:$0xff] }
 0x1e9   :  { %1613 = vmatprep.subr.mxu0 %v5784_v14 }
 0x1ea   :  { %1614 = vmatpush2.msra.mxu0 %v5788_v16 }
 0x1eb   :  { %1615 = vmatprep.subr.mxu0 %v5792_v18 }
 0x1ec   :  { %1616 = vmatpush2.msra.mxu0 %v5796_v19 }
 0x1ed   :  { %1617 = vmatprep.subr.mxu0 %v5800_v20  ;;  %v6313_v20 = vld [vmem:[#allocation2 + $0x19] ss:$8 sm:$0x7] }
 0x1ee   :  { %1618 = vmatpush2.msra.mxu0 %v5804_v21  ;;  %v6315_v21 = vld [vmem:[#allocation2 + $0x31] ss:$8 sm:$0x7] }
 0x1ef   :  { %1619 = vmatprep.subr.mxu0 %v5808_v22 }
 0x1f0   :  { %1620 = vmatpush2.msra.mxu0 %v5812_v23 }
 0x1f1   :  { %1621 = vmatprep.subr.mxu0 %v5816_v24 }
 0x1f2   :  { %1622 = vmatpush2.msra.mxu0 %v7960_v0 }
 0x1f3   :  { %1623 = vmatprep.subr.mxu0 %v7961_v2 }
 0x1f4   :  { %1624 = vmatpush2.msra.mxu0 %v7962_v3 }
 0x1f5   :  { %4424 = vmatprep.subr.mxu0 %v6303_v13 }
 0x275   :  { %v1216_v14 = vpop.f32.mrf.mxu1  ;;  %v4386_v13 = vpop.f32.mrf.mxu0 }
 0x276   :  { %v1306_v15 = vrot.slane %v1216_v14, %v5935_v59 }
 0x277   :  { %v1218_v61 = vpop.f32.mrf.mxu1  ;;  %v4387_v48 = vpop.f32.mrf.mxu0 }
 0x278   :  { %v1307_v63 = vcombine.high %v1306_v15, %v1306_v15  ;;  %v1314_v4 = vrot.slane %v1306_v15, %v5935_v59  ;;  %v1375_v6 = vrot.slane %v1218_v61, %v5935_v59  ;;  %v1361_v61 = vrot.slane %v6313_v20, 1 }
 0x27a   :  { %v1321_v12 = vrot.slane %v1307_v63, %v5935_v59  ;;  %v1322_v16 = vcombine.high %v1314_v4, %v1314_v4  ;;  %v1328_v18 = vadd.f32 %v1314_v4, %v6309_v8  ;;  %v1376_v19 = vcombine.high %v1375_v6, %v1375_v6 }
 0x27b   :  { %v1383_v22 = vrot.slane %v1375_v6, %v5935_v59  ;;  %v1362_v6 = vrot.slane %v6315_v21, 1 }
 0x27c   :  { %v1323_v23 = vcombine.high %v1321_v12, %v1321_v12  ;;  %v1329_v24 = vadd.f32 %v1321_v12, %v6313_v20  ;;  %v1330_v32 = vadd.f32 %v1322_v16, %v6315_v21  ;;  %v4242_v34 = vmul.f32 -1.442695, %v1328_v18 }
 0x27d   :  { %v1390_v0 = vrot.slane %v1376_v19, %v5935_v59  ;;  %v1391_v2 = vcombine.high %v1383_v22, %v1383_v22  ;;  %v1397_v12 = vadd.f32 %v1383_v22, %v1360_v38  ;;  %v1363_v16 = vrot.slane %v6320_v36, 1 }
 0x27e   :  { %v1331_v3 = vadd.f32 %v1323_v23, %v6320_v36  ;;  %4753 = vpow2.f32 %v4242_v34  ;;  %v4243_v14 = vmul.f32 -1.442695, %v1329_v24  ;;  %v4244_v15 = vmul.f32 -1.442695, %v1330_v32 }
 0x27f   :  { %v1392_v63 = vcombine.high %v1390_v0, %v1390_v0  ;;  %v1398_v18 = vadd.f32 %v1390_v0, %v1361_v61  ;;  %v1399_v19 = vadd.f32 %v1391_v2, %v1362_v6  ;;  %v4246_v23 = vmul.f32 -1.442695, %v1397_v12  ;;  %v7964_v0 = vld [vmem:[#allocation27_spill] sm:$0xff] }
 0x280   :  { %4755 = vpow2.f32 %v4243_v14  ;;  %v4245_v4 = vmul.f32 -1.442695, %v1331_v3  ;;  %v4388_v3 = vadd.f32 %v4387_v48, %v4386_v13 }
 0x281   :  { %4757 = vpow2.f32 %v4244_v15  ;;  %v1400_v49 = vadd.f32 %v1392_v63, %v1363_v16  ;;  %v4247_v34 = vmul.f32 -1.442695, %v1398_v18  ;;  %v4248_v24 = vmul.f32 -1.442695, %v1399_v19 }
 0x282   :  { %4759 = vpow2.f32 %v4245_v4  ;;  %v1425_v2 = vadd.f32 %v4388_v3, %v7964_v0 }
 0x283   :  { %v4249_v32 = vmul.f32 -1.442695, %v1400_v49  ;;  %4761 = vpow2.f32 %v4246_v23 }
 0x284   :  { %4763 = vpow2.f32 %v4247_v34  ;;  %v1433_v49 = vrot.slane %v1425_v2, %v5935_v59 }
 0x285   :  { %4765 = vpow2.f32 %v4248_v24 }
 0x286   :  { %4767 = vpow2.f32 %v4249_v32  ;;  %v1434_v48 = vcombine.high %v1433_v49, %v1433_v49  ;;  %v1441_v23 = vrot.slane %v1433_v49, %v5935_v59 }
 0x288   :  { %v1448_v24 = vrot.slane %v1434_v48, %v5935_v59  ;;  %v1462_v48 = vrot.slane %v6320_v36, 2 }
 0x28b   :  { %v4754_v14 = vpop.eup %4753 }
 0x28c   :  { %v1344_v22 = vadd.f32 1.0, %v4754_v14 }
 0x28d   :  { %v4756_v38 = vpop.eup %4755 }
 0x28e   :  { %v4758_v15 = vpop.eup %4757  ;;  %v1345_v43 = vadd.f32 1.0, %v4756_v38  ;;  %4769 = vrcp.f32 %v1344_v22  ;;  %v1460_v38 = vrot.slane %v6313_v20, 2 }
 0x28f   :  { %v4760_v61 = vpop.eup %4759  ;;  %v1346_v63 = vadd.f32 1.0, %v4758_v15  ;;  %v1449_v15 = vcombine.high %v1441_v23, %v1441_v23 }
 0x290   :  { %v1347_v4 = vadd.f32 1.0, %v4760_v61  ;;  %4771 = vrcp.f32 %v1345_v43  ;;  %v4762_v6 = vpop.eup %4761  ;;  %v1459_v43 = vrot.slane %v6309_v8, 2  ;;  %v1450_v61 = vcombine.high %v1448_v24, %v1448_v24 }
 0x291   :  { %4773 = vrcp.f32 %v1346_v63  ;;  %v4764_v12 = vpop.eup %4763  ;;  %v1413_v18 = vadd.f32 1.0, %v4762_v6  ;;  %v1461_v6 = vrot.slane %v6315_v21, 2 }
 0x292   :  { %4775 = vrcp.f32 %v1347_v4  ;;  %v4766_v13 = vpop.eup %4765  ;;  %v1414_v19 = vadd.f32 1.0, %v4764_v12 }
 0x293   :  { %v4768_v16 = vpop.eup %4767  ;;  %v1415_v34 = vadd.f32 1.0, %v4766_v13  ;;  %4777 = vrcp.f32 %v1413_v18 }
 0x294   :  { %v1416_v3 = vadd.f32 1.0, %v4768_v16  ;;  %4779 = vrcp.f32 %v1414_v19 }
 0x295   :  { %4781 = vrcp.f32 %v1415_v34 }
 0x296   :  { %4783 = vrcp.f32 %v1416_v3 }
 0x29b   :  { %v4770_v32 = vpop.eup %4769 }
 0x29c   :  { %v1455_v14 = vmul.f32 %v4770_v32, %v1441_v23 }
 0x29d   :  { %v4772_v22 = vpop.eup %4771 }
 0x29e   :  { %v4774_v2 = vpop.eup %4773  ;;  %v1456_v63 = vmul.f32 %v4772_v22, %v1448_v24  ;;  %v1467_v4 = vadd.f32 %v1459_v43, %v1455_v14 }
 0x29f   :  { %v4776_v49 = vpop.eup %4775  ;;  %v1457_v12 = vmul.f32 %v4774_v2, %v1449_v15 }
 0x2a0   :  { %v1458_v8 = vmul.f32 %v4776_v49, %v1450_v61  ;;  %v1468_v13 = vadd.f32 %v1460_v38, %v1456_v63  ;;  %4785 = vtanh.f32 %v1467_v4  ;;  %v4778_v20 = vpop.eup %4777 }
 0x2a1   :  { %v1469_v16 = vadd.f32 %v1461_v6, %v1457_v12  ;;  %v4780_v19 = vpop.eup %4779  ;;  %v1475_v24 = vsub.f32 1.0, %v4778_v20  ;;  %v1483_v3 = vmul.f32 %v4778_v20, %v6045_v11 }
 0x2a2   :  { %v1470_v18 = vadd.f32 %v1462_v48, %v1458_v8  ;;  %4787 = vtanh.f32 %v1468_v13  ;;  %v4782_v23 = vpop.eup %4781  ;;  %v1476_v43 = vsub.f32 1.0, %v4780_v19  ;;  %v1484_v2 = vmul.f32 %v4780_v19, %v6058_v57 }
 0x2a3   :  { %4789 = vtanh.f32 %v1469_v16  ;;  %v4784_v34 = vpop.eup %4783  ;;  %v1477_v36 = vsub.f32 1.0, %v4782_v23  ;;  %v1485_v49 = vmul.f32 %v4782_v23, %v6061_v40 }
 0x2a4   :  { %4791 = vtanh.f32 %v1470_v18  ;;  %v1478_v38 = vsub.f32 1.0, %v4784_v34  ;;  %v1486_v12 = vmul.f32 %v4784_v34, %v6065_v7  ;;  %v7965_v18 = vld [vmem:[#allocation35_spill] sm:$0xff] }
 0x2ad   :  { %v4786_v32 = vpop.eup %4785 }
 0x2ae   :  { %v1479_v21 = vmul.f32 %v4786_v32, %v1475_v24 }
 0x2af   :  { %v4788_v14 = vpop.eup %4787 }
 0x2b0   :  { %v4790_v22 = vpop.eup %4789  ;;  %v1480_v15 = vmul.f32 %v4788_v14, %v1476_v43  ;;  %v6338_v61 = vadd.f32 %v1483_v3, %v1479_v21 }
 0x2b1   :  { %v4792_v63 = vpop.eup %4791  ;;  %v1481_v4 = vmul.f32 %v4790_v22, %v1477_v36 }
 0x2b2   :  { %v1482_v6 = vmul.f32 %v4792_v63, %v1478_v38  ;;  %v6342_v48 = vadd.f32 %v1484_v2, %v1480_v15  ;;  %1491 = vst [vmem:[#allocation3 + $0x1] sm:$0x1] %v6338_v61  ;;  %v1499_v8 = vmul.f32 %v6338_v61, %v6035_v10  ;;  %v1495_v40 = vmul.f32 %v6338_v61, %v6031_v31  ;;  %v7966_v63 = vld [vmem:[#allocation28_spill] sm:$0xff] }
 0x2b3   :  { %v6345_v11 = vadd.f32 %v1485_v49, %v1481_v4  ;;  %v7967_v4 = vld [vmem:[#allocation37_spill] sm:$0xff] }
 0x2b4   :  { %v6349_v13 = vadd.f32 %v1486_v12, %v1482_v6  ;;  %1492 = vst [vmem:[#allocation3 + $0x9] sm:$0x1] %v6342_v48  ;;  %v1500_v57 = vmul.f32 %v6342_v48, %v6043_v29  ;;  %v1496_v7 = vmul.f32 %v6342_v48, %v6039_v51  ;;  %v7968_v49 = vld [vmem:[#allocation29_spill] sm:$0xff]  ;;  %v7969_v6 = vld [vmem:[#allocation39_spill] sm:$0xff]  ;;  %v7970_v12 = vld [vmem:[#allocation30_spill] sm:$0xff] }
 0x2b5   :  { %1493 = vst [vmem:[#allocation4 + $0x6] sm:$0x1] %v6345_v11  ;;  %v1501_v16 = vmul.f32 %v6345_v11, %v6053_v62  ;;  %v1497_v20 = vmul.f32 %v6345_v11, %v7965_v18 }
 0x2b6   :  { %1494 = vst [vmem:[#allocation4 + $0xe] sm:$0x1] %v6349_v13  ;;  %v1502_v19 = vmul.f32 %v6349_v13, %v6056_v55  ;;  %v1536_v23 = vcombine.low %v1499_v8, %v1500_v57  ;;  %v1498_v34 = vmul.f32 %v6349_v13, %v6027_v1  ;;  %v1507_v24 = vcombine.low %v1495_v40, %v1496_v7  ;;  %v7971_v8 = vld [vmem:[#allocation41_spill] sm:$0xff]  ;;  %v7972_v57 = vld [vmem:[#allocation31_spill] sm:$0xff]  ;;  %v7974_v7 = vld [vmem:[#allocation32_spill] sm:$0xff] }
 0x2b7   :  { %v7973_v40 = vld [vmem:[#allocation43_spill] sm:$0xff] }
 0x2b8   :  { %v1537_v32 = vcombine.low %v1501_v16, %v1502_v19  ;;  %v1508_v43 = vcombine.low %v1497_v20, %v1498_v34  ;;  %v1544_v21 = vrot.slane %v1536_v23, %v5935_v59  ;;  %v1515_v14 = vrot.slane %v1507_v24, %v5935_v59  ;;  %v7975_v16 = vld [vmem:[#allocation33_spill] sm:$0xff]  ;;  %v7976_v20 = vld [vmem:[#allocation34_spill] sm:$0xff]  ;;  %v7977_v19 = vld [vmem:[#allocation36_spill] sm:$0xff] }
 0x2b9   :  { %v7978_v23 = vld [vmem:[#allocation38_spill] sm:$0xff]  ;;  %v7979_v34 = vld [vmem:[#allocation40_spill] sm:$0xff] }
 0x2ba   :  { %v1551_v3 = vrot.slane %v1537_v32, %v5935_v59  ;;  %v1522_v36 = vrot.slane %v1508_v43, %v5935_v59  ;;  %v7980_v24 = vld [vmem:[#allocation42_spill] sm:$0xff]  ;;  %v7981_v32 = vld [vmem:[#allocation44_spill] sm:$0xff]  ;;  %v7982_v43 = vld [vmem:[#allocation45_spill] sm:$0xff] }
 0x2bc   :  { %v1552_v22 = vcombine.low %v1544_v21, %v1551_v3  ;;  %v1523_v38 = vcombine.low %v1515_v14, %v1522_v36  ;;  %v7983_v21 = vld [vmem:[#allocation46_spill] sm:$0xff]  ;;  %v7984_v3 = vld [vmem:[#allocation47_spill] sm:$0xff]  ;;  %v7985_v14 = vld [vmem:[#allocation25_spill] sm:$0xff] }
 0x2bd   :  { %v7986_v36 = vld [vmem:[#allocation23_spill] sm:$0xff] }
 0x2be   :  { %v1559_v15 = vrot.slane %v1552_v22, %v5935_v59  ;;  %v1530_v2 = vrot.slane %v1523_v38, %v5935_v59  ;;  %v7987_v22 = vld [vmem:[#allocation24_spill] sm:$0xff]  ;;  %v7988_v38 = vld [vmem:[#allocation26_spill] sm:$0xff] }
 0x2c0   :  { %1625 = vmatprep.mubr.f32.mxu0 %v1559_v15  ;;  %1696 = vmatprep.mubr.f32.mxu1 %v1559_v15  ;;  %v7989_v15 = vld [vmem:[#allocation51_spill] sm:$0xff] }
 0x2c1   :  { %1626 = vmatmul.mubr.f32.vlgmr.msra.gmra.mxu0 %v1530_v2  ;;  %1697 = vmatmul.mubr.f32.vlgmr.msra.gmra.mxu1 %v1530_v2  ;;  %v7990_v2 = vld [vmem:[#allocation52_spill] sm:$0xff] }
 0x2c2   :  { %1973 = vmatpush1.msra.mxu1 %v6090_v54  ;;  %4425 = vmatpush3.msra.mxu0 %v6093_v35 }
 0x2c3   :  { %1974 = vmatprep.subr.mxu1 %v6096_v39  ;;  %4426 = vmatprep.subr.mxu0 %v6099_v26 }
 0x2c4   :  { %1975 = vmatpush1.msra.mxu1 %v6102_v27  ;;  %4427 = vmatpush3.msra.mxu0 %v6105_v52 }
 0x2c5   :  { %1976 = vmatprep.subr.mxu1 %v6108_v37  ;;  %4428 = vmatprep.subr.mxu0 %v6111_v58 }
 0x2c6   :  { %1977 = vmatpush1.msra.mxu1 %v6114_v53  ;;  %4429 = vmatpush3.msra.mxu0 %v6117_v25 }
 0x2c7   :  { %1978 = vmatprep.subr.mxu1 %v6120_v30  ;;  %4430 = vmatprep.subr.mxu0 %v6123_v9 }
 0x2c8   :  { %1979 = vmatpush1.msra.mxu1 %v6126_v17  ;;  %4431 = vmatpush3.msra.mxu0 %v7966_v63 }
 0x2c9   :  { %1980 = vmatprep.subr.mxu1 %v7967_v4  ;;  %4432 = vmatprep.subr.mxu0 %v7968_v49 }
 0x2ca   :  { %1981 = vmatpush1.msra.mxu1 %v7969_v6  ;;  %4433 = vmatpush3.msra.mxu0 %v7970_v12 }
 0x2cb   :  { %1982 = vmatprep.subr.mxu1 %v7971_v8  ;;  %4434 = vmatprep.subr.mxu0 %v7972_v57 }
 0x2cc   :  { %1983 = vmatpush1.msra.mxu1 %v7973_v40  ;;  %4435 = vmatpush3.msra.mxu0 %v7974_v7 }
 0x2cd   :  { %1984 = vmatprep.subr.mxu1 %v7975_v16  ;;  %4436 = vmatprep.subr.mxu0 %v7976_v20 }
 0x2ce   :  { %1985 = vmatpush1.msra.mxu1 %v7977_v19  ;;  %4437 = vmatpush3.msra.mxu0 %v7978_v23 }
 0x2cf   :  { %1986 = vmatprep.subr.mxu1 %v7979_v34  ;;  %4438 = vmatprep.subr.mxu0 %v7980_v24  ;;  %v7991_v24 = vld [vmem:[#allocation53_spill] sm:$0xff] }
 0x2d0   :  { %1987 = vmatpush1.msra.mxu1 %v7981_v32  ;;  %4439 = vmatpush3.msra.mxu0 %v7982_v43  ;;  %v7992_v32 = vld [vmem:[#allocation54_spill] sm:$0xff] }
 0x2d1   :  { %1988 = vmatprep.subr.mxu1 %v7983_v21  ;;  %4440 = vmatprep.subr.mxu0 %v7984_v3  ;;  %v7993_v21 = vld [vmem:[#allocation56_spill] sm:$0xff]  ;;  %v7994_v3 = vld [vmem:[#allocation57_spill] sm:$0xff] }
 0x2d2   :  { %1989 = vmatpush1.msra.mxu1 %v7985_v14  ;;  %4441 = vmatpush3.msra.mxu0 %v7986_v36  ;;  %v7995_v36 = vld [vmem:[#allocation59_spill] sm:$0xff] }
 0x2d3   :  { %1990 = vmatprep.subr.mxu1 %v7987_v22  ;;  %4442 = vmatprep.subr.mxu0 %v7988_v38  ;;  %v6419_v22 = vld [vmem:[#allocation11 + $0x70] sm:$0xff] }
 0x2d4   :  { %1991 = vmatpush1.msra.mxu1 %v7989_v15  ;;  %4443 = vmatpush3.msra.mxu0 %v7990_v2  ;;  %7996 = vst [vmem:[#allocation49_spill] sm:$0xff] %v6419_v22  ;;  %v6423_v2 = vld [vmem:[#allocation11 + $0x1d8] sm:$0xff] }
 0x2d5   :  { %1992 = vmatprep.subr.mxu1 %v7991_v24  ;;  %4444 = vmatprep.subr.mxu0 %v7992_v32  ;;  %7997 = vst [vmem:[#allocation50_spill] sm:$0xff] %v6423_v2 }
 0x2d6   :  { %1993 = vmatpush1.msra.mxu1 %v6210_v56  ;;  %4445 = vmatpush3.msra.mxu0 %v7993_v21  ;;  %v6427_v56 = vld [vmem:[#allocation11 + $0x58] sm:$0xff] }
 0x2d7   :  { %1994 = vmatprep.subr.mxu1 %v7994_v3  ;;  %4446 = vmatprep.subr.mxu0 %v6219_v50  ;;  %7998 = vst [vmem:[#allocation27_spill] sm:$0xff] %v6427_v56  ;;  %v6431_v50 = vld [vmem:[#allocation11 + $0x1c0] sm:$0xff]  ;;  %v6556_v3 = vld [vmem:[#allocation2 + $0x4a] ss:$8 sm:$0x7] }
 0x2d8   :  { %1995 = vmatpush1.msra.mxu1 %v7995_v36  ;;  %4447 = vmatpush3.msra.mxu0 %v6419_v22  ;;  %7999 = vst [vmem:[#allocation35_spill] sm:$0xff] %v6431_v50  ;;  %v6435_v22 = vld [vmem:[#allocation11 + $0x40] sm:$0xff]  ;;  %v1774_v14 = vrot.slane %v6556_v3, 1 }
 0x2d9   :  { %1996 = vmatprep.subr.mxu1 %v6226_v28  ;;  %4448 = vmatprep.subr.mxu0 %v6423_v2  ;;  %8000 = vst [vmem:[#allocation28_spill] sm:$0xff] %v6435_v22  ;;  %v6439_v2 = vld [vmem:[#allocation11 + $0x1a8] sm:$0xff] }
 0x2da   :  { %1997 = vmatpush1.msra.mxu1 %v6230_v60  ;;  %4449 = vmatpush3.msra.mxu0 %v6427_v56  ;;  %8001 = vst [vmem:[#allocation37_spill] sm:$0xff] %v6439_v2  ;;  %v6443_v56 = vld [vmem:[#allocation11 + $0x28] sm:$0xff] }
 0x2db   :  { %1998 = vmatprep.subr.mxu1 %v6234_v5  ;;  %4450 = vmatprep.subr.mxu0 %v6431_v50  ;;  %8002 = vst [vmem:[#allocation29_spill] sm:$0xff] %v6443_v56  ;;  %v8003_v5 = vld [vmem:[#allocation66_spill] sm:$0xff] }
 0x2dc   :  { %1999 = vmatpush1.msra.mxu1 %v6238_v33  ;;  %4451 = vmatpush3.msra.mxu0 %v6435_v22  ;;  %v6447_v50 = vld [vmem:[#allocation11 + $0x190] sm:$0xff] }
 0x2dd   :  { %2000 = vmatprep.subr.mxu1 %v6242_v41  ;;  %4452 = vmatprep.subr.mxu0 %v6439_v2  ;;  %8004 = vst [vmem:[#allocation39_spill] sm:$0xff] %v6447_v50  ;;  %v6451_v22 = vld [vmem:[#allocation11 + $0x10] sm:$0xff]  ;;  %v6460_v2 = vld [vmem:[#allocation11 + $0x2b8] sm:$0xff] }
 0x2de   :  { %2001 = vmatpush1.msra.mxu1 %v6246_v42  ;;  %4453 = vmatpush3.msra.mxu0 %v6443_v56  ;;  %8005 = vst [vmem:[#allocation30_spill] sm:$0xff] %v6451_v22  ;;  %v8006_v42 = vld [vmem:[#allocation71_spill] sm:$0xff]  ;;  %v8007_v56 = vld [vmem:[#allocation72_spill] sm:$0xff]  ;;  %8009 = vst [vmem:[#allocation41_spill] sm:$0xff] %v6460_v2 }
 0x2df   :  { %2002 = vmatprep.subr.mxu1 %v8003_v5  ;;  %4454 = vmatprep.subr.mxu0 %v6447_v50  ;;  %v8008_v5 = vld [vmem:[#allocation73_spill] sm:$0xff] }
 0x2e0   :  { %2003 = vmatpush1.msra.mxu1 %v6254_v44  ;;  %4455 = vmatpush3.msra.mxu0 %v6451_v22  ;;  %v6463_v44 = vld [vmem:[#allocation11 + $0x2a8] sm:$0xff]  ;;  %v6466_v22 = vld [vmem:[#allocation11 + $0x2a0] sm:$0xff] }
 0x2e1   :  { %2004 = vmatprep.subr.mxu1 %v6258_v45  ;;  %2383 = vmatprep.subr.mxu0 %v6261_v46  ;;  %8010 = vst [vmem:[#allocation31_spill] sm:$0xff] %v6463_v44  ;;  %8011 = vst [vmem:[#allocation43_spill] sm:$0xff] %v6466_v22  ;;  %v6469_v46 = vld [vmem:[#allocation11 + $0x290] sm:$0xff] }
 0x2e2   :  { %2005 = vmatpush2.msra.mxu1 %v6264_v47  ;;  %8012 = vst [vmem:[#allocation32_spill] sm:$0xff] %v6469_v46 }
 0x2e3   :  { %2006 = vmatprep.subr.mxu1 %v8006_v42  ;;  %v6472_v42 = vld [vmem:[#allocation11 + $0x288] sm:$0xff] }
 0x2e4   :  { %2007 = vmatpush2.msra.mxu1 %v8007_v56  ;;  %8013 = vst [vmem:[#allocation33_spill] sm:$0xff] %v6472_v42 }
 0x2e5   :  { %2008 = vmatprep.subr.mxu1 %v8008_v5  ;;  %v6475_v5 = vld [vmem:[#allocation11 + $0x278] sm:$0xff] }
 0x2e6   :  { %2009 = vmatpush2.msra.mxu1 %v6460_v2  ;;  %8014 = vst [vmem:[#allocation74_spill] sm:$0xff] %v6475_v5  ;;  %v6478_v2 = vld [vmem:[#allocation11 + $0x270] sm:$0xff] }
 0x2e7   :  { %2010 = vmatprep.subr.mxu1 %v6463_v44  ;;  %8015 = vst [vmem:[#allocation75_spill] sm:$0xff] %v6478_v2  ;;  %v6481_v44 = vld [vmem:[#allocation11 + $0x260] sm:$0xff] }
 0x2e8   :  { %2011 = vmatpush2.msra.mxu1 %v6466_v22  ;;  %8016 = vst [vmem:[#allocation76_spill] sm:$0xff] %v6481_v44  ;;  %v6484_v22 = vld [vmem:[#allocation11 + $0x258] sm:$0xff] }
 0x2e9   :  { %2012 = vmatprep.subr.mxu1 %v6469_v46  ;;  %8017 = vst [vmem:[#allocation77_spill] sm:$0xff] %v6484_v22  ;;  %v6487_v46 = vld [vmem:[#allocation11 + $0x248] sm:$0xff] }
 0x2ea   :  { %2013 = vmatpush2.msra.mxu1 %v6472_v42  ;;  %8018 = vst [vmem:[#allocation78_spill] sm:$0xff] %v6487_v46  ;;  %v6490_v42 = vld [vmem:[#allocation11 + $0x240] sm:$0xff] }
 0x2eb   :  { %2014 = vmatprep.subr.mxu1 %v6475_v5  ;;  %8019 = vst [vmem:[#allocation79_spill] sm:$0xff] %v6490_v42  ;;  %v6493_v5 = vld [vmem:[#allocation11 + $0x230] sm:$0xff] }
 0x2ec   :  { %2015 = vmatpush2.msra.mxu1 %v6478_v2  ;;  %8020 = vst [vmem:[#allocation80_spill] sm:$0xff] %v6493_v5  ;;  %v6496_v2 = vld [vmem:[#allocation11 + $0x228] sm:$0xff] }
 0x2ed   :  { %2016 = vmatprep.subr.mxu1 %v6481_v44  ;;  %8021 = vst [vmem:[#allocation81_spill] sm:$0xff] %v6496_v2  ;;  %v6499_v44 = vld [vmem:[#allocation11 + $0x218] sm:$0xff] }
 0x2ee   :  { %2017 = vmatpush2.msra.mxu1 %v6484_v22  ;;  %8022 = vst [vmem:[#allocation82_spill] sm:$0xff] %v6499_v44  ;;  %v6502_v22 = vld [vmem:[#allocation11 + $0x210] sm:$0xff] }
 0x2ef   :  { %2018 = vmatprep.subr.mxu1 %v6487_v46  ;;  %8023 = vst [vmem:[#allocation83_spill] sm:$0xff] %v6502_v22  ;;  %v6505_v46 = vld [vmem:[#allocation11 + $0x200] sm:$0xff] }
 0x2f0   :  { %2019 = vmatpush2.msra.mxu1 %v6490_v42  ;;  %8024 = vst [vmem:[#allocation84_spill] sm:$0xff] %v6505_v46  ;;  %v6508_v42 = vld [vmem:[#allocation11 + $0x1f8] sm:$0xff] }
 0x2f1   :  { %2020 = vmatprep.subr.mxu1 %v6493_v5  ;;  %8025 = vst [vmem:[#allocation85_spill] sm:$0xff] %v6508_v42  ;;  %v6511_v5 = vld [vmem:[#allocation11 + $0x1e8] sm:$0xff] }
 0x2f2   :  { %2021 = vmatpush2.msra.mxu1 %v6496_v2  ;;  %8026 = vst [vmem:[#allocation86_spill] sm:$0xff] %v6511_v5  ;;  %v6514_v2 = vld [vmem:[#allocation11 + $0x1e0] sm:$0xff] }
 0x2f3   :  { %2022 = vmatprep.subr.mxu1 %v6499_v44  ;;  %8027 = vst [vmem:[#allocation87_spill] sm:$0xff] %v6514_v2  ;;  %v6517_v44 = vld [vmem:[#allocation11 + $0x1d0] sm:$0xff] }
 0x2f4   :  { %2023 = vmatpush2.msra.mxu1 %v6502_v22  ;;  %8028 = vst [vmem:[#allocation88_spill] sm:$0xff] %v6517_v44  ;;  %v6520_v22 = vld [vmem:[#allocation11 + $0x1c8] sm:$0xff] }
 0x2f5   :  { %2024 = vmatprep.subr.mxu1 %v6505_v46  ;;  %8029 = vst [vmem:[#allocation89_spill] sm:$0xff] %v6520_v22  ;;  %v6523_v46 = vld [vmem:[#allocation11 + $0x1b8] sm:$0xff] }
 0x2f6   :  { %2025 = vmatpush2.msra.mxu1 %v6508_v42  ;;  %8030 = vst [vmem:[#allocation90_spill] sm:$0xff] %v6523_v46  ;;  %v6526_v42 = vld [vmem:[#allocation11 + $0x1b0] sm:$0xff] }
 0x2f7   :  { %2026 = vmatprep.subr.mxu1 %v6511_v5  ;;  %8031 = vst [vmem:[#allocation91_spill] sm:$0xff] %v6526_v42  ;;  %v6529_v5 = vld [vmem:[#allocation11 + $0x1a0] sm:$0xff] }
 0x2f8   :  { %2027 = vmatpush2.msra.mxu1 %v6514_v2  ;;  %8032 = vst [vmem:[#allocation92_spill] sm:$0xff] %v6529_v5  ;;  %v6532_v2 = vld [vmem:[#allocation11 + $0x198] sm:$0xff] }
 0x2f9   :  { %2028 = vmatprep.subr.mxu1 %v6517_v44  ;;  %8033 = vst [vmem:[#allocation93_spill] sm:$0xff] %v6532_v2  ;;  %v6535_v44 = vld [vmem:[#allocation11 + $0x188] sm:$0xff] }
 0x2fa   :  { %2029 = vmatpush2.msra.mxu1 %v6520_v22  ;;  %8034 = vst [vmem:[#allocation94_spill] sm:$0xff] %v6535_v44  ;;  %v6538_v22 = vld [vmem:[#allocation11 + $0x180] sm:$0xff] }
 0x2fb   :  { %2030 = vmatprep.subr.mxu1 %v6523_v46  ;;  %8035 = vst [vmem:[#allocation95_spill] sm:$0xff] %v6538_v22  ;;  %v8036_v46 = vld [vmem:[#allocation48_spill] sm:$0xff] }
 0x2fc   :  { %2031 = vmatpush2.msra.mxu1 %v6526_v42 }
 0x2fd   :  { %2032 = vmatprep.subr.mxu1 %v6529_v5 }
 0x2fe   :  { %2033 = vmatpush2.msra.mxu1 %v6532_v2  ;;  %v6545_v2 = vld [vmem:[#allocation2 + $0x2] ss:$8 sm:$0x7] }
 0x2ff   :  { %2034 = vmatprep.subr.mxu1 %v6535_v44 }
 0x300   :  { %2035 = vmatpush2.msra.mxu1 %v6538_v22  ;;  %v6549_v22 = vld [vmem:[#allocation2 + $0x1a] ss:$8 sm:$0x7] }
 0x301   :  { %4459 = vmatprep.subr.mxu1 %v8036_v46  ;;  %v6551_v46 = vld [vmem:[#allocation2 + $0x32] ss:$8 sm:$0x7] }
 0x381   :  { %v1627_v56 = vpop.f32.mrf.mxu0  ;;  %v4421_v34 = vpop.f32.mrf.mxu1 }
 0x382   :  { %v1717_v42 = vrot.slane %v1627_v56, %v5935_v59 }
 0x383   :  { %v1629_v47 = vpop.f32.mrf.mxu0  ;;  %v4422_v19 = vpop.f32.mrf.mxu1 }
 0x384   :  { %v1718_v45 = vcombine.high %v1717_v42, %v1717_v42  ;;  %v1725_v5 = vrot.slane %v1717_v42, %v5935_v59  ;;  %v1786_v50 = vrot.slane %v1629_v47, %v5935_v59 }
 0x386   :  { %v1732_v41 = vrot.slane %v1718_v45, %v5935_v59  ;;  %v1733_v44 = vcombine.high %v1725_v5, %v1725_v5  ;;  %v1739_v33 = vadd.f32 %v1725_v5, %v6545_v2  ;;  %v1787_v60 = vcombine.high %v1786_v50, %v1786_v50 }
 0x387   :  { %v1794_v56 = vrot.slane %v1786_v50, %v5935_v59  ;;  %v1771_v45 = vrot.slane %v6545_v2, 1  ;;  %v1772_v50 = vrot.slane %v6549_v22, 1 }
 0x388   :  { %v1734_v28 = vcombine.high %v1732_v41, %v1732_v41  ;;  %v1740_v36 = vadd.f32 %v1732_v41, %v6549_v22  ;;  %v1741_v42 = vadd.f32 %v1733_v44, %v6551_v46  ;;  %v4250_v47 = vmul.f32 -1.442695, %v1739_v33 }
 0x389   :  { %v1801_v21 = vrot.slane %v1787_v60, %v5935_v59  ;;  %v1802_v5 = vcombine.high %v1794_v56, %v1794_v56  ;;  %v1773_v44 = vrot.slane %v6551_v46, 1  ;;  %v1808_v33 = vadd.f32 %v1794_v56, %v1771_v45 }
 0x38a   :  { %v1742_v32 = vadd.f32 %v1734_v28, %v6556_v3  ;;  %4793 = vpow2.f32 %v4250_v47  ;;  %v4251_v24 = vmul.f32 -1.442695, %v1740_v36  ;;  %v4252_v15 = vmul.f32 -1.442695, %v1741_v42 }
 0x38b   :  { %v1803_v38 = vcombine.high %v1801_v21, %v1801_v21  ;;  %v1809_v43 = vadd.f32 %v1801_v21, %v1772_v50  ;;  %v1810_v60 = vadd.f32 %v1802_v5, %v1773_v44  ;;  %v4254_v28 = vmul.f32 -1.442695, %v1808_v33 }
 0x38c   :  { %4795 = vpow2.f32 %v4251_v24  ;;  %v4253_v41 = vmul.f32 -1.442695, %v1742_v32  ;;  %v4423_v24 = vadd.f32 %v4422_v19, %v4421_v34 }
 0x38d   :  { %4797 = vpow2.f32 %v4252_v15  ;;  %v1811_v23 = vadd.f32 %v1803_v38, %v1774_v14  ;;  %v4255_v47 = vmul.f32 -1.442695, %v1809_v43  ;;  %v4256_v36 = vmul.f32 -1.442695, %v1810_v60 }
 0x38e   :  { %4799 = vpow2.f32 %v4253_v41  ;;  %v1836_v21 = vadd.f32 %v4423_v24, %v7964_v0 }
 0x38f   :  { %v4257_v42 = vmul.f32 -1.442695, %v1811_v23  ;;  %4801 = vpow2.f32 %v4254_v28 }
 0x390   :  { %4803 = vpow2.f32 %v4255_v47  ;;  %v1844_v23 = vrot.slane %v1836_v21, %v5935_v59 }
 0x391   :  { %4805 = vpow2.f32 %v4256_v36 }
 0x392   :  { %4807 = vpow2.f32 %v4257_v42  ;;  %v1845_v19 = vcombine.high %v1844_v23, %v1844_v23  ;;  %v1852_v60 = vrot.slane %v1844_v23, %v5935_v59 }
 0x394   :  { %v1859_v0 = vrot.slane %v1845_v19, %v5935_v59 }
 0x397   :  { %v4794_v32 = vpop.eup %4793 }
 0x398   :  { %v1755_v56 = vadd.f32 1.0, %v4794_v32  ;;  %v1871_v32 = vrot.slane %v6549_v22, 2 }
 0x399   :  { %v4796_v15 = vpop.eup %4795 }
 0x39a   :  { %v4798_v45 = vpop.eup %4797  ;;  %v1756_v20 = vadd.f32 1.0, %v4796_v15  ;;  %4809 = vrcp.f32 %v1755_v56  ;;  %v1860_v56 = vcombine.high %v1852_v60, %v1852_v60 }
 0x39b   :  { %v4800_v5 = vpop.eup %4799  ;;  %v1757_v14 = vadd.f32 1.0, %v4798_v45  ;;  %v1861_v45 = vcombine.high %v1859_v0, %v1859_v0 }
 0x39c   :  { %v1758_v38 = vadd.f32 1.0, %v4800_v5  ;;  %4811 = vrcp.f32 %v1756_v20  ;;  %v4802_v43 = vpop.eup %4801  ;;  %v1870_v20 = vrot.slane %v6545_v2, 2 }
 0x39d   :  { %4813 = vrcp.f32 %v1757_v14  ;;  %v4804_v50 = vpop.eup %4803  ;;  %v1824_v44 = vadd.f32 1.0, %v4802_v43  ;;  %v1873_v43 = vrot.slane %v6556_v3, 2 }
 0x39e   :  { %4815 = vrcp.f32 %v1758_v38  ;;  %v4806_v34 = vpop.eup %4805  ;;  %v1825_v33 = vadd.f32 1.0, %v4804_v50  ;;  %v1872_v38 = vrot.slane %v6551_v46, 2 }
 0x39f   :  { %v4808_v41 = vpop.eup %4807  ;;  %v1826_v28 = vadd.f32 1.0, %v4806_v34  ;;  %4817 = vrcp.f32 %v1824_v44 }
 0x3a0   :  { %v1827_v36 = vadd.f32 1.0, %v4808_v41  ;;  %4819 = vrcp.f32 %v1825_v33 }
 0x3a1   :  { %4821 = vrcp.f32 %v1826_v28 }
 0x3a2   :  { %4823 = vrcp.f32 %v1827_v36 }
 0x3a7   :  { %v4810_v47 = vpop.eup %4809 }
 0x3a8   :  { %v1866_v42 = vmul.f32 %v4810_v47, %v1852_v60 }
 0x3a9   :  { %v4812_v24 = vpop.eup %4811 }
 0x3aa   :  { %v4814_v15 = vpop.eup %4813  ;;  %v1867_v21 = vmul.f32 %v4812_v24, %v1859_v0  ;;  %v1878_v5 = vadd.f32 %v1870_v20, %v1866_v42 }
 0x3ab   :  { %v4816_v14 = vpop.eup %4815  ;;  %v1868_v23 = vmul.f32 %v4814_v15, %v1860_v56 }
 0x3ac   :  { %v1869_v2 = vmul.f32 %v4816_v14, %v1861_v45  ;;  %v1879_v50 = vadd.f32 %v1871_v32, %v1867_v21  ;;  %4825 = vtanh.f32 %v1878_v5  ;;  %v4818_v22 = vpop.eup %4817 }
 0x3ad   :  { %v1880_v19 = vadd.f32 %v1872_v38, %v1868_v23  ;;  %v4820_v41 = vpop.eup %4819  ;;  %v1886_v60 = vsub.f32 1.0, %v4818_v22  ;;  %v1894_v47 = vmul.f32 %v4818_v22, %v6338_v61 }
 0x3ae   :  { %v1881_v34 = vadd.f32 %v1873_v43, %v1869_v2  ;;  %4827 = vtanh.f32 %v1879_v50  ;;  %v4822_v44 = vpop.eup %4821  ;;  %v1887_v0 = vsub.f32 1.0, %v4820_v41  ;;  %v1895_v32 = vmul.f32 %v4820_v41, %v6342_v48 }
 0x3af   :  { %4829 = vtanh.f32 %v1880_v19  ;;  %v4824_v33 = vpop.eup %4823  ;;  %v1888_v3 = vsub.f32 1.0, %v4822_v44  ;;  %v1896_v21 = vmul.f32 %v4822_v44, %v6345_v11 }
 0x3b0   :  { %4831 = vtanh.f32 %v1881_v34  ;;  %v1889_v42 = vsub.f32 1.0, %v4824_v33  ;;  %v1897_v14 = vmul.f32 %v4824_v33, %v6349_v13 }
 0x3b9   :  { %v4826_v28 = vpop.eup %4825 }
 0x3ba   :  { %v1890_v46 = vmul.f32 %v4826_v28, %v1886_v60 }
 0x3bb   :  { %v4828_v36 = vpop.eup %4827 }
 0x3bc   :  { %v4830_v20 = vpop.eup %4829  ;;  %v1891_v24 = vmul.f32 %v4828_v36, %v1887_v0  ;;  %v6574_v56 = vadd.f32 %v1894_v47, %v1890_v46 }
 0x3bd   :  { %v4832_v15 = vpop.eup %4831  ;;  %v1892_v45 = vmul.f32 %v4830_v20, %v1888_v3 }
 0x3be   :  { %v1893_v5 = vmul.f32 %v4832_v15, %v1889_v42  ;;  %v6578_v38 = vadd.f32 %v1895_v32, %v1891_v24  ;;  %1902 = vst [vmem:[#allocation3 + $0x2] sm:$0x1] %v6574_v56  ;;  %v1910_v23 = vmul.f32 %v6574_v56, %v6035_v10  ;;  %v1906_v11 = vmul.f32 %v6574_v56, %v6031_v31  ;;  %v8060_v42 = vld [vmem:[#allocation60_spill] sm:$0xff]  ;;  %v8061_v24 = vld [vmem:[#allocation50_spill] sm:$0xff]  ;;  %v8062_v32 = vld [vmem:[#allocation61_spill] sm:$0xff] }
 0x3bf   :  { %v6581_v61 = vadd.f32 %v1896_v21, %v1892_v45  ;;  %v8063_v15 = vld [vmem:[#allocation27_spill] sm:$0xff]  ;;  %v8064_v45 = vld [vmem:[#allocation62_spill] sm:$0xff] }
 0x3c0   :  { %v6585_v43 = vadd.f32 %v1897_v14, %v1893_v5  ;;  %1903 = vst [vmem:[#allocation3 + $0xa] sm:$0x1] %v6578_v38  ;;  %v1911_v48 = vmul.f32 %v6578_v38, %v6043_v29  ;;  %v1907_v13 = vmul.f32 %v6578_v38, %v6039_v51  ;;  %v8065_v21 = vld [vmem:[#allocation35_spill] sm:$0xff]  ;;  %v8067_v14 = vld [vmem:[#allocation28_spill] sm:$0xff] }
 0x3c1   :  { %1904 = vst [vmem:[#allocation4 + $0x5] sm:$0x1] %v6581_v61  ;;  %v1912_v2 = vmul.f32 %v6581_v61, %v6053_v62  ;;  %v1908_v50 = vmul.f32 %v6581_v61, %v7965_v18  ;;  %v8066_v5 = vld [vmem:[#allocation63_spill] sm:$0xff] }
 0x3c2   :  { %1905 = vst [vmem:[#allocation4 + $0xd] sm:$0x1] %v6585_v43  ;;  %v1913_v19 = vmul.f32 %v6585_v43, %v6056_v55  ;;  %v1947_v34 = vcombine.low %v1910_v23, %v1911_v48  ;;  %v1909_v22 = vmul.f32 %v6585_v43, %v6027_v1  ;;  %v1918_v41 = vcombine.low %v1906_v11, %v1907_v13  ;;  %v8068_v23 = vld [vmem:[#allocation64_spill] sm:$0xff]  ;;  %v8069_v48 = vld [vmem:[#allocation37_spill] sm:$0xff] }
 0x3c3   :  { %v8070_v11 = vld [vmem:[#allocation65_spill] sm:$0xff] }
 0x3c4   :  { %v1948_v44 = vcombine.low %v1912_v2, %v1913_v19  ;;  %v1919_v33 = vcombine.low %v1908_v50, %v1909_v22  ;;  %v1955_v60 = vrot.slane %v1947_v34, %v5935_v59  ;;  %v1926_v0 = vrot.slane %v1918_v41, %v5935_v59  ;;  %v8071_v13 = vld [vmem:[#allocation29_spill] sm:$0xff]  ;;  %v8072_v2 = vld [vmem:[#allocation66_spill] sm:$0xff]  ;;  %v8073_v50 = vld [vmem:[#allocation39_spill] sm:$0xff] }
 0x3c5   :  { %v8074_v19 = vld [vmem:[#allocation67_spill] sm:$0xff]  ;;  %v8075_v34 = vld [vmem:[#allocation30_spill] sm:$0xff]  ;;  %v8076_v22 = vld [vmem:[#allocation68_spill] sm:$0xff] }
 0x3c6   :  { %v1962_v28 = vrot.slane %v1948_v44, %v5935_v59  ;;  %v1933_v46 = vrot.slane %v1919_v33, %v5935_v59  ;;  %v8077_v41 = vld [vmem:[#allocation69_spill] sm:$0xff]  ;;  %v8078_v44 = vld [vmem:[#allocation70_spill] sm:$0xff]  ;;  %v8079_v33 = vld [vmem:[#allocation71_spill] sm:$0xff] }
 0x3c8   :  { %v1963_v47 = vcombine.low %v1955_v60, %v1962_v28  ;;  %v1934_v36 = vcombine.low %v1926_v0, %v1933_v46  ;;  %v8080_v60 = vld [vmem:[#allocation72_spill] sm:$0xff]  ;;  %v8081_v28 = vld [vmem:[#allocation73_spill] sm:$0xff]  ;;  %v8083_v46 = vld [vmem:[#allocation31_spill] sm:$0xff] }
 0x3c9   :  { %v8082_v0 = vld [vmem:[#allocation41_spill] sm:$0xff] }
 0x3ca   :  { %v1970_v3 = vrot.slane %v1963_v47, %v5935_v59  ;;  %v1941_v20 = vrot.slane %v1934_v36, %v5935_v59  ;;  %v8084_v47 = vld [vmem:[#allocation43_spill] sm:$0xff]  ;;  %v8085_v36 = vld [vmem:[#allocation32_spill] sm:$0xff] }
 0x3cc   :  { %2036 = vmatprep.mubr.f32.mxu1 %v1970_v3  ;;  %2107 = vmatprep.mubr.f32.mxu0 %v1970_v3  ;;  %v8086_v3 = vld [vmem:[#allocation33_spill] sm:$0xff] }
 0x3cd   :  { %2037 = vmatmul.mubr.f32.vlgmr.msra.gmra.mxu1 %v1941_v20  ;;  %2108 = vmatmul.mubr.f32.vlgmr.msra.gmra.mxu0 %v1941_v20  ;;  %v8087_v20 = vld [vmem:[#allocation74_spill] sm:$0xff] }
 0x3ce   :  { %2384 = vmatpush1.msra.mxu0 %v6090_v54  ;;  %4460 = vmatpush3.msra.mxu1 %v6093_v35  ;;  %v8037_v54 = vld [vmem:[#allocation34_spill] sm:$0xff]  ;;  %v8038_v35 = vld [vmem:[#allocation36_spill] sm:$0xff] }
 0x3cf   :  { %2385 = vmatprep.subr.mxu0 %v6096_v39  ;;  %4461 = vmatprep.subr.mxu1 %v6099_v26  ;;  %v8039_v39 = vld [vmem:[#allocation38_spill] sm:$0xff]  ;;  %v8040_v26 = vld [vmem:[#allocation40_spill] sm:$0xff] }
 0x3d0   :  { %2386 = vmatpush1.msra.mxu0 %v6102_v27  ;;  %4462 = vmatpush3.msra.mxu1 %v6105_v52  ;;  %v8041_v27 = vld [vmem:[#allocation42_spill] sm:$0xff]  ;;  %v8042_v52 = vld [vmem:[#allocation44_spill] sm:$0xff] }
 0x3d1   :  { %2387 = vmatprep.subr.mxu0 %v6108_v37  ;;  %4463 = vmatprep.subr.mxu1 %v6111_v58  ;;  %v8043_v37 = vld [vmem:[#allocation45_spill] sm:$0xff]  ;;  %v8044_v58 = vld [vmem:[#allocation46_spill] sm:$0xff] }
 0x3d2   :  { %2388 = vmatpush1.msra.mxu0 %v6114_v53  ;;  %4464 = vmatpush3.msra.mxu1 %v6117_v25  ;;  %v8045_v53 = vld [vmem:[#allocation47_spill] sm:$0xff]  ;;  %v8046_v25 = vld [vmem:[#allocation25_spill] sm:$0xff] }
 0x3d3   :  { %2389 = vmatprep.subr.mxu0 %v6120_v30  ;;  %4465 = vmatprep.subr.mxu1 %v6123_v9  ;;  %v8047_v30 = vld [vmem:[#allocation23_spill] sm:$0xff]  ;;  %v8048_v9 = vld [vmem:[#allocation24_spill] sm:$0xff] }
 0x3d4   :  { %2390 = vmatpush1.msra.mxu0 %v6126_v17  ;;  %4466 = vmatpush3.msra.mxu1 %v7966_v63  ;;  %v8049_v17 = vld [vmem:[#allocation26_spill] sm:$0xff]  ;;  %v8050_v63 = vld [vmem:[#allocation51_spill] sm:$0xff] }
 0x3d5   :  { %2391 = vmatprep.subr.mxu0 %v7967_v4  ;;  %4467 = vmatprep.subr.mxu1 %v7968_v49  ;;  %v8051_v4 = vld [vmem:[#allocation52_spill] sm:$0xff]  ;;  %v8052_v49 = vld [vmem:[#allocation53_spill] sm:$0xff] }
 0x3d6   :  { %2392 = vmatpush1.msra.mxu0 %v7969_v6  ;;  %4468 = vmatpush3.msra.mxu1 %v7970_v12  ;;  %v8053_v6 = vld [vmem:[#allocation54_spill] sm:$0xff]  ;;  %v8054_v12 = vld [vmem:[#allocation55_spill] sm:$0xff] }
 0x3d7   :  { %2393 = vmatprep.subr.mxu0 %v7971_v8  ;;  %4469 = vmatprep.subr.mxu1 %v7972_v57  ;;  %v8055_v8 = vld [vmem:[#allocation56_spill] sm:$0xff]  ;;  %v8056_v57 = vld [vmem:[#allocation57_spill] sm:$0xff] }
 0x3d8   :  { %2394 = vmatpush1.msra.mxu0 %v7973_v40  ;;  %4470 = vmatpush3.msra.mxu1 %v7974_v7  ;;  %v8057_v40 = vld [vmem:[#allocation58_spill] sm:$0xff]  ;;  %v8058_v7 = vld [vmem:[#allocation59_spill] sm:$0xff] }
 0x3d9   :  { %2395 = vmatprep.subr.mxu0 %v7975_v16  ;;  %4471 = vmatprep.subr.mxu1 %v8037_v54  ;;  %v8059_v16 = vld [vmem:[#allocation49_spill] sm:$0xff]  ;;  %v8088_v54 = vld [vmem:[#allocation75_spill] sm:$0xff] }
 0x3da   :  { %2396 = vmatpush1.msra.mxu0 %v8038_v35  ;;  %4472 = vmatpush3.msra.mxu1 %v8039_v39  ;;  %v8089_v35 = vld [vmem:[#allocation76_spill] sm:$0xff]  ;;  %v8090_v39 = vld [vmem:[#allocation77_spill] sm:$0xff] }
 0x3db   :  { %2397 = vmatprep.subr.mxu0 %v8040_v26  ;;  %4473 = vmatprep.subr.mxu1 %v8041_v27  ;;  %v8091_v26 = vld [vmem:[#allocation78_spill] sm:$0xff]  ;;  %v8092_v27 = vld [vmem:[#allocation79_spill] sm:$0xff] }
 0x3dc   :  { %2398 = vmatpush1.msra.mxu0 %v8042_v52  ;;  %4474 = vmatpush3.msra.mxu1 %v8043_v37  ;;  %v8093_v52 = vld [vmem:[#allocation80_spill] sm:$0xff]  ;;  %v8094_v37 = vld [vmem:[#allocation81_spill] sm:$0xff] }
 0x3dd   :  { %2399 = vmatprep.subr.mxu0 %v8044_v58  ;;  %4475 = vmatprep.subr.mxu1 %v8045_v53  ;;  %v8095_v58 = vld [vmem:[#allocation82_spill] sm:$0xff]  ;;  %v8096_v53 = vld [vmem:[#allocation83_spill] sm:$0xff] }
 0x3de   :  { %2400 = vmatpush1.msra.mxu0 %v8046_v25  ;;  %4476 = vmatpush3.msra.mxu1 %v8047_v30  ;;  %v8097_v25 = vld [vmem:[#allocation84_spill] sm:$0xff]  ;;  %v8098_v30 = vld [vmem:[#allocation85_spill] sm:$0xff] }
 0x3df   :  { %2401 = vmatprep.subr.mxu0 %v8048_v9  ;;  %4477 = vmatprep.subr.mxu1 %v8049_v17  ;;  %v8099_v9 = vld [vmem:[#allocation86_spill] sm:$0xff]  ;;  %v8100_v17 = vld [vmem:[#allocation87_spill] sm:$0xff] }
 0x3e0   :  { %2402 = vmatpush1.msra.mxu0 %v8050_v63  ;;  %4478 = vmatpush3.msra.mxu1 %v8051_v4  ;;  %v8101_v63 = vld [vmem:[#allocation88_spill] sm:$0xff]  ;;  %v8102_v4 = vld [vmem:[#allocation89_spill] sm:$0xff] }
 0x3e1   :  { %2403 = vmatprep.subr.mxu0 %v8052_v49  ;;  %4479 = vmatprep.subr.mxu1 %v8053_v6  ;;  %v8103_v49 = vld [vmem:[#allocation90_spill] sm:$0xff]  ;;  %v8104_v6 = vld [vmem:[#allocation91_spill] sm:$0xff] }
 0x3e2   :  { %2404 = vmatpush1.msra.mxu0 %v8054_v12  ;;  %4480 = vmatpush3.msra.mxu1 %v8055_v8  ;;  %v8105_v12 = vld [vmem:[#allocation92_spill] sm:$0xff]  ;;  %v8106_v8 = vld [vmem:[#allocation93_spill] sm:$0xff] }
 0x3e3   :  { %2405 = vmatprep.subr.mxu0 %v8056_v57  ;;  %4481 = vmatprep.subr.mxu1 %v8057_v40  ;;  %v8107_v57 = vld [vmem:[#allocation94_spill] sm:$0xff]  ;;  %v8108_v40 = vld [vmem:[#allocation95_spill] sm:$0xff] }
 0x3e4   :  { %2406 = vmatpush1.msra.mxu0 %v8058_v7  ;;  %4482 = vmatpush3.msra.mxu1 %v8059_v16  ;;  %v8109_v7 = vld [vmem:[#allocation48_spill] sm:$0xff] }
 0x3e5   :  { %2407 = vmatprep.subr.mxu0 %v8060_v42  ;;  %4483 = vmatprep.subr.mxu1 %v8061_v24 }
 0x3e6   :  { %2408 = vmatpush1.msra.mxu0 %v8062_v32  ;;  %4484 = vmatpush3.msra.mxu1 %v8063_v15 }
 0x3e7   :  { %2409 = vmatprep.subr.mxu0 %v8064_v45  ;;  %4485 = vmatprep.subr.mxu1 %v8065_v21 }
 0x3e8   :  { %2410 = vmatpush1.msra.mxu0 %v8066_v5  ;;  %4486 = vmatpush3.msra.mxu1 %v8067_v14 }
 0x3e9   :  { %2411 = vmatprep.subr.mxu0 %v8068_v23  ;;  %4487 = vmatprep.subr.mxu1 %v8069_v48 }
 0x3ea   :  { %2412 = vmatpush1.msra.mxu0 %v8070_v11  ;;  %4488 = vmatpush3.msra.mxu1 %v8071_v13 }
 0x3eb   :  { %2413 = vmatprep.subr.mxu0 %v8072_v2  ;;  %4489 = vmatprep.subr.mxu1 %v8073_v50  ;;  %v6709_v2 = vld [vmem:[#allocation2 + $0x3] ss:$8 sm:$0x7] }
 0x3ec   :  { %2414 = vmatpush1.msra.mxu0 %v8074_v19  ;;  %4490 = vmatpush3.msra.mxu1 %v8075_v34 }
 0x3ed   :  { %2415 = vmatprep.subr.mxu0 %v8076_v22  ;;  %2794 = vmatprep.subr.mxu1 %v8077_v41 }
 0x3ee   :  { %2416 = vmatpush2.msra.mxu0 %v8078_v44 }
 0x3ef   :  { %2417 = vmatprep.subr.mxu0 %v8079_v33  ;;  %v6713_v33 = vld [vmem:[#allocation2 + $0x1b] ss:$8 sm:$0x7] }
 0x3f0   :  { %2418 = vmatpush2.msra.mxu0 %v8080_v60  ;;  %v6715_v60 = vld [vmem:[#allocation2 + $0x33] ss:$8 sm:$0x7] }
 0x3f1   :  { %2419 = vmatprep.subr.mxu0 %v8081_v28 }
 0x3f2   :  { %2420 = vmatpush2.msra.mxu0 %v8082_v0 }
 0x3f3   :  { %2421 = vmatprep.subr.mxu0 %v8083_v46 }
 0x3f4   :  { %2422 = vmatpush2.msra.mxu0 %v8084_v47 }
 0x3f5   :  { %2423 = vmatprep.subr.mxu0 %v8085_v36 }
 0x3f6   :  { %2424 = vmatpush2.msra.mxu0 %v8086_v3 }
 0x3f7   :  { %2425 = vmatprep.subr.mxu0 %v8087_v20 }
 0x3f8   :  { %2426 = vmatpush2.msra.mxu0 %v8088_v54 }
 0x3f9   :  { %2427 = vmatprep.subr.mxu0 %v8089_v35 }
 0x3fa   :  { %2428 = vmatpush2.msra.mxu0 %v8090_v39 }
 0x3fb   :  { %2429 = vmatprep.subr.mxu0 %v8091_v26 }
 0x3fc   :  { %2430 = vmatpush2.msra.mxu0 %v8092_v27 }
 0x3fd   :  { %2431 = vmatprep.subr.mxu0 %v8093_v52 }
 0x3fe   :  { %2432 = vmatpush2.msra.mxu0 %v8094_v37 }
 0x3ff   :  { %2433 = vmatprep.subr.mxu0 %v8095_v58 }
 0x400   :  { %2434 = vmatpush2.msra.mxu0 %v8096_v53 }
 0x401   :  { %2435 = vmatprep.subr.mxu0 %v8097_v25 }
 0x402   :  { %2436 = vmatpush2.msra.mxu0 %v8098_v30 }
 0x403   :  { %2437 = vmatprep.subr.mxu0 %v8099_v9 }
 0x404   :  { %2438 = vmatpush2.msra.mxu0 %v8100_v17 }
 0x405   :  { %2439 = vmatprep.subr.mxu0 %v8101_v63 }
 0x406   :  { %2440 = vmatpush2.msra.mxu0 %v8102_v4 }
 0x407   :  { %2441 = vmatprep.subr.mxu0 %v8103_v49 }
 0x408   :  { %2442 = vmatpush2.msra.mxu0 %v8104_v6 }
 0x409   :  { %2443 = vmatprep.subr.mxu0 %v8105_v12 }
 0x40a   :  { %2444 = vmatpush2.msra.mxu0 %v8106_v8 }
 0x40b   :  { %2445 = vmatprep.subr.mxu0 %v8107_v57 }
 0x40c   :  { %2446 = vmatpush2.msra.mxu0 %v8108_v40  ;;  %v6720_v40 = vld [vmem:[#allocation2 + $0x4b] ss:$8 sm:$0x7] }
 0x40d   :  { %4494 = vmatprep.subr.mxu0 %v8109_v7  ;;  %v2185_v4 = vrot.slane %v6720_v40, 1 }
 0x48d   :  { %v2038_v42 = vpop.f32.mrf.mxu1  ;;  %v4456_v17 = vpop.f32.mrf.mxu0 }
 0x48e   :  { %v2128_v32 = vrot.slane %v2038_v42, %v5935_v59 }
 0x48f   :  { %v2040_v45 = vpop.f32.mrf.mxu1  ;;  %v4457_v30 = vpop.f32.mrf.mxu0 }
 0x490   :  { %v2129_v5 = vcombine.high %v2128_v32, %v2128_v32  ;;  %v2136_v23 = vrot.slane %v2128_v32, %v5935_v59  ;;  %v2197_v11 = vrot.slane %v2040_v45, %v5935_v59 }
 0x492   :  { %v2143_v19 = vrot.slane %v2129_v5, %v5935_v59  ;;  %v2144_v22 = vcombine.high %v2136_v23, %v2136_v23  ;;  %v2150_v41 = vadd.f32 %v2136_v23, %v6709_v2  ;;  %v2198_v44 = vcombine.high %v2197_v11, %v2197_v11 }
 0x493   :  { %v2205_v28 = vrot.slane %v2197_v11, %v5935_v59  ;;  %v2182_v5 = vrot.slane %v6709_v2, 1  ;;  %v2183_v11 = vrot.slane %v6713_v33, 1 }
 0x494   :  { %v2145_v7 = vcombine.high %v2143_v19, %v2143_v19  ;;  %v2151_v42 = vadd.f32 %v2143_v19, %v6713_v33  ;;  %v2152_v32 = vadd.f32 %v2144_v22, %v6715_v60  ;;  %v4258_v45 = vmul.f32 -1.442695, %v2150_v41 }
 0x495   :  { %v2212_v57 = vrot.slane %v2198_v44, %v5935_v59  ;;  %v2213_v23 = vcombine.high %v2205_v28, %v2205_v28  ;;  %v2184_v22 = vrot.slane %v6715_v60, 1  ;;  %v2219_v41 = vadd.f32 %v2205_v28, %v2182_v5 }
 0x496   :  { %v2153_v8 = vadd.f32 %v2145_v7, %v6720_v40  ;;  %4833 = vpow2.f32 %v4258_v45  ;;  %v4259_v12 = vmul.f32 -1.442695, %v2151_v42  ;;  %v4260_v6 = vmul.f32 -1.442695, %v2152_v32 }
 0x497   :  { %v2214_v49 = vcombine.high %v2212_v57, %v2212_v57  ;;  %v2220_v63 = vadd.f32 %v2212_v57, %v2183_v11  ;;  %v2221_v44 = vadd.f32 %v2213_v23, %v2184_v22  ;;  %v4262_v7 = vmul.f32 -1.442695, %v2219_v41 }
 0x498   :  { %4835 = vpow2.f32 %v4259_v12  ;;  %v4261_v19 = vmul.f32 -1.442695, %v2153_v8  ;;  %v4458_v12 = vadd.f32 %v4457_v30, %v4456_v17 }
 0x499   :  { %4837 = vpow2.f32 %v4260_v6  ;;  %v2222_v9 = vadd.f32 %v2214_v49, %v2185_v4  ;;  %v4263_v45 = vmul.f32 -1.442695, %v2220_v63  ;;  %v4264_v42 = vmul.f32 -1.442695, %v2221_v44  ;;  %v6731_v4 = vld [vmem:[%s7535_s6] sm:$0xf] }
 0x49a   :  { %4839 = vpow2.f32 %v4261_v19  ;;  %v2247_v63 = vadd.f32 %v6731_v4, %v4458_v12 }
 0x49b   :  { %v4265_v32 = vmul.f32 -1.442695, %v2222_v9  ;;  %4841 = vpow2.f32 %v4262_v7 }
 0x49c   :  { %4843 = vpow2.f32 %v4263_v45  ;;  %v2255_v30 = vrot.slane %v2247_v63, %v5935_v59 }
 0x49d   :  { %4845 = vpow2.f32 %v4264_v42 }
 0x49e   :  { %4847 = vpow2.f32 %v4265_v32  ;;  %v2256_v11 = vcombine.high %v2255_v30, %v2255_v30  ;;  %v2263_v7 = vrot.slane %v2255_v30, %v5935_v59 }
 0x4a0   :  { %v2270_v42 = vrot.slane %v2256_v11, %v5935_v59  ;;  %v2284_v11 = vrot.slane %v6720_v40, 2 }
 0x4a3   :  { %v4834_v8 = vpop.eup %4833 }
 0x4a4   :  { %v2166_v28 = vadd.f32 1.0, %v4834_v8 }
 0x4a5   :  { %v4836_v6 = vpop.eup %4835 }
 0x4a6   :  { %v4838_v5 = vpop.eup %4837  ;;  %v2167_v25 = vadd.f32 1.0, %v4836_v6  ;;  %4849 = vrcp.f32 %v2166_v28  ;;  %v2282_v6 = vrot.slane %v6713_v33, 2 }
 0x4a7   :  { %v4840_v9 = vpop.eup %4839  ;;  %v2168_v49 = vadd.f32 1.0, %v4838_v5  ;;  %v2271_v5 = vcombine.high %v2263_v7, %v2263_v7 }
 0x4a8   :  { %v2169_v57 = vadd.f32 1.0, %v4840_v9  ;;  %4851 = vrcp.f32 %v2167_v25  ;;  %v4842_v17 = vpop.eup %4841  ;;  %v2281_v25 = vrot.slane %v6709_v2, 2  ;;  %v2272_v9 = vcombine.high %v2270_v42, %v2270_v42 }
 0x4a9   :  { %4853 = vrcp.f32 %v2168_v49  ;;  %v4844_v23 = vpop.eup %4843  ;;  %v2235_v41 = vadd.f32 1.0, %v4842_v17  ;;  %v2283_v17 = vrot.slane %v6715_v60, 2 }
 0x4aa   :  { %4855 = vrcp.f32 %v2169_v57  ;;  %v4846_v19 = vpop.eup %4845  ;;  %v2236_v44 = vadd.f32 1.0, %v4844_v23 }
 0x4ab   :  { %v4848_v22 = vpop.eup %4847  ;;  %v2237_v45 = vadd.f32 1.0, %v4846_v19  ;;  %4857 = vrcp.f32 %v2235_v41 }
 0x4ac   :  { %v2238_v12 = vadd.f32 1.0, %v4848_v22  ;;  %4859 = vrcp.f32 %v2236_v44 }
 0x4ad   :  { %4861 = vrcp.f32 %v2237_v45 }
 0x4ae   :  { %4863 = vrcp.f32 %v2238_v12 }
 0x4b3   :  { %v4850_v32 = vpop.eup %4849 }
 0x4b4   :  { %v2277_v8 = vmul.f32 %v4850_v32, %v2263_v7 }
 0x4b5   :  { %v4852_v28 = vpop.eup %4851 }
 0x4b6   :  { %v4854_v63 = vpop.eup %4853  ;;  %v2278_v49 = vmul.f32 %v4852_v28, %v2270_v42  ;;  %v2289_v57 = vadd.f32 %v2281_v25, %v2277_v8 }
 0x4b7   :  { %v4856_v30 = vpop.eup %4855  ;;  %v2279_v23 = vmul.f32 %v4854_v63, %v2271_v5 }
 0x4b8   :  { %v2280_v2 = vmul.f32 %v4856_v30, %v2272_v9  ;;  %v2290_v19 = vadd.f32 %v2282_v6, %v2278_v49  ;;  %4865 = vtanh.f32 %v2289_v57  ;;  %v4858_v33 = vpop.eup %4857 }
 0x4b9   :  { %v2291_v22 = vadd.f32 %v2283_v17, %v2279_v23  ;;  %v4860_v44 = vpop.eup %4859  ;;  %v2297_v42 = vsub.f32 1.0, %v4858_v33  ;;  %v2305_v12 = vmul.f32 %v4858_v33, %v6574_v56 }
 0x4ba   :  { %v2292_v41 = vadd.f32 %v2284_v11, %v2280_v2  ;;  %4867 = vtanh.f32 %v2290_v19  ;;  %v4862_v7 = vpop.eup %4861  ;;  %v2298_v25 = vsub.f32 1.0, %v4860_v44  ;;  %v2306_v63 = vmul.f32 %v4860_v44, %v6578_v38 }
 0x4bb   :  { %4869 = vtanh.f32 %v2291_v22  ;;  %v4864_v45 = vpop.eup %4863  ;;  %v2299_v40 = vsub.f32 1.0, %v4862_v7  ;;  %v2307_v30 = vmul.f32 %v4862_v7, %v6581_v61 }
 0x4bc   :  { %4871 = vtanh.f32 %v2292_v41  ;;  %v2300_v6 = vsub.f32 1.0, %v4864_v45  ;;  %v2308_v23 = vmul.f32 %v4864_v45, %v6585_v43 }
 0x4c5   :  { %v4866_v32 = vpop.eup %4865 }
 0x4c6   :  { %v2301_v60 = vmul.f32 %v4866_v32, %v2297_v42 }
 0x4c7   :  { %v4868_v8 = vpop.eup %4867 }
 0x4c8   :  { %v4870_v28 = vpop.eup %4869  ;;  %v2302_v5 = vmul.f32 %v4868_v8, %v2298_v25  ;;  %v6743_v9 = vadd.f32 %v2305_v12, %v2301_v60 }
 0x4c9   :  { %v4872_v49 = vpop.eup %4871  ;;  %v2303_v57 = vmul.f32 %v4870_v28, %v2299_v40 }
 0x4ca   :  { %v2304_v17 = vmul.f32 %v4872_v49, %v2300_v6  ;;  %v6747_v11 = vadd.f32 %v2306_v63, %v2302_v5  ;;  %2313 = vst [vmem:[#allocation3 + $0x3] sm:$0x1] %v6743_v9  ;;  %v2321_v2 = vmul.f32 %v6743_v9, %v6035_v10  ;;  %v2317_v61 = vmul.f32 %v6743_v9, %v6031_v31  ;;  %v6779_v63 = vld [vmem:[#allocation11 + $0x168] sm:$0xff]  ;;  %v6782_v49 = vld [vmem:[#allocation11 + $0x178] sm:$0xff] }
 0x4cb   :  { %v6750_v56 = vadd.f32 %v2307_v30, %v2303_v57  ;;  %v6785_v57 = vld [vmem:[#allocation11 + $0x158] sm:$0xff]  ;;  %v6788_v30 = vld [vmem:[#allocation11 + $0x2e0] sm:$0xff] }
 0x4cc   :  { %v6754_v19 = vadd.f32 %v2308_v23, %v2304_v17  ;;  %2314 = vst [vmem:[#allocation3 + $0xb] sm:$0x1] %v6747_v11  ;;  %v2322_v38 = vmul.f32 %v6747_v11, %v6043_v29  ;;  %v2318_v43 = vmul.f32 %v6747_v11, %v6039_v51  ;;  %v6791_v17 = vld [vmem:[#allocation11 + $0x150] sm:$0xff]  ;;  %v6794_v23 = vld [vmem:[#allocation11 + $0x160] sm:$0xff] }
 0x4cd   :  { %2315 = vst [vmem:[#allocation4 + $0x4] sm:$0x1] %v6750_v56  ;;  %v2323_v22 = vmul.f32 %v6750_v56, %v6053_v62  ;;  %v2319_v41 = vmul.f32 %v6750_v56, %v7965_v18 }
 0x4ce   :  { %2316 = vst [vmem:[#allocation4 + $0xc] sm:$0x1] %v6754_v19  ;;  %v2324_v33 = vmul.f32 %v6754_v19, %v6056_v55  ;;  %v2358_v44 = vcombine.low %v2321_v2, %v2322_v38  ;;  %v2320_v7 = vmul.f32 %v6754_v19, %v6027_v1  ;;  %v2329_v45 = vcombine.low %v2317_v61, %v2318_v43  ;;  %v6797_v2 = vld [vmem:[#allocation11 + $0x140] sm:$0xff]  ;;  %v6800_v38 = vld [vmem:[#allocation11 + $0x2c8] sm:$0xff]  ;;  %v6803_v61 = vld [vmem:[#allocation11 + $0x138] sm:$0xff] }
 0x4cf   :  { %v6806_v43 = vld [vmem:[#allocation11 + $0x148] sm:$0xff] }
 0x4d0   :  { %v2359_v42 = vcombine.low %v2323_v22, %v2324_v33  ;;  %v2330_v32 = vcombine.low %v2319_v41, %v2320_v7  ;;  %v2366_v25 = vrot.slane %v2358_v44, %v5935_v59  ;;  %v2337_v12 = vrot.slane %v2329_v45, %v5935_v59  ;;  %v6809_v22 = vld [vmem:[#allocation11 + $0x128] sm:$0xff]  ;;  %v6812_v41 = vld [vmem:[#allocation11 + $0x2b0] sm:$0xff]  ;;  %v6815_v33 = vld [vmem:[#allocation11 + $0x120] sm:$0xff] }
 0x4d1   :  { %v6818_v44 = vld [vmem:[#allocation11 + $0x130] sm:$0xff]  ;;  %v6824_v45 = vld [vmem:[#allocation11 + $0x298] sm:$0xff] }
 0x4d2   :  { %v2373_v60 = vrot.slane %v2359_v42, %v5935_v59  ;;  %v2344_v8 = vrot.slane %v2330_v32, %v5935_v59  ;;  %v6821_v7 = vld [vmem:[#allocation11 + $0x110] sm:$0xff]  ;;  %v6827_v42 = vld [vmem:[#allocation11 + $0x108] sm:$0xff]  ;;  %v6830_v32 = vld [vmem:[#allocation11 + $0x118] sm:$0xff] }
 0x4d4   :  { %v2374_v40 = vcombine.low %v2366_v25, %v2373_v60  ;;  %v2345_v28 = vcombine.low %v2337_v12, %v2344_v8  ;;  %v6833_v25 = vld [vmem:[#allocation11 + $0xf8] sm:$0xff]  ;;  %v6836_v60 = vld [vmem:[#allocation11 + $0x280] sm:$0xff]  ;;  %v6839_v12 = vld [vmem:[#allocation11 + $0xf0] sm:$0xff] }
 0x4d5   :  { %8110 = vst [vmem:[#allocation34_spill] sm:$0xff] %v6839_v12  ;;  %v6842_v8 = vld [vmem:[#allocation11 + $0x100] sm:$0xff] }
 0x4d6   :  { %v2381_v6 = vrot.slane %v2374_v40, %v5935_v59  ;;  %v2352_v5 = vrot.slane %v2345_v28, %v5935_v59  ;;  %8111 = vst [vmem:[#allocation36_spill] sm:$0xff] %v6842_v8  ;;  %v6845_v40 = vld [vmem:[#allocation11 + $0xe0] sm:$0xff]  ;;  %v6848_v28 = vld [vmem:[#allocation11 + $0x268] sm:$0xff] }
 0x4d7   :  { %8112 = vst [vmem:[#allocation38_spill] sm:$0xff] %v6845_v40  ;;  %8113 = vst [vmem:[#allocation40_spill] sm:$0xff] %v6848_v28 }
 0x4d8   :  { %2447 = vmatprep.mubr.f32.mxu0 %v2381_v6  ;;  %2518 = vmatprep.mubr.f32.mxu1 %v2381_v6  ;;  %v6851_v6 = vld [vmem:[#allocation11 + $0xd8] sm:$0xff] }
 0x4d9   :  { %2448 = vmatmul.mubr.f32.vlgmr.msra.gmra.mxu0 %v2352_v5  ;;  %2519 = vmatmul.mubr.f32.vlgmr.msra.gmra.mxu1 %v2352_v5  ;;  %8114 = vst [vmem:[#allocation42_spill] sm:$0xff] %v6851_v6  ;;  %v6854_v5 = vld [vmem:[#allocation11 + $0xe8] sm:$0xff] }
 0x4da   :  { %2795 = vmatpush1.msra.mxu1 %v6779_v63  ;;  %4495 = vmatpush3.msra.mxu0 %v6782_v49  ;;  %8115 = vst [vmem:[#allocation44_spill] sm:$0xff] %v6854_v5 }
 0x4db   :  { %2796 = vmatprep.subr.mxu1 %v6785_v57  ;;  %4496 = vmatprep.subr.mxu0 %v6788_v30 }
 0x4dc   :  { %2797 = vmatpush1.msra.mxu1 %v6791_v17  ;;  %4497 = vmatpush3.msra.mxu0 %v6794_v23 }
 0x4dd   :  { %2798 = vmatprep.subr.mxu1 %v6797_v2  ;;  %4498 = vmatprep.subr.mxu0 %v6800_v38 }
 0x4de   :  { %2799 = vmatpush1.msra.mxu1 %v6803_v61  ;;  %4499 = vmatpush3.msra.mxu0 %v6806_v43 }
 0x4df   :  { %2800 = vmatprep.subr.mxu1 %v6809_v22  ;;  %4500 = vmatprep.subr.mxu0 %v6812_v41 }
 0x4e0   :  { %2801 = vmatpush1.msra.mxu1 %v6815_v33  ;;  %4501 = vmatpush3.msra.mxu0 %v6818_v44 }
 0x4e1   :  { %2802 = vmatprep.subr.mxu1 %v6821_v7  ;;  %4502 = vmatprep.subr.mxu0 %v6824_v45 }
 0x4e2   :  { %2803 = vmatpush1.msra.mxu1 %v6827_v42  ;;  %4503 = vmatpush3.msra.mxu0 %v6830_v32 }
 0x4e3   :  { %2804 = vmatprep.subr.mxu1 %v6833_v25  ;;  %4504 = vmatprep.subr.mxu0 %v6836_v60 }
 0x4e4   :  { %2805 = vmatpush1.msra.mxu1 %v6839_v12  ;;  %4505 = vmatpush3.msra.mxu0 %v6842_v8  ;;  %v6857_v12 = vld [vmem:[#allocation11 + $0xc8] sm:$0xff]  ;;  %v6860_v8 = vld [vmem:[#allocation11 + $0x250] sm:$0xff] }
 0x4e5   :  { %2806 = vmatprep.subr.mxu1 %v6845_v40  ;;  %4506 = vmatprep.subr.mxu0 %v6848_v28  ;;  %8116 = vst [vmem:[#allocation45_spill] sm:$0xff] %v6857_v12  ;;  %8117 = vst [vmem:[#allocation46_spill] sm:$0xff] %v6860_v8  ;;  %v6863_v40 = vld [vmem:[#allocation11 + $0xc0] sm:$0xff]  ;;  %v6866_v28 = vld [vmem:[#allocation11 + $0xd0] sm:$0xff] }
 0x4e6   :  { %2807 = vmatpush1.msra.mxu1 %v6851_v6  ;;  %4507 = vmatpush3.msra.mxu0 %v6854_v5  ;;  %8118 = vst [vmem:[#allocation47_spill] sm:$0xff] %v6863_v40  ;;  %8119 = vst [vmem:[#allocation25_spill] sm:$0xff] %v6866_v28  ;;  %v6869_v6 = vld [vmem:[#allocation11 + $0xb0] sm:$0xff]  ;;  %v6872_v5 = vld [vmem:[#allocation11 + $0x238] sm:$0xff] }
 0x4e7   :  { %2808 = vmatprep.subr.mxu1 %v6857_v12  ;;  %4508 = vmatprep.subr.mxu0 %v6860_v8  ;;  %8120 = vst [vmem:[#allocation23_spill] sm:$0xff] %v6869_v6  ;;  %8121 = vst [vmem:[#allocation24_spill] sm:$0xff] %v6872_v5  ;;  %v6875_v12 = vld [vmem:[#allocation11 + $0xa8] sm:$0xff]  ;;  %v6878_v8 = vld [vmem:[#allocation11 + $0xb8] sm:$0xff] }
 0x4e8   :  { %2809 = vmatpush1.msra.mxu1 %v6863_v40  ;;  %4509 = vmatpush3.msra.mxu0 %v6866_v28  ;;  %8122 = vst [vmem:[#allocation26_spill] sm:$0xff] %v6875_v12  ;;  %8123 = vst [vmem:[#allocation51_spill] sm:$0xff] %v6878_v8  ;;  %v6881_v40 = vld [vmem:[#allocation11 + $0x98] sm:$0xff]  ;;  %v6884_v28 = vld [vmem:[#allocation11 + $0x220] sm:$0xff] }
 0x4e9   :  { %2810 = vmatprep.subr.mxu1 %v6869_v6  ;;  %4510 = vmatprep.subr.mxu0 %v6872_v5  ;;  %8124 = vst [vmem:[#allocation52_spill] sm:$0xff] %v6881_v40  ;;  %8125 = vst [vmem:[#allocation53_spill] sm:$0xff] %v6884_v28  ;;  %v6887_v6 = vld [vmem:[#allocation11 + $0x90] sm:$0xff]  ;;  %v6890_v5 = vld [vmem:[#allocation11 + $0xa0] sm:$0xff] }
 0x4ea   :  { %2811 = vmatpush1.msra.mxu1 %v6875_v12  ;;  %4511 = vmatpush3.msra.mxu0 %v6878_v8  ;;  %8126 = vst [vmem:[#allocation54_spill] sm:$0xff] %v6887_v6  ;;  %8127 = vst [vmem:[#allocation55_spill] sm:$0xff] %v6890_v5  ;;  %v6893_v12 = vld [vmem:[#allocation11 + $0x80] sm:$0xff]  ;;  %v6896_v8 = vld [vmem:[#allocation11 + $0x208] sm:$0xff] }
 0x4eb   :  { %2812 = vmatprep.subr.mxu1 %v6881_v40  ;;  %4512 = vmatprep.subr.mxu0 %v6884_v28  ;;  %8128 = vst [vmem:[#allocation56_spill] sm:$0xff] %v6893_v12  ;;  %8129 = vst [vmem:[#allocation57_spill] sm:$0xff] %v6896_v8  ;;  %v6899_v40 = vld [vmem:[#allocation11 + $0x78] sm:$0xff]  ;;  %v6902_v28 = vld [vmem:[#allocation11 + $0x88] sm:$0xff] }
 0x4ec   :  { %2813 = vmatpush1.msra.mxu1 %v6887_v6  ;;  %4513 = vmatpush3.msra.mxu0 %v6890_v5  ;;  %8130 = vst [vmem:[#allocation58_spill] sm:$0xff] %v6899_v40  ;;  %8131 = vst [vmem:[#allocation59_spill] sm:$0xff] %v6902_v28  ;;  %v6905_v6 = vld [vmem:[#allocation11 + $0x68] sm:$0xff]  ;;  %v6908_v5 = vld [vmem:[#allocation11 + $0x1f0] sm:$0xff] }
 0x4ed   :  { %2814 = vmatprep.subr.mxu1 %v6893_v12  ;;  %4514 = vmatprep.subr.mxu0 %v6896_v8  ;;  %8132 = vst [vmem:[#allocation49_spill] sm:$0xff] %v6905_v6  ;;  %8133 = vst [vmem:[#allocation60_spill] sm:$0xff] %v6908_v5  ;;  %v6911_v12 = vld [vmem:[#allocation11 + $0x60] sm:$0xff]  ;;  %v6915_v8 = vld [vmem:[#allocation11 + $0x50] sm:$0xff] }
 0x4ee   :  { %2815 = vmatpush1.msra.mxu1 %v6899_v40  ;;  %4515 = vmatpush3.msra.mxu0 %v6902_v28  ;;  %8134 = vst [vmem:[#allocation50_spill] sm:$0xff] %v6911_v12  ;;  %8135 = vst [vmem:[#allocation61_spill] sm:$0xff] %v6915_v8  ;;  %v6919_v28 = vld [vmem:[#allocation11 + $0x48] sm:$0xff] }
 0x4ef   :  { %2816 = vmatprep.subr.mxu1 %v6905_v6  ;;  %4516 = vmatprep.subr.mxu0 %v6908_v5  ;;  %8136 = vst [vmem:[#allocation27_spill] sm:$0xff] %v6919_v28  ;;  %v6923_v6 = vld [vmem:[#allocation11 + $0x38] sm:$0xff] }
 0x4f0   :  { %2817 = vmatpush1.msra.mxu1 %v6911_v12  ;;  %4517 = vmatpush3.msra.mxu0 %v8059_v16  ;;  %8137 = vst [vmem:[#allocation62_spill] sm:$0xff] %v6923_v6  ;;  %v6927_v12 = vld [vmem:[#allocation11 + $0x30] sm:$0xff]  ;;  %v6931_v16 = vld [vmem:[#allocation11 + $0x20] sm:$0xff] }
 0x4f1   :  { %2818 = vmatprep.subr.mxu1 %v6915_v8  ;;  %4518 = vmatprep.subr.mxu0 %v8061_v24  ;;  %8138 = vst [vmem:[#allocation35_spill] sm:$0xff] %v6927_v12  ;;  %8139 = vst [vmem:[#allocation63_spill] sm:$0xff] %v6931_v16  ;;  %v6935_v24 = vld [vmem:[#allocation11 + $0x18] sm:$0xff] }
 0x4f2   :  { %2819 = vmatpush1.msra.mxu1 %v6919_v28  ;;  %4519 = vmatpush3.msra.mxu0 %v8063_v15  ;;  %8140 = vst [vmem:[#allocation28_spill] sm:$0xff] %v6935_v24  ;;  %v6939_v15 = vld [vmem:[#allocation11 + $0x8] sm:$0xff] }
 0x4f3   :  { %2820 = vmatprep.subr.mxu1 %v6923_v6  ;;  %4520 = vmatprep.subr.mxu0 %v8065_v21  ;;  %8141 = vst [vmem:[#allocation64_spill] sm:$0xff] %v6939_v15  ;;  %v6943_v21 = vld [vmem:[#allocation11] sm:$0xff] }
 0x4f4   :  { %2821 = vmatpush1.msra.mxu1 %v6927_v12  ;;  %4521 = vmatpush3.msra.mxu0 %v8067_v14  ;;  %8142 = vst [vmem:[#allocation37_spill] sm:$0xff] %v6943_v21  ;;  %v6947_v14 = vld [vmem:[#allocation11 + $0x2f0] sm:$0xff] }
 0x4f5   :  { %2822 = vmatprep.subr.mxu1 %v6931_v16  ;;  %4522 = vmatprep.subr.mxu0 %v8069_v48  ;;  %8143 = vst [vmem:[#allocation65_spill] sm:$0xff] %v6947_v14  ;;  %v6950_v48 = vld [vmem:[#allocation11 + $0x170] sm:$0xff] }
 0x4f6   :  { %2823 = vmatpush1.msra.mxu1 %v6935_v24  ;;  %4523 = vmatpush3.msra.mxu0 %v8071_v13  ;;  %8144 = vst [vmem:[#allocation29_spill] sm:$0xff] %v6950_v48  ;;  %v6953_v13 = vld [vmem:[#allocation11 + $0x2e8] sm:$0xff] }
 0x4f7   :  { %2824 = vmatprep.subr.mxu1 %v6939_v15  ;;  %4524 = vmatprep.subr.mxu0 %v8073_v50  ;;  %8145 = vst [vmem:[#allocation66_spill] sm:$0xff] %v6953_v13  ;;  %v6956_v15 = vld [vmem:[#allocation11 + $0x2d8] sm:$0xff]  ;;  %v6959_v50 = vld [vmem:[#allocation11 + $0x2d0] sm:$0xff] }
 0x4f8   :  { %2825 = vmatpush1.msra.mxu1 %v6943_v21  ;;  %4525 = vmatpush3.msra.mxu0 %v8075_v34  ;;  %8146 = vst [vmem:[#allocation39_spill] sm:$0xff] %v6956_v15  ;;  %8147 = vst [vmem:[#allocation67_spill] sm:$0xff] %v6959_v50  ;;  %v6962_v34 = vld [vmem:[#allocation11 + $0x2c0] sm:$0xff] }
 0x4f9   :  { %2826 = vmatprep.subr.mxu1 %v6947_v14  ;;  %3205 = vmatprep.subr.mxu0 %v6950_v48  ;;  %8148 = vst [vmem:[#allocation30_spill] sm:$0xff] %v6962_v34 }
 0x4fa   :  { %2827 = vmatpush2.msra.mxu1 %v6953_v13 }
 0x4fb   :  { %2828 = vmatprep.subr.mxu1 %v6956_v15 }
 0x4fc   :  { %2829 = vmatpush2.msra.mxu1 %v6959_v50 }
 0x4fd   :  { %2830 = vmatprep.subr.mxu1 %v6962_v34  ;;  %v7009_v34 = vld [vmem:[#allocation2 + $0x4c] ss:$8 sm:$0x7] }
 0x4fe   :  { %2831 = vmatpush2.msra.mxu1 %v8082_v0  ;;  %v8149_v0 = vld [vmem:[#allocation84_spill] sm:$0xff]  ;;  %v2596_v21 = vrot.slane %v7009_v34, 1 }
 0x4ff   :  { %2832 = vmatprep.subr.mxu1 %v8083_v46  ;;  %v8150_v46 = vld [vmem:[#allocation85_spill] sm:$0xff] }
 0x500   :  { %2833 = vmatpush2.msra.mxu1 %v8084_v47  ;;  %v8151_v47 = vld [vmem:[#allocation86_spill] sm:$0xff] }
 0x501   :  { %2834 = vmatprep.subr.mxu1 %v8085_v36  ;;  %v8152_v36 = vld [vmem:[#allocation87_spill] sm:$0xff] }
 0x502   :  { %2835 = vmatpush2.msra.mxu1 %v8086_v3  ;;  %v8153_v3 = vld [vmem:[#allocation88_spill] sm:$0xff] }
 0x503   :  { %2836 = vmatprep.subr.mxu1 %v8087_v20  ;;  %v8154_v20 = vld [vmem:[#allocation89_spill] sm:$0xff] }
 0x504   :  { %2837 = vmatpush2.msra.mxu1 %v8088_v54  ;;  %v8155_v54 = vld [vmem:[#allocation90_spill] sm:$0xff] }
 0x505   :  { %2838 = vmatprep.subr.mxu1 %v8089_v35  ;;  %v8156_v35 = vld [vmem:[#allocation91_spill] sm:$0xff] }
 0x506   :  { %2839 = vmatpush2.msra.mxu1 %v8090_v39  ;;  %v8157_v39 = vld [vmem:[#allocation92_spill] sm:$0xff] }
 0x507   :  { %2840 = vmatprep.subr.mxu1 %v8091_v26  ;;  %v8158_v26 = vld [vmem:[#allocation93_spill] sm:$0xff] }
 0x508   :  { %2841 = vmatpush2.msra.mxu1 %v8092_v27  ;;  %v8159_v27 = vld [vmem:[#allocation94_spill] sm:$0xff] }
 0x509   :  { %2842 = vmatprep.subr.mxu1 %v8093_v52  ;;  %v8160_v52 = vld [vmem:[#allocation95_spill] sm:$0xff] }
 0x50a   :  { %2843 = vmatpush2.msra.mxu1 %v8094_v37  ;;  %v6992_v37 = vld [vmem:[#allocation11 + $0x2f8] sm:$0xff] }
 0x50b   :  { %2844 = vmatprep.subr.mxu1 %v8095_v58  ;;  %8161 = vst [vmem:[#allocation68_spill] sm:$0xff] %v6992_v37 }
 0x50c   :  { %2845 = vmatpush2.msra.mxu1 %v8096_v53 }
 0x50d   :  { %2846 = vmatprep.subr.mxu1 %v8149_v0 }
 0x50e   :  { %2847 = vmatpush2.msra.mxu1 %v8150_v46 }
 0x50f   :  { %2848 = vmatprep.subr.mxu1 %v8151_v47 }
 0x510   :  { %2849 = vmatpush2.msra.mxu1 %v8152_v36 }
 0x511   :  { %2850 = vmatprep.subr.mxu1 %v8153_v3  ;;  %v6998_v3 = vld [vmem:[#allocation2 + $0x4] ss:$8 sm:$0x7] }
 0x512   :  { %2851 = vmatpush2.msra.mxu1 %v8154_v20 }
 0x513   :  { %2852 = vmatprep.subr.mxu1 %v8155_v54 }
 0x514   :  { %2853 = vmatpush2.msra.mxu1 %v8156_v35 }
 0x515   :  { %2854 = vmatprep.subr.mxu1 %v8157_v39 }
 0x516   :  { %2855 = vmatpush2.msra.mxu1 %v8158_v26  ;;  %v7002_v26 = vld [vmem:[#allocation2 + $0x1c] ss:$8 sm:$0x7] }
 0x517   :  { %2856 = vmatprep.subr.mxu1 %v8159_v27  ;;  %v7004_v27 = vld [vmem:[#allocation2 + $0x34] ss:$8 sm:$0x7] }
 0x518   :  { %2857 = vmatpush2.msra.mxu1 %v8160_v52 }
 0x519   :  { %4529 = vmatprep.subr.mxu1 %v6992_v37 }
 0x599   :  { %v2449_v58 = vpop.f32.mrf.mxu0  ;;  %v4491_v16 = vpop.f32.mrf.mxu1 }
 0x59a   :  { %v2539_v53 = vrot.slane %v2449_v58, %v5935_v59 }
 0x59b   :  { %v2451_v0 = vpop.f32.mrf.mxu0  ;;  %v4492_v6 = vpop.f32.mrf.mxu1 }
 0x59c   :  { %v2540_v46 = vcombine.high %v2539_v53, %v2539_v53  ;;  %v2547_v47 = vrot.slane %v2539_v53, %v5935_v59  ;;  %v2608_v36 = vrot.slane %v2451_v0, %v5935_v59 }
 0x59e   :  { %v2554_v20 = vrot.slane %v2540_v46, %v5935_v59  ;;  %v2555_v54 = vcombine.high %v2547_v47, %v2547_v47  ;;  %v2561_v35 = vadd.f32 %v2547_v47, %v6998_v3  ;;  %v2609_v39 = vcombine.high %v2608_v36, %v2608_v36 }
 0x59f   :  { %v2616_v52 = vrot.slane %v2608_v36, %v5935_v59  ;;  %v2593_v46 = vrot.slane %v6998_v3, 1  ;;  %v2594_v36 = vrot.slane %v7002_v26, 1 }
 0x5a0   :  { %v2556_v58 = vcombine.high %v2554_v20, %v2554_v20  ;;  %v2562_v37 = vadd.f32 %v2554_v20, %v7002_v26  ;;  %v2563_v53 = vadd.f32 %v2555_v54, %v7004_v27  ;;  %v4266_v0 = vmul.f32 -1.442695, %v2561_v35 }
 0x5a1   :  { %v2623_v50 = vrot.slane %v2609_v39, %v5935_v59  ;;  %v2624_v47 = vcombine.high %v2616_v52, %v2616_v52  ;;  %v2595_v54 = vrot.slane %v7004_v27, 1  ;;  %v2630_v35 = vadd.f32 %v2616_v52, %v2593_v46 }
 0x5a2   :  { %v2564_v15 = vadd.f32 %v2556_v58, %v7009_v34  ;;  %4873 = vpow2.f32 %v4266_v0  ;;  %v4267_v13 = vmul.f32 -1.442695, %v2562_v37  ;;  %v4268_v48 = vmul.f32 -1.442695, %v2563_v53 }
 0x5a3   :  { %v2625_v14 = vcombine.high %v2623_v50, %v2623_v50  ;;  %v2631_v24 = vadd.f32 %v2623_v50, %v2594_v36  ;;  %v2632_v39 = vadd.f32 %v2624_v47, %v2595_v54  ;;  %v4270_v58 = vmul.f32 -1.442695, %v2630_v35 }
 0x5a4   :  { %4875 = vpow2.f32 %v4267_v13  ;;  %v4269_v20 = vmul.f32 -1.442695, %v2564_v15  ;;  %v4493_v15 = vadd.f32 %v4492_v6, %v4491_v16 }
 0x5a5   :  { %4877 = vpow2.f32 %v4268_v48  ;;  %v2633_v12 = vadd.f32 %v2625_v14, %v2596_v21  ;;  %v4271_v0 = vmul.f32 -1.442695, %v2631_v24  ;;  %v4272_v37 = vmul.f32 -1.442695, %v2632_v39 }
 0x5a6   :  { %4879 = vpow2.f32 %v4269_v20  ;;  %v2658_v50 = vadd.f32 %v6731_v4, %v4493_v15 }
 0x5a7   :  { %v4273_v53 = vmul.f32 -1.442695, %v2633_v12  ;;  %4881 = vpow2.f32 %v4270_v58 }
 0x5a8   :  { %4883 = vpow2.f32 %v4271_v0  ;;  %v2666_v12 = vrot.slane %v2658_v50, %v5935_v59 }
 0x5a9   :  { %4885 = vpow2.f32 %v4272_v37 }
 0x5aa   :  { %4887 = vpow2.f32 %v4273_v53  ;;  %v2667_v6 = vcombine.high %v2666_v12, %v2666_v12  ;;  %v2674_v39 = vrot.slane %v2666_v12, %v5935_v59  ;;  %v2694_v12 = vrot.slane %v7004_v27, 2 }
 0x5ac   :  { %v2681_v0 = vrot.slane %v2667_v6, %v5935_v59 }
 0x5ae   :  { %v2683_v50 = vcombine.high %v2681_v0, %v2681_v0 }
 0x5af   :  { %v4874_v13 = vpop.eup %4873 }
 0x5b0   :  { %v2577_v52 = vadd.f32 1.0, %v4874_v13 }
 0x5b1   :  { %v4876_v48 = vpop.eup %4875 }
 0x5b2   :  { %v4878_v46 = vpop.eup %4877  ;;  %v2578_v28 = vadd.f32 1.0, %v4876_v48  ;;  %4889 = vrcp.f32 %v2577_v52  ;;  %v2693_v52 = vrot.slane %v7002_v26, 2  ;;  %v2682_v48 = vcombine.high %v2674_v39, %v2674_v39 }
 0x5b3   :  { %v4880_v47 = vpop.eup %4879  ;;  %v2579_v21 = vadd.f32 1.0, %v4878_v46 }
 0x5b4   :  { %v2580_v14 = vadd.f32 1.0, %v4880_v47  ;;  %4891 = vrcp.f32 %v2578_v28  ;;  %v4882_v24 = vpop.eup %4881  ;;  %v2692_v28 = vrot.slane %v6998_v3, 2 }
 0x5b5   :  { %4893 = vrcp.f32 %v2579_v21  ;;  %v4884_v36 = vpop.eup %4883  ;;  %v2646_v54 = vadd.f32 1.0, %v4882_v24 }
 0x5b6   :  { %4895 = vrcp.f32 %v2580_v14  ;;  %v4886_v16 = vpop.eup %4885  ;;  %v2647_v35 = vadd.f32 1.0, %v4884_v36  ;;  %v2695_v36 = vrot.slane %v7009_v34, 2 }
 0x5b7   :  { %v4888_v20 = vpop.eup %4887  ;;  %v2648_v58 = vadd.f32 1.0, %v4886_v16  ;;  %4897 = vrcp.f32 %v2646_v54 }
 0x5b8   :  { %v2649_v53 = vadd.f32 1.0, %v4888_v20  ;;  %4899 = vrcp.f32 %v2647_v35 }
 0x5b9   :  { %4901 = vrcp.f32 %v2648_v58 }
 0x5ba   :  { %4903 = vrcp.f32 %v2649_v53 }
 0x5bf   :  { %v4890_v37 = vpop.eup %4889 }
 0x5c0   :  { %v2688_v15 = vmul.f32 %v4890_v37, %v2674_v39 }
 0x5c1   :  { %v4892_v13 = vpop.eup %4891 }
 0x5c2   :  { %v4894_v46 = vpop.eup %4893  ;;  %v2689_v47 = vmul.f32 %v4892_v13, %v2681_v0  ;;  %v2700_v21 = vadd.f32 %v2692_v28, %v2688_v15 }
 0x5c3   :  { %v4896_v14 = vpop.eup %4895  ;;  %v2690_v24 = vmul.f32 %v4894_v46, %v2682_v48 }
 0x5c4   :  { %v2691_v3 = vmul.f32 %v4896_v14, %v2683_v50  ;;  %v2701_v6 = vadd.f32 %v2693_v52, %v2689_v47  ;;  %4905 = vtanh.f32 %v2700_v21  ;;  %v4898_v26 = vpop.eup %4897 }
 0x5c5   :  { %v2702_v16 = vadd.f32 %v2694_v12, %v2690_v24  ;;  %v4900_v54 = vpop.eup %4899  ;;  %v2708_v58 = vsub.f32 1.0, %v4898_v26  ;;  %v2716_v53 = vmul.f32 %v4898_v26, %v6743_v9 }
 0x5c6   :  { %v2703_v20 = vadd.f32 %v2695_v36, %v2691_v3  ;;  %4907 = vtanh.f32 %v2701_v6  ;;  %v4902_v35 = vpop.eup %4901  ;;  %v2709_v37 = vsub.f32 1.0, %v4900_v54  ;;  %v2717_v48 = vmul.f32 %v4900_v54, %v6747_v11 }
 0x5c7   :  { %4909 = vtanh.f32 %v2702_v16  ;;  %v4904_v39 = vpop.eup %4903  ;;  %v2710_v34 = vsub.f32 1.0, %v4902_v35  ;;  %v2718_v21 = vmul.f32 %v4902_v35, %v6750_v56 }
 0x5c8   :  { %4911 = vtanh.f32 %v2703_v20  ;;  %v2711_v13 = vsub.f32 1.0, %v4904_v39  ;;  %v2719_v12 = vmul.f32 %v4904_v39, %v6754_v19 }
 0x5d1   :  { %v4906_v0 = vpop.eup %4905 }
 0x5d2   :  { %v2712_v27 = vmul.f32 %v4906_v0, %v2708_v58 }
 0x5d3   :  { %v4908_v28 = vpop.eup %4907 }
 0x5d4   :  { %v4910_v15 = vpop.eup %4909  ;;  %v2713_v52 = vmul.f32 %v4908_v28, %v2709_v37  ;;  %v7027_v46 = vadd.f32 %v2716_v53, %v2712_v27 }
 0x5d5   :  { %v4912_v50 = vpop.eup %4911  ;;  %v2714_v47 = vmul.f32 %v4910_v15, %v2710_v34 }
 0x5d6   :  { %v2715_v14 = vmul.f32 %v4912_v50, %v2711_v13  ;;  %v7031_v24 = vadd.f32 %v2717_v48, %v2713_v52  ;;  %2724 = vst [vmem:[#allocation3 + $0x4] sm:$0x1] %v7027_v46  ;;  %v2732_v36 = vmul.f32 %v7027_v46, %v6035_v10  ;;  %v2728_v56 = vmul.f32 %v7027_v46, %v6031_v31  ;;  %v8162_v52 = vld [vmem:[#allocation34_spill] sm:$0xff]  ;;  %v8163_v48 = vld [vmem:[#allocation36_spill] sm:$0xff] }
 0x5d7   :  { %v7034_v9 = vadd.f32 %v2718_v21, %v2714_v47  ;;  %v8164_v50 = vld [vmem:[#allocation38_spill] sm:$0xff]  ;;  %v8165_v47 = vld [vmem:[#allocation40_spill] sm:$0xff] }
 0x5d8   :  { %v7038_v3 = vadd.f32 %v2719_v12, %v2715_v14  ;;  %2725 = vst [vmem:[#allocation3 + $0xc] sm:$0x1] %v7031_v24  ;;  %v2733_v11 = vmul.f32 %v7031_v24, %v6043_v29  ;;  %v2729_v19 = vmul.f32 %v7031_v24, %v6039_v51  ;;  %v8166_v21 = vld [vmem:[#allocation42_spill] sm:$0xff]  ;;  %v8167_v14 = vld [vmem:[#allocation44_spill] sm:$0xff]  ;;  %v8168_v12 = vld [vmem:[#allocation45_spill] sm:$0xff] }
 0x5d9   :  { %2726 = vst [vmem:[#allocation4 + $0x3] sm:$0x1] %v7034_v9  ;;  %v2734_v6 = vmul.f32 %v7034_v9, %v6053_v62  ;;  %v2730_v16 = vmul.f32 %v7034_v9, %v7965_v18 }
 0x5da   :  { %2727 = vst [vmem:[#allocation4 + $0xb] sm:$0x1] %v7038_v3  ;;  %v2735_v20 = vmul.f32 %v7038_v3, %v6056_v55  ;;  %v2769_v26 = vcombine.low %v2732_v36, %v2733_v11  ;;  %v2731_v54 = vmul.f32 %v7038_v3, %v6027_v1  ;;  %v2740_v35 = vcombine.low %v2728_v56, %v2729_v19  ;;  %v8169_v36 = vld [vmem:[#allocation46_spill] sm:$0xff]  ;;  %v8170_v11 = vld [vmem:[#allocation47_spill] sm:$0xff]  ;;  %v8171_v56 = vld [vmem:[#allocation25_spill] sm:$0xff] }
 0x5db   :  { %v8172_v19 = vld [vmem:[#allocation23_spill] sm:$0xff] }
 0x5dc   :  { %v2770_v39 = vcombine.low %v2734_v6, %v2735_v20  ;;  %v2741_v58 = vcombine.low %v2730_v16, %v2731_v54  ;;  %v2777_v0 = vrot.slane %v2769_v26, %v5935_v59  ;;  %v2748_v27 = vrot.slane %v2740_v35, %v5935_v59  ;;  %v8173_v6 = vld [vmem:[#allocation24_spill] sm:$0xff]  ;;  %v8174_v16 = vld [vmem:[#allocation26_spill] sm:$0xff]  ;;  %v8175_v20 = vld [vmem:[#allocation51_spill] sm:$0xff] }
 0x5dd   :  { %v8176_v26 = vld [vmem:[#allocation52_spill] sm:$0xff]  ;;  %v8177_v54 = vld [vmem:[#allocation53_spill] sm:$0xff]  ;;  %v8178_v35 = vld [vmem:[#allocation54_spill] sm:$0xff] }
 0x5de   :  { %v2784_v37 = vrot.slane %v2770_v39, %v5935_v59  ;;  %v2755_v53 = vrot.slane %v2741_v58, %v5935_v59  ;;  %v8179_v39 = vld [vmem:[#allocation55_spill] sm:$0xff]  ;;  %v8180_v58 = vld [vmem:[#allocation56_spill] sm:$0xff] }
 0x5e0   :  { %v2785_v28 = vcombine.low %v2777_v0, %v2784_v37  ;;  %v2756_v34 = vcombine.low %v2748_v27, %v2755_v53  ;;  %v8181_v0 = vld [vmem:[#allocation57_spill] sm:$0xff]  ;;  %v8182_v37 = vld [vmem:[#allocation59_spill] sm:$0xff]  ;;  %v8184_v53 = vld [vmem:[#allocation50_spill] sm:$0xff] }
 0x5e1   :  { %v8183_v27 = vld [vmem:[#allocation49_spill] sm:$0xff] }
 0x5e2   :  { %v2792_v15 = vrot.slane %v2785_v28, %v5935_v59  ;;  %v2763_v13 = vrot.slane %v2756_v34, %v5935_v59  ;;  %v7108_v28 = vld [vmem:[#allocation11 + $0x70] sm:$0xff]  ;;  %v7112_v34 = vld [vmem:[#allocation11 + $0x1d8] sm:$0xff] }
 0x5e3   :  { %8185 = vst [vmem:[#allocation69_spill] sm:$0xff] %v7108_v28  ;;  %8186 = vst [vmem:[#allocation70_spill] sm:$0xff] %v7112_v34 }
 0x5e4   :  { %2858 = vmatprep.mubr.f32.mxu1 %v2792_v15  ;;  %2929 = vmatprep.mubr.f32.mxu0 %v2792_v15  ;;  %v8187_v15 = vld [vmem:[#allocation27_spill] sm:$0xff] }
 0x5e5   :  { %2859 = vmatmul.mubr.f32.vlgmr.msra.gmra.mxu1 %v2763_v13  ;;  %2930 = vmatmul.mubr.f32.vlgmr.msra.gmra.mxu0 %v2763_v13  ;;  %v7116_v13 = vld [vmem:[#allocation11 + $0x58] sm:$0xff] }
 0x5e6   :  { %3206 = vmatpush1.msra.mxu0 %v6779_v63  ;;  %4530 = vmatpush3.msra.mxu1 %v6782_v49  ;;  %8188 = vst [vmem:[#allocation71_spill] sm:$0xff] %v7116_v13 }
 0x5e7   :  { %3207 = vmatprep.subr.mxu0 %v6785_v57  ;;  %4531 = vmatprep.subr.mxu1 %v6788_v30 }
 0x5e8   :  { %3208 = vmatpush1.msra.mxu0 %v6791_v17  ;;  %4532 = vmatpush3.msra.mxu1 %v6794_v23 }
 0x5e9   :  { %3209 = vmatprep.subr.mxu0 %v6797_v2  ;;  %4533 = vmatprep.subr.mxu1 %v6800_v38 }
 0x5ea   :  { %3210 = vmatpush1.msra.mxu0 %v6803_v61  ;;  %4534 = vmatpush3.msra.mxu1 %v6806_v43 }
 0x5eb   :  { %3211 = vmatprep.subr.mxu0 %v6809_v22  ;;  %4535 = vmatprep.subr.mxu1 %v6812_v41 }
 0x5ec   :  { %3212 = vmatpush1.msra.mxu0 %v6815_v33  ;;  %4536 = vmatpush3.msra.mxu1 %v6818_v44 }
 0x5ed   :  { %3213 = vmatprep.subr.mxu0 %v6821_v7  ;;  %4537 = vmatprep.subr.mxu1 %v6824_v45 }
 0x5ee   :  { %3214 = vmatpush1.msra.mxu0 %v6827_v42  ;;  %4538 = vmatpush3.msra.mxu1 %v6830_v32 }
 0x5ef   :  { %3215 = vmatprep.subr.mxu0 %v6833_v25  ;;  %4539 = vmatprep.subr.mxu1 %v6836_v60 }
 0x5f0   :  { %3216 = vmatpush1.msra.mxu0 %v8162_v52  ;;  %4540 = vmatpush3.msra.mxu1 %v8163_v48 }
 0x5f1   :  { %3217 = vmatprep.subr.mxu0 %v8164_v50  ;;  %4541 = vmatprep.subr.mxu1 %v8165_v47 }
 0x5f2   :  { %3218 = vmatpush1.msra.mxu0 %v8166_v21  ;;  %4542 = vmatpush3.msra.mxu1 %v8167_v14 }
 0x5f3   :  { %3219 = vmatprep.subr.mxu0 %v8168_v12  ;;  %4543 = vmatprep.subr.mxu1 %v8169_v36 }
 0x5f4   :  { %3220 = vmatpush1.msra.mxu0 %v8170_v11  ;;  %4544 = vmatpush3.msra.mxu1 %v8171_v56 }
 0x5f5   :  { %3221 = vmatprep.subr.mxu0 %v8172_v19  ;;  %4545 = vmatprep.subr.mxu1 %v8173_v6 }
 0x5f6   :  { %3222 = vmatpush1.msra.mxu0 %v8174_v16  ;;  %4546 = vmatpush3.msra.mxu1 %v8175_v20 }
 0x5f7   :  { %3223 = vmatprep.subr.mxu0 %v8176_v26  ;;  %4547 = vmatprep.subr.mxu1 %v8177_v54  ;;  %v7245_v26 = vld [vmem:[#allocation2 + $0x4d] ss:$8 sm:$0x7] }
 0x5f8   :  { %3224 = vmatpush1.msra.mxu0 %v8178_v35  ;;  %4548 = vmatpush3.msra.mxu1 %v8179_v39  ;;  %v3007_v11 = vrot.slane %v7245_v26, 1 }
 0x5f9   :  { %3225 = vmatprep.subr.mxu0 %v8180_v58  ;;  %4549 = vmatprep.subr.mxu1 %v8181_v0 }
 0x5fa   :  { %3226 = vmatpush1.msra.mxu0 %v6899_v40  ;;  %4550 = vmatpush3.msra.mxu1 %v8182_v37  ;;  %v8204_v37 = vld [vmem:[#allocation39_spill] sm:$0xff] }
 0x5fb   :  { %3227 = vmatprep.subr.mxu0 %v8183_v27  ;;  %4551 = vmatprep.subr.mxu1 %v6908_v5  ;;  %v8189_v27 = vld [vmem:[#allocation62_spill] sm:$0xff]  ;;  %v7120_v5 = vld [vmem:[#allocation11 + $0x1c0] sm:$0xff]  ;;  %v7149_v40 = vld [vmem:[#allocation11 + $0x2b8] sm:$0xff] }
 0x5fc   :  { %3228 = vmatpush1.msra.mxu0 %v8184_v53  ;;  %4552 = vmatpush3.msra.mxu1 %v7108_v28  ;;  %8190 = vst [vmem:[#allocation72_spill] sm:$0xff] %v7120_v5  ;;  %v8191_v53 = vld [vmem:[#allocation35_spill] sm:$0xff]  ;;  %v7124_v28 = vld [vmem:[#allocation11 + $0x40] sm:$0xff]  ;;  %8207 = vst [vmem:[#allocation33_spill] sm:$0xff] %v7149_v40 }
 0x5fd   :  { %3229 = vmatprep.subr.mxu0 %v6915_v8  ;;  %4553 = vmatprep.subr.mxu1 %v7112_v34  ;;  %8192 = vst [vmem:[#allocation73_spill] sm:$0xff] %v7124_v28  ;;  %v8193_v8 = vld [vmem:[#allocation63_spill] sm:$0xff]  ;;  %v7128_v34 = vld [vmem:[#allocation11 + $0x1a8] sm:$0xff] }
 0x5fe   :  { %3230 = vmatpush1.msra.mxu0 %v8187_v15  ;;  %4554 = vmatpush3.msra.mxu1 %v7116_v13  ;;  %8194 = vst [vmem:[#allocation41_spill] sm:$0xff] %v7128_v34  ;;  %v8195_v15 = vld [vmem:[#allocation28_spill] sm:$0xff]  ;;  %v7132_v13 = vld [vmem:[#allocation11 + $0x28] sm:$0xff] }
 0x5ff   :  { %3231 = vmatprep.subr.mxu0 %v8189_v27  ;;  %4555 = vmatprep.subr.mxu1 %v7120_v5  ;;  %8196 = vst [vmem:[#allocation31_spill] sm:$0xff] %v7132_v13  ;;  %v8197_v27 = vld [vmem:[#allocation64_spill] sm:$0xff]  ;;  %v7136_v5 = vld [vmem:[#allocation11 + $0x190] sm:$0xff] }
 0x600   :  { %3232 = vmatpush1.msra.mxu0 %v8191_v53  ;;  %4556 = vmatpush3.msra.mxu1 %v7124_v28  ;;  %8198 = vst [vmem:[#allocation43_spill] sm:$0xff] %v7136_v5  ;;  %v8199_v53 = vld [vmem:[#allocation37_spill] sm:$0xff]  ;;  %v7140_v28 = vld [vmem:[#allocation11 + $0x10] sm:$0xff] }
 0x601   :  { %3233 = vmatprep.subr.mxu0 %v8193_v8  ;;  %4557 = vmatprep.subr.mxu1 %v7128_v34  ;;  %8200 = vst [vmem:[#allocation32_spill] sm:$0xff] %v7140_v28  ;;  %v8201_v8 = vld [vmem:[#allocation65_spill] sm:$0xff] }
 0x602   :  { %3234 = vmatpush1.msra.mxu0 %v8195_v15  ;;  %4558 = vmatpush3.msra.mxu1 %v7132_v13  ;;  %v8202_v34 = vld [vmem:[#allocation29_spill] sm:$0xff]  ;;  %v8203_v15 = vld [vmem:[#allocation66_spill] sm:$0xff]  ;;  %v8205_v13 = vld [vmem:[#allocation67_spill] sm:$0xff] }
 0x603   :  { %3235 = vmatprep.subr.mxu0 %v8197_v27  ;;  %4559 = vmatprep.subr.mxu1 %v7136_v5  ;;  %v8206_v27 = vld [vmem:[#allocation30_spill] sm:$0xff] }
 0x604   :  { %3236 = vmatpush1.msra.mxu0 %v8199_v53  ;;  %4560 = vmatpush3.msra.mxu1 %v7140_v28  ;;  %v7152_v53 = vld [vmem:[#allocation11 + $0x2a8] sm:$0xff]  ;;  %v7155_v28 = vld [vmem:[#allocation11 + $0x2a0] sm:$0xff] }
 0x605   :  { %3237 = vmatprep.subr.mxu0 %v8201_v8  ;;  %3616 = vmatprep.subr.mxu1 %v8202_v34  ;;  %8208 = vst [vmem:[#allocation74_spill] sm:$0xff] %v7152_v53  ;;  %8209 = vst [vmem:[#allocation75_spill] sm:$0xff] %v7155_v28  ;;  %v7158_v34 = vld [vmem:[#allocation11 + $0x290] sm:$0xff] }
 0x606   :  { %3238 = vmatpush2.msra.mxu0 %v8203_v15  ;;  %8210 = vst [vmem:[#allocation76_spill] sm:$0xff] %v7158_v34 }
 0x607   :  { %3239 = vmatprep.subr.mxu0 %v8204_v37  ;;  %v7161_v37 = vld [vmem:[#allocation11 + $0x288] sm:$0xff] }
 0x608   :  { %3240 = vmatpush2.msra.mxu0 %v8205_v13  ;;  %8211 = vst [vmem:[#allocation77_spill] sm:$0xff] %v7161_v37 }
 0x609   :  { %3241 = vmatprep.subr.mxu0 %v8206_v27  ;;  %v7164_v27 = vld [vmem:[#allocation11 + $0x278] sm:$0xff] }
 0x60a   :  { %3242 = vmatpush2.msra.mxu0 %v7149_v40  ;;  %8212 = vst [vmem:[#allocation78_spill] sm:$0xff] %v7164_v27  ;;  %v7167_v40 = vld [vmem:[#allocation11 + $0x270] sm:$0xff] }
 0x60b   :  { %3243 = vmatprep.subr.mxu0 %v7152_v53  ;;  %8213 = vst [vmem:[#allocation79_spill] sm:$0xff] %v7167_v40  ;;  %v7170_v53 = vld [vmem:[#allocation11 + $0x260] sm:$0xff] }
 0x60c   :  { %3244 = vmatpush2.msra.mxu0 %v7155_v28  ;;  %8214 = vst [vmem:[#allocation80_spill] sm:$0xff] %v7170_v53  ;;  %v7173_v28 = vld [vmem:[#allocation11 + $0x258] sm:$0xff] }
 0x60d   :  { %3245 = vmatprep.subr.mxu0 %v7158_v34  ;;  %8215 = vst [vmem:[#allocation81_spill] sm:$0xff] %v7173_v28  ;;  %v7176_v34 = vld [vmem:[#allocation11 + $0x248] sm:$0xff] }
 0x60e   :  { %3246 = vmatpush2.msra.mxu0 %v7161_v37  ;;  %8216 = vst [vmem:[#allocation82_spill] sm:$0xff] %v7176_v34  ;;  %v7179_v37 = vld [vmem:[#allocation11 + $0x240] sm:$0xff] }
 0x60f   :  { %3247 = vmatprep.subr.mxu0 %v7164_v27  ;;  %8217 = vst [vmem:[#allocation83_spill] sm:$0xff] %v7179_v37  ;;  %v7182_v27 = vld [vmem:[#allocation11 + $0x230] sm:$0xff] }
 0x610   :  { %3248 = vmatpush2.msra.mxu0 %v7167_v40  ;;  %8218 = vst [vmem:[#allocation48_spill] sm:$0xff] %v7182_v27  ;;  %v7185_v40 = vld [vmem:[#allocation11 + $0x228] sm:$0xff] }
 0x611   :  { %3249 = vmatprep.subr.mxu0 %v7170_v53  ;;  %8219 = vst [vmem:[#allocation84_spill] sm:$0xff] %v7185_v40  ;;  %v7188_v53 = vld [vmem:[#allocation11 + $0x218] sm:$0xff] }
 0x612   :  { %3250 = vmatpush2.msra.mxu0 %v7173_v28  ;;  %8220 = vst [vmem:[#allocation85_spill] sm:$0xff] %v7188_v53  ;;  %v7191_v28 = vld [vmem:[#allocation11 + $0x210] sm:$0xff] }
 0x613   :  { %3251 = vmatprep.subr.mxu0 %v7176_v34  ;;  %8221 = vst [vmem:[#allocation86_spill] sm:$0xff] %v7191_v28  ;;  %v7194_v34 = vld [vmem:[#allocation11 + $0x200] sm:$0xff] }
 0x614   :  { %3252 = vmatpush2.msra.mxu0 %v7179_v37  ;;  %8222 = vst [vmem:[#allocation87_spill] sm:$0xff] %v7194_v34  ;;  %v7197_v37 = vld [vmem:[#allocation11 + $0x1f8] sm:$0xff] }
 0x615   :  { %3253 = vmatprep.subr.mxu0 %v7182_v27  ;;  %8223 = vst [vmem:[#allocation88_spill] sm:$0xff] %v7197_v37  ;;  %v7200_v27 = vld [vmem:[#allocation11 + $0x1e8] sm:$0xff] }
 0x616   :  { %3254 = vmatpush2.msra.mxu0 %v7185_v40  ;;  %8224 = vst [vmem:[#allocation89_spill] sm:$0xff] %v7200_v27  ;;  %v7203_v40 = vld [vmem:[#allocation11 + $0x1e0] sm:$0xff] }
 0x617   :  { %3255 = vmatprep.subr.mxu0 %v7188_v53  ;;  %8225 = vst [vmem:[#allocation90_spill] sm:$0xff] %v7203_v40  ;;  %v7206_v53 = vld [vmem:[#allocation11 + $0x1d0] sm:$0xff] }
 0x618   :  { %3256 = vmatpush2.msra.mxu0 %v7191_v28  ;;  %8226 = vst [vmem:[#allocation91_spill] sm:$0xff] %v7206_v53  ;;  %v7209_v28 = vld [vmem:[#allocation11 + $0x1c8] sm:$0xff] }
 0x619   :  { %3257 = vmatprep.subr.mxu0 %v7194_v34  ;;  %8227 = vst [vmem:[#allocation92_spill] sm:$0xff] %v7209_v28  ;;  %v7212_v34 = vld [vmem:[#allocation11 + $0x1b8] sm:$0xff] }
 0x61a   :  { %3258 = vmatpush2.msra.mxu0 %v7197_v37  ;;  %8228 = vst [vmem:[#allocation93_spill] sm:$0xff] %v7212_v34  ;;  %v7215_v37 = vld [vmem:[#allocation11 + $0x1b0] sm:$0xff] }
 0x61b   :  { %3259 = vmatprep.subr.mxu0 %v7200_v27  ;;  %8229 = vst [vmem:[#allocation94_spill] sm:$0xff] %v7215_v37  ;;  %v7218_v27 = vld [vmem:[#allocation11 + $0x1a0] sm:$0xff] }
 0x61c   :  { %3260 = vmatpush2.msra.mxu0 %v7203_v40  ;;  %8230 = vst [vmem:[#allocation95_spill] sm:$0xff] %v7218_v27  ;;  %v7221_v40 = vld [vmem:[#allocation11 + $0x198] sm:$0xff] }
 0x61d   :  { %3261 = vmatprep.subr.mxu0 %v7206_v53  ;;  %8231 = vst [vmem:[#allocation34_spill] sm:$0xff] %v7221_v40  ;;  %v7224_v53 = vld [vmem:[#allocation11 + $0x188] sm:$0xff] }
 0x61e   :  { %3262 = vmatpush2.msra.mxu0 %v7209_v28  ;;  %8232 = vst [vmem:[#allocation36_spill] sm:$0xff] %v7224_v53  ;;  %v7227_v28 = vld [vmem:[#allocation11 + $0x180] sm:$0xff] }
 0x61f   :  { %3263 = vmatprep.subr.mxu0 %v7212_v34  ;;  %8233 = vst [vmem:[#allocation38_spill] sm:$0xff] %v7227_v28  ;;  %v8234_v34 = vld [vmem:[#allocation68_spill] sm:$0xff] }
 0x620   :  { %3264 = vmatpush2.msra.mxu0 %v7215_v37 }
 0x621   :  { %3265 = vmatprep.subr.mxu0 %v7218_v27 }
 0x622   :  { %3266 = vmatpush2.msra.mxu0 %v7221_v40  ;;  %v7234_v40 = vld [vmem:[#allocation2 + $0x5] ss:$8 sm:$0x7] }
 0x623   :  { %3267 = vmatprep.subr.mxu0 %v7224_v53 }
 0x624   :  { %3268 = vmatpush2.msra.mxu0 %v7227_v28  ;;  %v7238_v28 = vld [vmem:[#allocation2 + $0x1d] ss:$8 sm:$0x7] }
 0x625   :  { %4564 = vmatprep.subr.mxu0 %v8234_v34  ;;  %v7240_v34 = vld [vmem:[#allocation2 + $0x35] ss:$8 sm:$0x7] }
 0x6a5   :  { %v2860_v13 = vpop.f32.mrf.mxu1  ;;  %v4526_v12 = vpop.f32.mrf.mxu0 }
 0x6a6   :  { %v2950_v37 = vrot.slane %v2860_v13, %v5935_v59 }
 0x6a7   :  { %v2862_v15 = vpop.f32.mrf.mxu1  ;;  %v4527_v21 = vpop.f32.mrf.mxu0 }
 0x6a8   :  { %v2951_v8 = vcombine.high %v2950_v37, %v2950_v37  ;;  %v2958_v27 = vrot.slane %v2950_v37, %v5935_v59  ;;  %v3019_v5 = vrot.slane %v2862_v15, %v5935_v59 }
 0x6aa   :  { %v2965_v0 = vrot.slane %v2951_v8, %v5935_v59  ;;  %v2966_v53 = vcombine.high %v2958_v27, %v2958_v27  ;;  %v2972_v58 = vadd.f32 %v2958_v27, %v7234_v40  ;;  %v3020_v39 = vcombine.high %v3019_v5, %v3019_v5 }
 0x6ab   :  { %v3027_v13 = vrot.slane %v3019_v5, %v5935_v59  ;;  %v3004_v8 = vrot.slane %v7234_v40, 1  ;;  %v3005_v5 = vrot.slane %v7238_v28, 1 }
 0x6ac   :  { %v2967_v35 = vcombine.high %v2965_v0, %v2965_v0  ;;  %v2973_v54 = vadd.f32 %v2965_v0, %v7238_v28  ;;  %v2974_v37 = vadd.f32 %v2966_v53, %v7240_v34  ;;  %v4274_v15 = vmul.f32 -1.442695, %v2972_v58 }
 0x6ad   :  { %v3034_v20 = vrot.slane %v3020_v39, %v5935_v59  ;;  %v3035_v27 = vcombine.high %v3027_v13, %v3027_v13  ;;  %v3006_v53 = vrot.slane %v7240_v34, 1  ;;  %v3041_v58 = vadd.f32 %v3027_v13, %v3004_v8 }
 0x6ae   :  { %v2975_v16 = vadd.f32 %v2967_v35, %v7245_v26  ;;  %4913 = vpow2.f32 %v4274_v15  ;;  %v4275_v6 = vmul.f32 -1.442695, %v2973_v54  ;;  %v4276_v19 = vmul.f32 -1.442695, %v2974_v37 }
 0x6af   :  { %v3036_v56 = vcombine.high %v3034_v20, %v3034_v20  ;;  %v3042_v36 = vadd.f32 %v3034_v20, %v3005_v5  ;;  %v3043_v39 = vadd.f32 %v3035_v27, %v3006_v53  ;;  %v4278_v35 = vmul.f32 -1.442695, %v3041_v58 }
 0x6b0   :  { %4915 = vpow2.f32 %v4275_v6  ;;  %v4277_v0 = vmul.f32 -1.442695, %v2975_v16  ;;  %v4528_v6 = vadd.f32 %v4527_v21, %v4526_v12 }
 0x6b1   :  { %4917 = vpow2.f32 %v4276_v19  ;;  %v3044_v14 = vadd.f32 %v3036_v56, %v3007_v11  ;;  %v4279_v15 = vmul.f32 -1.442695, %v3042_v36  ;;  %v4280_v54 = vmul.f32 -1.442695, %v3043_v39 }
 0x6b2   :  { %4919 = vpow2.f32 %v4277_v0  ;;  %v3069_v20 = vadd.f32 %v6731_v4, %v4528_v6 }
 0x6b3   :  { %v4281_v37 = vmul.f32 -1.442695, %v3044_v14  ;;  %4921 = vpow2.f32 %v4278_v35 }
 0x6b4   :  { %4923 = vpow2.f32 %v4279_v15  ;;  %v3077_v14 = vrot.slane %v3069_v20, %v5935_v59 }
 0x6b5   :  { %4925 = vpow2.f32 %v4280_v54 }
 0x6b6   :  { %4927 = vpow2.f32 %v4281_v37  ;;  %v3078_v21 = vcombine.high %v3077_v14, %v3077_v14  ;;  %v3085_v39 = vrot.slane %v3077_v14, %v5935_v59 }
 0x6b8   :  { %v3092_v4 = vrot.slane %v3078_v21, %v5935_v59 }
 0x6bb   :  { %v4914_v16 = vpop.eup %4913 }
 0x6bc   :  { %v2988_v13 = vadd.f32 1.0, %v4914_v16  ;;  %v3104_v16 = vrot.slane %v7238_v28, 2 }
 0x6bd   :  { %v4916_v19 = vpop.eup %4915 }
 0x6be   :  { %v4918_v8 = vpop.eup %4917  ;;  %v2989_v47 = vadd.f32 1.0, %v4916_v19  ;;  %4929 = vrcp.f32 %v2988_v13  ;;  %v3093_v13 = vcombine.high %v3085_v39, %v3085_v39 }
 0x6bf   :  { %v4920_v27 = vpop.eup %4919  ;;  %v2990_v11 = vadd.f32 1.0, %v4918_v8  ;;  %v3094_v8 = vcombine.high %v3092_v4, %v3092_v4 }
 0x6c0   :  { %v2991_v56 = vadd.f32 1.0, %v4920_v27  ;;  %4931 = vrcp.f32 %v2989_v47  ;;  %v4922_v36 = vpop.eup %4921  ;;  %v3103_v47 = vrot.slane %v7234_v40, 2 }
 0x6c1   :  { %4933 = vrcp.f32 %v2990_v11  ;;  %v4924_v5 = vpop.eup %4923  ;;  %v3057_v53 = vadd.f32 1.0, %v4922_v36  ;;  %v3106_v36 = vrot.slane %v7245_v26, 2 }
 0x6c2   :  { %4935 = vrcp.f32 %v2991_v56  ;;  %v4926_v12 = vpop.eup %4925  ;;  %v3058_v58 = vadd.f32 1.0, %v4924_v5  ;;  %v3105_v56 = vrot.slane %v7240_v34, 2 }
 0x6c3   :  { %v4928_v0 = vpop.eup %4927  ;;  %v3059_v35 = vadd.f32 1.0, %v4926_v12  ;;  %4937 = vrcp.f32 %v3057_v53 }
 0x6c4   :  { %v3060_v54 = vadd.f32 1.0, %v4928_v0  ;;  %4939 = vrcp.f32 %v3058_v58 }
 0x6c5   :  { %4941 = vrcp.f32 %v3059_v35 }
 0x6c6   :  { %4943 = vrcp.f32 %v3060_v54 }
 0x6cb   :  { %v4930_v15 = vpop.eup %4929 }
 0x6cc   :  { %v3099_v37 = vmul.f32 %v4930_v15, %v3085_v39 }
 0x6cd   :  { %v4932_v6 = vpop.eup %4931 }
 0x6ce   :  { %v4934_v19 = vpop.eup %4933  ;;  %v3100_v20 = vmul.f32 %v4932_v6, %v3092_v4  ;;  %v3111_v27 = vadd.f32 %v3103_v47, %v3099_v37 }
 0x6cf   :  { %v4936_v11 = vpop.eup %4935  ;;  %v3101_v14 = vmul.f32 %v4934_v19, %v3093_v13 }
 0x6d0   :  { %v3102_v40 = vmul.f32 %v4936_v11, %v3094_v8  ;;  %v3112_v5 = vadd.f32 %v3104_v16, %v3100_v20  ;;  %4945 = vtanh.f32 %v3111_v27  ;;  %v4938_v28 = vpop.eup %4937 }
 0x6d1   :  { %v3113_v21 = vadd.f32 %v3105_v56, %v3101_v14  ;;  %v4940_v0 = vpop.eup %4939  ;;  %v3119_v39 = vsub.f32 1.0, %v4938_v28  ;;  %v3127_v15 = vmul.f32 %v4938_v28, %v7027_v46 }
 0x6d2   :  { %v3114_v12 = vadd.f32 %v3106_v36, %v3102_v40  ;;  %4947 = vtanh.f32 %v3112_v5  ;;  %v4942_v53 = vpop.eup %4941  ;;  %v3120_v4 = vsub.f32 1.0, %v4940_v0  ;;  %v3128_v16 = vmul.f32 %v4940_v0, %v7031_v24 }
 0x6d3   :  { %4949 = vtanh.f32 %v3113_v21  ;;  %v4944_v58 = vpop.eup %4943  ;;  %v3121_v26 = vsub.f32 1.0, %v4942_v53  ;;  %v3129_v20 = vmul.f32 %v4942_v53, %v7034_v9 }
 0x6d4   :  { %4951 = vtanh.f32 %v3114_v12  ;;  %v3122_v37 = vsub.f32 1.0, %v4944_v58  ;;  %v3130_v11 = vmul.f32 %v4944_v58, %v7038_v3 }
 0x6dd   :  { %v4946_v35 = vpop.eup %4945 }
 0x6de   :  { %v3123_v34 = vmul.f32 %v4946_v35, %v3119_v39 }
 0x6df   :  { %v4948_v54 = vpop.eup %4947 }
 0x6e0   :  { %v4950_v47 = vpop.eup %4949  ;;  %v3124_v6 = vmul.f32 %v4948_v54, %v3120_v4  ;;  %v7263_v13 = vadd.f32 %v3127_v15, %v3123_v34 }
 0x6e1   :  { %v4952_v19 = vpop.eup %4951  ;;  %v3125_v8 = vmul.f32 %v4950_v47, %v3121_v26 }
 0x6e2   :  { %v3126_v27 = vmul.f32 %v4952_v19, %v3122_v37  ;;  %v7267_v56 = vadd.f32 %v3128_v16, %v3124_v6  ;;  %3135 = vst [vmem:[#allocation3 + $0x5] sm:$0x1] %v7263_v13  ;;  %v3143_v14 = vmul.f32 %v7263_v13, %v6035_v10  ;;  %v3139_v9 = vmul.f32 %v7263_v13, %v6031_v31  ;;  %v8258_v37 = vld [vmem:[#allocation61_spill] sm:$0xff]  ;;  %v8259_v6 = vld [vmem:[#allocation70_spill] sm:$0xff]  ;;  %v8260_v16 = vld [vmem:[#allocation27_spill] sm:$0xff] }
 0x6e3   :  { %v7270_v46 = vadd.f32 %v3129_v20, %v3125_v8  ;;  %v8261_v19 = vld [vmem:[#allocation71_spill] sm:$0xff]  ;;  %v8262_v8 = vld [vmem:[#allocation62_spill] sm:$0xff]  ;;  %v8263_v20 = vld [vmem:[#allocation72_spill] sm:$0xff] }
 0x6e4   :  { %v7274_v36 = vadd.f32 %v3130_v11, %v3126_v27  ;;  %3136 = vst [vmem:[#allocation3 + $0xd] sm:$0x1] %v7267_v56  ;;  %v3144_v24 = vmul.f32 %v7267_v56, %v6043_v29  ;;  %v3140_v3 = vmul.f32 %v7267_v56, %v6039_v51  ;;  %v8264_v27 = vld [vmem:[#allocation35_spill] sm:$0xff]  ;;  %v8265_v11 = vld [vmem:[#allocation73_spill] sm:$0xff] }
 0x6e5   :  { %3137 = vst [vmem:[#allocation4 + $0x2] sm:$0x1] %v7270_v46  ;;  %v3145_v40 = vmul.f32 %v7270_v46, %v6053_v62  ;;  %v3141_v5 = vmul.f32 %v7270_v46, %v7965_v18 }
 0x6e6   :  { %3138 = vst [vmem:[#allocation4 + $0xa] sm:$0x1] %v7274_v36  ;;  %v3146_v21 = vmul.f32 %v7274_v36, %v6056_v55  ;;  %v3180_v12 = vcombine.low %v3143_v14, %v3144_v24  ;;  %v3142_v28 = vmul.f32 %v7274_v36, %v6027_v1  ;;  %v3151_v0 = vcombine.low %v3139_v9, %v3140_v3  ;;  %v8266_v14 = vld [vmem:[#allocation63_spill] sm:$0xff]  ;;  %v8267_v24 = vld [vmem:[#allocation41_spill] sm:$0xff]  ;;  %v8268_v9 = vld [vmem:[#allocation28_spill] sm:$0xff] }
 0x6e7   :  { %v8269_v3 = vld [vmem:[#allocation31_spill] sm:$0xff] }
 0x6e8   :  { %v3181_v53 = vcombine.low %v3145_v40, %v3146_v21  ;;  %v3152_v58 = vcombine.low %v3141_v5, %v3142_v28  ;;  %v3188_v39 = vrot.slane %v3180_v12, %v5935_v59  ;;  %v3159_v4 = vrot.slane %v3151_v0, %v5935_v59  ;;  %v8270_v40 = vld [vmem:[#allocation64_spill] sm:$0xff]  ;;  %v8271_v5 = vld [vmem:[#allocation43_spill] sm:$0xff]  ;;  %v8272_v21 = vld [vmem:[#allocation37_spill] sm:$0xff] }
 0x6e9   :  { %v8273_v12 = vld [vmem:[#allocation32_spill] sm:$0xff]  ;;  %v8274_v28 = vld [vmem:[#allocation65_spill] sm:$0xff]  ;;  %v8275_v0 = vmov 0.0  }
 0x6ea   :  { %v3195_v35 = vrot.slane %v3181_v53, %v5935_v59  ;;  %v3166_v34 = vrot.slane %v3152_v58, %v5935_v59  ;;  %v8276_v53 = vld [vmem:[#allocation66_spill] sm:$0xff]  ;;  %v8277_v58 = vld [vmem:[#allocation39_spill] sm:$0xff] }
 0x6ec   :  { %v3196_v15 = vcombine.low %v3188_v39, %v3195_v35  ;;  %v3167_v54 = vcombine.low %v3159_v4, %v3166_v34  ;;  %v8278_v39 = vld [vmem:[#allocation67_spill] sm:$0xff]  ;;  %v8279_v35 = vld [vmem:[#allocation30_spill] sm:$0xff]  ;;  %v8280_v4 = vld [vmem:[#allocation33_spill] sm:$0xff] }
 0x6ed   :  { %v8281_v34 = vld [vmem:[#allocation74_spill] sm:$0xff] }
 0x6ee   :  { %v3203_v26 = vrot.slane %v3196_v15, %v5935_v59  ;;  %v3174_v47 = vrot.slane %v3167_v54, %v5935_v59  ;;  %v8282_v15 = vld [vmem:[#allocation75_spill] sm:$0xff]  ;;  %v8283_v54 = vld [vmem:[#allocation76_spill] sm:$0xff] }
 0x6f0   :  { %3269 = vmatprep.mubr.f32.mxu0 %v3203_v26  ;;  %3340 = vmatprep.mubr.f32.mxu1 %v3203_v26  ;;  %v8284_v26 = vld [vmem:[#allocation77_spill] sm:$0xff] }
 0x6f1   :  { %3270 = vmatmul.mubr.f32.vlgmr.msra.gmra.mxu0 %v3174_v47  ;;  %3341 = vmatmul.mubr.f32.vlgmr.msra.gmra.mxu1 %v3174_v47  ;;  %v8285_v47 = vld [vmem:[#allocation78_spill] sm:$0xff] }
 0x6f2   :  { %3617 = vmatpush1.msra.mxu1 %v6779_v63  ;;  %4565 = vmatpush3.msra.mxu0 %v6782_v49  ;;  %v8235_v63 = vld [vmem:[#allocation40_spill] sm:$0xff]  ;;  %v8236_v49 = vld [vmem:[#allocation42_spill] sm:$0xff] }
 0x6f3   :  { %3618 = vmatprep.subr.mxu1 %v6785_v57  ;;  %4566 = vmatprep.subr.mxu0 %v6788_v30  ;;  %v8237_v57 = vld [vmem:[#allocation44_spill] sm:$0xff]  ;;  %v8238_v30 = vld [vmem:[#allocation45_spill] sm:$0xff] }
 0x6f4   :  { %3619 = vmatpush1.msra.mxu1 %v6791_v17  ;;  %4567 = vmatpush3.msra.mxu0 %v6794_v23  ;;  %v8239_v17 = vld [vmem:[#allocation46_spill] sm:$0xff]  ;;  %v8240_v23 = vld [vmem:[#allocation47_spill] sm:$0xff] }
 0x6f5   :  { %3620 = vmatprep.subr.mxu1 %v6797_v2  ;;  %4568 = vmatprep.subr.mxu0 %v6800_v38  ;;  %v8241_v2 = vld [vmem:[#allocation25_spill] sm:$0xff]  ;;  %v8242_v38 = vld [vmem:[#allocation23_spill] sm:$0xff] }
 0x6f6   :  { %3621 = vmatpush1.msra.mxu1 %v6803_v61  ;;  %4569 = vmatpush3.msra.mxu0 %v6806_v43  ;;  %v8243_v61 = vld [vmem:[#allocation24_spill] sm:$0xff]  ;;  %v8244_v43 = vld [vmem:[#allocation26_spill] sm:$0xff] }
 0x6f7   :  { %3622 = vmatprep.subr.mxu1 %v6809_v22  ;;  %4570 = vmatprep.subr.mxu0 %v6812_v41  ;;  %v8245_v22 = vld [vmem:[#allocation51_spill] sm:$0xff]  ;;  %v8246_v41 = vld [vmem:[#allocation52_spill] sm:$0xff] }
 0x6f8   :  { %3623 = vmatpush1.msra.mxu1 %v6815_v33  ;;  %4571 = vmatpush3.msra.mxu0 %v6818_v44  ;;  %v8247_v33 = vld [vmem:[#allocation53_spill] sm:$0xff]  ;;  %v8248_v44 = vld [vmem:[#allocation54_spill] sm:$0xff] }
 0x6f9   :  { %3624 = vmatprep.subr.mxu1 %v6821_v7  ;;  %4572 = vmatprep.subr.mxu0 %v6824_v45  ;;  %v8249_v7 = vld [vmem:[#allocation55_spill] sm:$0xff]  ;;  %v8250_v45 = vld [vmem:[#allocation56_spill] sm:$0xff] }
 0x6fa   :  { %3625 = vmatpush1.msra.mxu1 %v6827_v42  ;;  %4573 = vmatpush3.msra.mxu0 %v6830_v32  ;;  %v8251_v42 = vld [vmem:[#allocation57_spill] sm:$0xff]  ;;  %v8252_v32 = vld [vmem:[#allocation58_spill] sm:$0xff] }
 0x6fb   :  { %3626 = vmatprep.subr.mxu1 %v6833_v25  ;;  %4574 = vmatprep.subr.mxu0 %v6836_v60  ;;  %v8253_v25 = vld [vmem:[#allocation59_spill] sm:$0xff]  ;;  %v8254_v60 = vld [vmem:[#allocation49_spill] sm:$0xff] }
 0x6fc   :  { %3627 = vmatpush1.msra.mxu1 %v8162_v52  ;;  %4575 = vmatpush3.msra.mxu0 %v8163_v48  ;;  %v8255_v52 = vld [vmem:[#allocation60_spill] sm:$0xff]  ;;  %v8256_v48 = vld [vmem:[#allocation50_spill] sm:$0xff] }
 0x6fd   :  { %3628 = vmatprep.subr.mxu1 %v8164_v50  ;;  %4576 = vmatprep.subr.mxu0 %v8235_v63  ;;  %v8257_v50 = vld [vmem:[#allocation69_spill] sm:$0xff]  ;;  %v8286_v63 = vld [vmem:[#allocation79_spill] sm:$0xff] }
 0x6fe   :  { %3629 = vmatpush1.msra.mxu1 %v8236_v49  ;;  %4577 = vmatpush3.msra.mxu0 %v8237_v57  ;;  %v8287_v49 = vld [vmem:[#allocation80_spill] sm:$0xff]  ;;  %v8288_v57 = vld [vmem:[#allocation81_spill] sm:$0xff] }
 0x6ff   :  { %3630 = vmatprep.subr.mxu1 %v8238_v30  ;;  %4578 = vmatprep.subr.mxu0 %v8239_v17  ;;  %v8289_v30 = vld [vmem:[#allocation82_spill] sm:$0xff]  ;;  %v8290_v17 = vld [vmem:[#allocation83_spill] sm:$0xff] }
 0x700   :  { %3631 = vmatpush1.msra.mxu1 %v8240_v23  ;;  %4579 = vmatpush3.msra.mxu0 %v8241_v2  ;;  %v8291_v23 = vld [vmem:[#allocation48_spill] sm:$0xff] }
 0x701   :  { %3632 = vmatprep.subr.mxu1 %v8242_v38  ;;  %4580 = vmatprep.subr.mxu0 %v8243_v61  ;;  %v8292_v2 = vld [vmem:[#allocation84_spill] sm:$0xff]  ;;  %v8293_v38 = vld [vmem:[#allocation85_spill] sm:$0xff]  ;;  %v8294_v61 = vld [vmem:[#allocation86_spill] sm:$0xff] }
 0x702   :  { %3633 = vmatpush1.msra.mxu1 %v8244_v43  ;;  %4581 = vmatpush3.msra.mxu0 %v8245_v22  ;;  %v8295_v43 = vld [vmem:[#allocation87_spill] sm:$0xff]  ;;  %v8296_v22 = vld [vmem:[#allocation88_spill] sm:$0xff] }
 0x703   :  { %3634 = vmatprep.subr.mxu1 %v8246_v41  ;;  %4582 = vmatprep.subr.mxu0 %v8247_v33  ;;  %v8297_v41 = vld [vmem:[#allocation89_spill] sm:$0xff]  ;;  %v8298_v33 = vld [vmem:[#allocation90_spill] sm:$0xff] }
 0x704   :  { %3635 = vmatpush1.msra.mxu1 %v8248_v44  ;;  %4583 = vmatpush3.msra.mxu0 %v8249_v7  ;;  %v8299_v44 = vld [vmem:[#allocation91_spill] sm:$0xff]  ;;  %v8300_v7 = vld [vmem:[#allocation92_spill] sm:$0xff] }
 0x705   :  { %3636 = vmatprep.subr.mxu1 %v8250_v45  ;;  %4584 = vmatprep.subr.mxu0 %v8251_v42  ;;  %v8301_v45 = vld [vmem:[#allocation93_spill] sm:$0xff]  ;;  %v8302_v42 = vld [vmem:[#allocation94_spill] sm:$0xff] }
 0x706   :  { %3637 = vmatpush1.msra.mxu1 %v8252_v32  ;;  %4585 = vmatpush3.msra.mxu0 %v8253_v25  ;;  %v8303_v32 = vld [vmem:[#allocation95_spill] sm:$0xff]  ;;  %v8304_v25 = vld [vmem:[#allocation34_spill] sm:$0xff] }
 0x707   :  { %3638 = vmatprep.subr.mxu1 %v8254_v60  ;;  %4586 = vmatprep.subr.mxu0 %v8255_v52  ;;  %v8305_v60 = vld [vmem:[#allocation36_spill] sm:$0xff]  ;;  %v8306_v52 = vld [vmem:[#allocation38_spill] sm:$0xff] }
 0x708   :  { %3639 = vmatpush1.msra.mxu1 %v8256_v48  ;;  %4587 = vmatpush3.msra.mxu0 %v8257_v50 }
 0x709   :  { %3640 = vmatprep.subr.mxu1 %v8258_v37  ;;  %4588 = vmatprep.subr.mxu0 %v8259_v6 }
 0x70a   :  { %3641 = vmatpush1.msra.mxu1 %v8260_v16  ;;  %4589 = vmatpush3.msra.mxu0 %v8261_v19 }
 0x70b   :  { %3642 = vmatprep.subr.mxu1 %v8262_v8  ;;  %4590 = vmatprep.subr.mxu0 %v8263_v20  ;;  %v7398_v8 = vld [vmem:[#allocation2 + $0x6] ss:$8 sm:$0x7] }
 0x70c   :  { %3643 = vmatpush1.msra.mxu1 %v8264_v27  ;;  %4591 = vmatpush3.msra.mxu0 %v8265_v11 }
 0x70d   :  { %3644 = vmatprep.subr.mxu1 %v8266_v14  ;;  %4592 = vmatprep.subr.mxu0 %v8267_v24  ;;  %v7402_v24 = vld [vmem:[#allocation2 + $0x1e] ss:$8 sm:$0x7] }
 0x70e   :  { %3645 = vmatpush1.msra.mxu1 %v8268_v9  ;;  %4593 = vmatpush3.msra.mxu0 %v8269_v3  ;;  %v7404_v9 = vld [vmem:[#allocation2 + $0x36] ss:$8 sm:$0x7] }
 0x70f   :  { %3646 = vmatprep.subr.mxu1 %v8270_v40  ;;  %4594 = vmatprep.subr.mxu0 %v8271_v5 }
 0x710   :  { %3647 = vmatpush1.msra.mxu1 %v8272_v21  ;;  %4595 = vmatpush3.msra.mxu0 %v8273_v12 }
 0x711   :  { %3648 = vmatprep.subr.mxu1 %v8274_v28  ;;  %4629 = vmatprep.subr.bf16.mxu0 %v8275_v0  ;;  %v7409_v28 = vld [vmem:[#allocation2 + $0x4e] ss:$8 sm:$0x7] }
 0x712   :  { %3649 = vmatpush2.msra.mxu1 %v8276_v53  ;;  %v3415_v53 = vrot.slane %v7398_v8, 1 }
 0x713   :  { %3650 = vmatprep.subr.mxu1 %v8277_v58 }
 0x714   :  { %3651 = vmatpush2.msra.mxu1 %v8278_v39 }
 0x715   :  { %3652 = vmatprep.subr.mxu1 %v8279_v35 }
 0x716   :  { %3653 = vmatpush2.msra.mxu1 %v8280_v4 }
 0x717   :  { %3654 = vmatprep.subr.mxu1 %v8281_v34 }
 0x718   :  { %3655 = vmatpush2.msra.mxu1 %v8282_v15  ;;  %v3416_v15 = vrot.slane %v7402_v24, 1 }
 0x719   :  { %3656 = vmatprep.subr.mxu1 %v8283_v54 }
 0x71a   :  { %3657 = vmatpush2.msra.mxu1 %v8284_v26 }
 0x71b   :  { %3658 = vmatprep.subr.mxu1 %v8285_v47  ;;  %v3417_v47 = vrot.slane %v7404_v9, 1 }
 0x71c   :  { %3659 = vmatpush2.msra.mxu1 %v8286_v63 }
 0x71d   :  { %3660 = vmatprep.subr.mxu1 %v8287_v49  ;;  %v3418_v49 = vrot.slane %v7409_v28, 1 }
 0x71e   :  { %3661 = vmatpush2.msra.mxu1 %v8288_v57 }
 0x71f   :  { %3662 = vmatprep.subr.mxu1 %v8289_v30 }
 0x720   :  { %3663 = vmatpush2.msra.mxu1 %v8290_v17 }
 0x721   :  { %3664 = vmatprep.subr.mxu1 %v8291_v23 }
 0x722   :  { %3665 = vmatpush2.msra.mxu1 %v8292_v2 }
 0x723   :  { %3666 = vmatprep.subr.mxu1 %v8293_v38 }
 0x724   :  { %3667 = vmatpush2.msra.mxu1 %v8294_v61 }
 0x725   :  { %3668 = vmatprep.subr.mxu1 %v8295_v43 }
 0x726   :  { %3669 = vmatpush2.msra.mxu1 %v8296_v22 }
 0x727   :  { %3670 = vmatprep.subr.mxu1 %v8297_v41 }
 0x728   :  { %3671 = vmatpush2.msra.mxu1 %v8298_v33 }
 0x729   :  { %3672 = vmatprep.subr.mxu1 %v8299_v44 }
 0x72a   :  { %3673 = vmatpush2.msra.mxu1 %v8300_v7 }
 0x72b   :  { %3674 = vmatprep.subr.mxu1 %v8301_v45 }
 0x72c   :  { %3675 = vmatpush2.msra.mxu1 %v8302_v42 }
 0x72d   :  { %3676 = vmatprep.subr.mxu1 %v8303_v32  ;;  %v7420_v32 = vld [vmem:[%s7535_s6] sm:$0xf] }
 0x72e   :  { %3677 = vmatpush2.msra.mxu1 %v8304_v25 }
 0x72f   :  { %3678 = vmatprep.subr.mxu1 %v8305_v60 }
 0x730   :  { %3679 = vmatpush2.msra.mxu1 %v8306_v52 }
 0x731   :  { %4649 = vmatprep.subr.bf16.mxu1 %v8275_v0 }
 0x7b1   :  { %v3271_v48 = vpop.f32.mrf.mxu0  ;;  %v4561_v17 = vpop.f32.mrf.mxu1 }
 0x7b2   :  { %v3361_v50 = vrot.slane %v3271_v48, %v5935_v59 }
 0x7b3   :  { %v3273_v37 = vpop.f32.mrf.mxu0  ;;  %v4562_v22 = vpop.f32.mrf.mxu1 }
 0x7b4   :  { %v3362_v6 = vcombine.high %v3361_v50, %v3361_v50  ;;  %v3369_v16 = vrot.slane %v3361_v50, %v5935_v59  ;;  %v3430_v19 = vrot.slane %v3273_v37, %v5935_v59  ;;  %v4563_v41 = vadd.f32 %v4562_v22, %v4561_v17 }
 0x7b6   :  { %v3376_v20 = vrot.slane %v3362_v6, %v5935_v59  ;;  %v3377_v27 = vcombine.high %v3369_v16, %v3369_v16  ;;  %v3383_v11 = vadd.f32 %v3369_v16, %v7398_v8  ;;  %v3431_v14 = vcombine.high %v3430_v19, %v3430_v19 }
 0x7b7   :  { %v3438_v3 = vrot.slane %v3430_v19, %v5935_v59  ;;  %v3480_v25 = vadd.f32 %v7420_v32, %v4563_v41 }
 0x7b8   :  { %v3378_v40 = vcombine.high %v3376_v20, %v3376_v20  ;;  %v3384_v5 = vadd.f32 %v3376_v20, %v7402_v24  ;;  %v3385_v21 = vadd.f32 %v3377_v27, %v7404_v9  ;;  %v4282_v12 = vmul.f32 -1.442695, %v3383_v11 }
 0x7b9   :  { %v3445_v58 = vrot.slane %v3431_v14, %v5935_v59  ;;  %v3446_v39 = vcombine.high %v3438_v3, %v3438_v3  ;;  %v3452_v63 = vadd.f32 %v3438_v3, %v3415_v53  ;;  %v3488_v50 = vrot.slane %v3480_v25, %v5935_v59 }
 0x7ba   :  { %v3386_v35 = vadd.f32 %v3378_v40, %v7409_v28  ;;  %4953 = vpow2.f32 %v4282_v12  ;;  %v4283_v4 = vmul.f32 -1.442695, %v3384_v5  ;;  %v4284_v34 = vmul.f32 -1.442695, %v3385_v21 }
 0x7bb   :  { %v3447_v54 = vcombine.high %v3445_v58, %v3445_v58  ;;  %v3453_v57 = vadd.f32 %v3445_v58, %v3416_v15  ;;  %v3454_v30 = vadd.f32 %v3446_v39, %v3417_v47  ;;  %v4286_v2 = vmul.f32 -1.442695, %v3452_v63 }
 0x7bc   :  { %4955 = vpow2.f32 %v4283_v4  ;;  %v4285_v26 = vmul.f32 -1.442695, %v3386_v35  ;;  %v3489_v16 = vcombine.high %v3488_v50, %v3488_v50  ;;  %v3496_v14 = vrot.slane %v3488_v50, %v5935_v59 }
 0x7bd   :  { %4957 = vpow2.f32 %v4284_v34  ;;  %v3455_v23 = vadd.f32 %v3447_v54, %v3418_v49  ;;  %v4287_v38 = vmul.f32 -1.442695, %v3453_v57  ;;  %v4288_v61 = vmul.f32 -1.442695, %v3454_v30 }
 0x7be   :  { %4959 = vpow2.f32 %v4285_v26  ;;  %v3503_v40 = vrot.slane %v3489_v16, %v5935_v59  ;;  %v3514_v12 = vrot.slane %v7398_v8, 2  ;;  %v3515_v39 = vrot.slane %v7402_v24, 2 }
 0x7bf   :  { %v4289_v43 = vmul.f32 -1.442695, %v3455_v23  ;;  %4961 = vpow2.f32 %v4286_v2  ;;  %v3504_v35 = vcombine.high %v3496_v14, %v3496_v14  ;;  %v3516_v47 = vrot.slane %v7404_v9, 2 }
 0x7c0   :  { %4963 = vpow2.f32 %v4287_v38  ;;  %v3505_v34 = vcombine.high %v3503_v40, %v3503_v40  ;;  %v3517_v49 = vrot.slane %v7409_v28, 2 }
 0x7c1   :  { %4965 = vpow2.f32 %v4288_v61 }
 0x7c2   :  { %4967 = vpow2.f32 %v4289_v43 }
 0x7c7   :  { %v4954_v33 = vpop.eup %4953 }
 0x7c8   :  { %v3399_v44 = vadd.f32 1.0, %v4954_v33 }
 0x7c9   :  { %v4956_v7 = vpop.eup %4955 }
 0x7ca   :  { %v4958_v45 = vpop.eup %4957  ;;  %v3400_v42 = vadd.f32 1.0, %v4956_v7  ;;  %4969 = vrcp.f32 %v3399_v44 }
 0x7cb   :  { %v4960_v60 = vpop.eup %4959  ;;  %v3401_v52 = vadd.f32 1.0, %v4958_v45 }
 0x7cc   :  { %v3402_v48 = vadd.f32 1.0, %v4960_v60  ;;  %4971 = vrcp.f32 %v3400_v42  ;;  %v4962_v37 = vpop.eup %4961 }
 0x7cd   :  { %4973 = vrcp.f32 %v3401_v52  ;;  %v4964_v6 = vpop.eup %4963  ;;  %v3468_v27 = vadd.f32 1.0, %v4962_v37 }
 0x7ce   :  { %4975 = vrcp.f32 %v3402_v48  ;;  %v4966_v19 = vpop.eup %4965  ;;  %v3469_v11 = vadd.f32 1.0, %v4964_v6 }
 0x7cf   :  { %v4968_v20 = vpop.eup %4967  ;;  %v3470_v3 = vadd.f32 1.0, %v4966_v19  ;;  %4977 = vrcp.f32 %v3468_v27 }
 0x7d0   :  { %v3471_v21 = vadd.f32 1.0, %v4968_v20  ;;  %4979 = vrcp.f32 %v3469_v11 }
 0x7d1   :  { %4981 = vrcp.f32 %v3470_v3 }
 0x7d2   :  { %4983 = vrcp.f32 %v3471_v21 }
 0x7d7   :  { %v4970_v5 = vpop.eup %4969 }
 0x7d8   :  { %v3510_v53 = vmul.f32 %v4970_v5, %v3496_v14 }
 0x7d9   :  { %v4972_v58 = vpop.eup %4971 }
 0x7da   :  { %v4974_v4 = vpop.eup %4973  ;;  %v3511_v15 = vmul.f32 %v4972_v58, %v3503_v40  ;;  %v3522_v54 = vadd.f32 %v3514_v12, %v3510_v53  ;;  %v4698_v53 = vld [vmem:[#allocation16 + $0x38] sm:$0xff]   ;;  %v4699_v58 = vld [vmem:[#allocation14 + $0x30] sm:$0xff]  }
 0x7db   :  { %v4976_v26 = vpop.eup %4975  ;;  %v3512_v63 = vmul.f32 %v4974_v4, %v3504_v35  ;;  %v4701_v35 = vld [vmem:[#allocation14 + $0x28] sm:$0xff]  }
 0x7dc   :  { %v3513_v8 = vmul.f32 %v4976_v26, %v3505_v34  ;;  %v3523_v57 = vadd.f32 %v3515_v39, %v3511_v15  ;;  %4985 = vtanh.f32 %v3522_v54  ;;  %v4978_v24 = vpop.eup %4977  ;;  %v4700_v39 = vld [vmem:[#allocation16 + $0x30] sm:$0xff]   ;;  %v4702_v4 = vld [vmem:[#allocation16 + $0x28] sm:$0xff]   ;;  %v4703_v34 = vld [vmem:[#allocation14 + $0x20] sm:$0xff]  }
 0x7dd   :  { %v3524_v30 = vadd.f32 %v3516_v47, %v3512_v63  ;;  %v4980_v23 = vpop.eup %4979  ;;  %v3530_v61 = vsub.f32 1.0, %v4978_v24  ;;  %v3538_v41 = vmul.f32 %v4978_v24, %v7263_v13  ;;  %v4704_v15 = vld [vmem:[#allocation16 + $0x20] sm:$0xff]   ;;  %v4705_v54 = vld [vmem:[#allocation14 + $0x18] sm:$0xff]   ;;  %v4707_v47 = vld [vmem:[#allocation14 + $0x10] sm:$0xff]  }
 0x7de   :  { %v3525_v17 = vadd.f32 %v3517_v49, %v3513_v8  ;;  %4987 = vtanh.f32 %v3523_v57  ;;  %v4982_v2 = vpop.eup %4981  ;;  %v3531_v22 = vsub.f32 1.0, %v4980_v23  ;;  %v3539_v42 = vmul.f32 %v4980_v23, %v7267_v56  ;;  %v4706_v26 = vld [vmem:[#allocation16 + $0x18] sm:$0xff]   ;;  %v4708_v63 = vld [vmem:[#allocation16 + $0x10] sm:$0xff]   ;;  %v4709_v49 = vld [vmem:[#allocation14 + $0x8] sm:$0xff]  }
 0x7df   :  { %4989 = vtanh.f32 %v3524_v30  ;;  %v4984_v38 = vpop.eup %4983  ;;  %v3532_v28 = vsub.f32 1.0, %v4982_v2  ;;  %v3540_v48 = vmul.f32 %v4982_v2, %v7270_v46  ;;  %v4710_v8 = vld [vmem:[#allocation16 + $0x8] sm:$0xff]   ;;  %v4711_v57 = vld [vmem:[#allocation14] sm:$0xff]  }
 0x7e0   :  { %4991 = vtanh.f32 %v3525_v17  ;;  %v3533_v7 = vsub.f32 1.0, %v4984_v38  ;;  %v3541_v37 = vmul.f32 %v4984_v38, %v7274_v36  ;;  %v4712_v30 = vld [vmem:[#allocation16] sm:$0xff]  }
 0x7e9   :  { %v4986_v43 = vpop.eup %4985 }
 0x7ea   :  { %v3534_v9 = vmul.f32 %v4986_v43, %v3530_v61  ;;  %v7489_v43 = vld [vmem:[#allocation2 + $0x7] ss:$8 sm:$0x7] }
 0x7eb   :  { %v4988_v33 = vpop.eup %4987 }
 0x7ec   :  { %v4990_v44 = vpop.eup %4989  ;;  %v3535_v45 = vmul.f32 %v4988_v33, %v3531_v22  ;;  %v7432_v25 = vadd.f32 %v3538_v41, %v3534_v9 }
 0x7ed   :  { %v4992_v60 = vpop.eup %4991  ;;  %v3536_v52 = vmul.f32 %v4990_v44, %v3532_v28  ;;  %v7495_v28 = vld [vmem:[#allocation2 + $0x37] ss:$8 sm:$0x7] }
 0x7ee   :  { %v3537_v50 = vmul.f32 %v4992_v60, %v3533_v7  ;;  %v7436_v6 = vadd.f32 %v3539_v42, %v3535_v45  ;;  %3546 = vst [vmem:[#allocation3 + $0x6] sm:$0x1] %v7432_v25  ;;  %v3554_v16 = vmul.f32 %v7432_v25, %v6035_v10  ;;  %v3550_v46 = vmul.f32 %v7432_v25, %v6031_v31 }
 0x7ef   :  { %v7439_v13 = vadd.f32 %v3540_v48, %v3536_v52  ;;  %v7500_v52 = vld [vmem:[#allocation2 + $0x4f] ss:$8 sm:$0x7]  ;;  %v3826_v48 = vrot.slane %v7489_v43, 1 }
 0x7f0   :  { %v7443_v19 = vadd.f32 %v3541_v37, %v3537_v50  ;;  %3547 = vst [vmem:[#allocation3 + $0xe] sm:$0x1] %v7436_v6  ;;  %v3555_v56 = vmul.f32 %v7436_v6, %v6043_v29  ;;  %v3551_v36 = vmul.f32 %v7436_v6, %v6039_v51 }
 0x7f1   :  { %3548 = vst [vmem:[#allocation4 + $0x1] sm:$0x1] %v7439_v13  ;;  %v3556_v20 = vmul.f32 %v7439_v13, %v6053_v62  ;;  %v3552_v10 = vmul.f32 %v7439_v13, %v7965_v18 }
 0x7f2   :  { %3549 = vst [vmem:[#allocation4 + $0x9] sm:$0x1] %v7443_v19  ;;  %v3557_v27 = vmul.f32 %v7443_v19, %v6056_v55  ;;  %v3591_v29 = vcombine.low %v3554_v16, %v3555_v56  ;;  %v3553_v31 = vmul.f32 %v7443_v19, %v6027_v1  ;;  %v3562_v11 = vcombine.low %v3550_v46, %v3551_v36  ;;  %v4697_v1 = vld [vmem:[#allocation14 + $0x38] sm:$0xff]  }
 0x7f4   :  { %v3592_v14 = vcombine.low %v3556_v20, %v3557_v27  ;;  %v3563_v51 = vcombine.low %v3552_v10, %v3553_v31  ;;  %v3599_v3 = vrot.slane %v3591_v29, %v5935_v59  ;;  %v3570_v62 = vrot.slane %v3562_v11, %v5935_v59 }
 0x7f5   :  { %v3828_v27 = vrot.slane %v7495_v28, 1  ;;  %v3829_v31 = vrot.slane %v7500_v52, 1 }
 0x7f6   :  { %v3606_v40 = vrot.slane %v3592_v14, %v5935_v59  ;;  %v3577_v18 = vrot.slane %v3563_v51, %v5935_v59 }
 0x7f8   :  { %v3607_v5 = vcombine.low %v3599_v3, %v3606_v40  ;;  %v3578_v21 = vcombine.low %v3570_v62, %v3577_v18 }
 0x7fa   :  { %v3614_v12 = vrot.slane %v3607_v5, %v5935_v59  ;;  %v3585_v55 = vrot.slane %v3578_v21, %v5935_v59 }
 0x7fc   :  { %3680 = vmatprep.mubr.f32.mxu1 %v3614_v12  ;;  %3751 = vmatprep.mubr.f32.mxu0 %v3614_v12 }
 0x7fd   :  { %3681 = vmatmul.mubr.f32.vlgmr.msra.gmra.mxu1 %v3585_v55  ;;  %3752 = vmatmul.mubr.f32.vlgmr.msra.gmra.mxu0 %v3585_v55 }
 0x7fe   :  { %4665 = vmatprep.mubr.msk.bf16.mxu1 %vm5414_vm0, %v8275_v0  ;;  %4645 = vmatprep.mubr.msk.bf16.mxu0 %vm5414_vm0, %v8275_v0 }
 0x7ff   :  { %4650 = vmatpush3.bf16.msra.mxu1 %v4697_v1  ;;  %4630 = vmatpush3.bf16.msra.mxu0 %v4698_v53 }
 0x800   :  { %4651 = vmatprep.subr.bf16.mxu1 %v8275_v0  ;;  %4631 = vmatprep.subr.bf16.mxu0 %v8275_v0 }
 0x803   :  { %4652 = vmatpush3.bf16.msra.mxu1 %v4699_v58  ;;  %4632 = vmatpush3.bf16.msra.mxu0 %v4700_v39 }
 0x804   :  { %4653 = vmatprep.subr.bf16.mxu1 %v8275_v0  ;;  %4633 = vmatprep.subr.bf16.mxu0 %v8275_v0 }
 0x807   :  { %4654 = vmatpush3.bf16.msra.mxu1 %v4701_v35  ;;  %4634 = vmatpush3.bf16.msra.mxu0 %v4702_v4 }
 0x808   :  { %4655 = vmatprep.subr.bf16.mxu1 %v8275_v0  ;;  %4635 = vmatprep.subr.bf16.mxu0 %v8275_v0 }
 0x80b   :  { %4656 = vmatpush3.bf16.msra.mxu1 %v4703_v34  ;;  %4636 = vmatpush3.bf16.msra.mxu0 %v4704_v15 }
 0x80c   :  { %4657 = vmatprep.subr.bf16.mxu1 %v8275_v0  ;;  %4637 = vmatprep.subr.bf16.mxu0 %v8275_v0 }
 0x80f   :  { %4658 = vmatpush3.bf16.msra.mxu1 %v4705_v54  ;;  %4638 = vmatpush3.bf16.msra.mxu0 %v4706_v26 }
 0x810   :  { %4659 = vmatprep.subr.bf16.mxu1 %v8275_v0  ;;  %4639 = vmatprep.subr.bf16.mxu0 %v8275_v0 }
 0x813   :  { %4660 = vmatpush3.bf16.msra.mxu1 %v4707_v47  ;;  %4640 = vmatpush3.bf16.msra.mxu0 %v4708_v63 }
 0x814   :  { %4661 = vmatprep.subr.bf16.mxu1 %v8275_v0  ;;  %4641 = vmatprep.subr.bf16.mxu0 %v8275_v0 }
 0x817   :  { %4662 = vmatpush3.bf16.msra.mxu1 %v4709_v49  ;;  %4642 = vmatpush3.bf16.msra.mxu0 %v4710_v8 }
 0x818   :  { %4663 = vmatprep.subr.bf16.mxu1 %v8275_v0  ;;  %4643 = vmatprep.subr.bf16.mxu0 %v8275_v0  ;;  %v7493_v0 = vld [vmem:[#allocation2 + $0x1f] ss:$8 sm:$0x7] }
 0x819   :  { %v3827_v36 = vrot.slane %v7493_v0, 1 }
 0x81b   :  { %4664 = vmatpush3.bf16.msra.mxu1 %v4711_v57  ;;  %4644 = vmatpush3.bf16.msra.mxu0 %v4712_v30 }
 0x8bd   :  { %v3682_v17 = vpop.f32.mrf.mxu1  ;;  %v4596_v51 = vpop.f32.mrf.mxu0 }
 0x8be   :  { %v3772_v24 = vrot.slane %v3682_v17, %v5935_v59 }
 0x8bf   :  { %v3684_v23 = vpop.f32.mrf.mxu1  ;;  %v4597_v21 = vpop.f32.mrf.mxu0 }
 0x8c0   :  { %v3773_v2 = vcombine.high %v3772_v24, %v3772_v24  ;;  %v3780_v38 = vrot.slane %v3772_v24, %v5935_v59  ;;  %v3841_v61 = vrot.slane %v3684_v23, %v5935_v59  ;;  %v4598_v12 = vadd.f32 %v4597_v21, %v4596_v51 }
 0x8c2   :  { %v3787_v22 = vrot.slane %v3773_v2, %v5935_v59  ;;  %v3788_v9 = vcombine.high %v3780_v38, %v3780_v38  ;;  %v3794_v41 = vadd.f32 %v3780_v38, %v7489_v43  ;;  %v3842_v33 = vcombine.high %v3841_v61, %v3841_v61 }
 0x8c3   :  { %v3849_v44 = vrot.slane %v3841_v61, %v5935_v59  ;;  %v3891_v35 = vadd.f32 %v7420_v32, %v4598_v12  ;;  %v3925_v38 = vrot.slane %v7489_v43, 2 }
 0x8c4   :  { %v3789_v7 = vcombine.high %v3787_v22, %v3787_v22  ;;  %v3795_v45 = vadd.f32 %v3787_v22, %v7493_v0  ;;  %v3796_v42 = vadd.f32 %v3788_v9, %v7495_v28  ;;  %v4290_v60 = vmul.f32 -1.442695, %v3794_v41 }
 0x8c5   :  { %v3856_v50 = vrot.slane %v3842_v33, %v5935_v59  ;;  %v3857_v37 = vcombine.high %v3849_v44, %v3849_v44  ;;  %v3863_v29 = vadd.f32 %v3849_v44, %v3826_v48  ;;  %v3899_v54 = vrot.slane %v3891_v35, %v5935_v59 }
 0x8c6   :  { %v3797_v16 = vadd.f32 %v3789_v7, %v7500_v52  ;;  %4993 = vpow2.f32 %v4290_v60  ;;  %v4291_v56 = vmul.f32 -1.442695, %v3795_v45  ;;  %v4292_v46 = vmul.f32 -1.442695, %v3796_v42 }
 0x8c7   :  { %v3858_v20 = vcombine.high %v3856_v50, %v3856_v50  ;;  %v3864_v11 = vadd.f32 %v3856_v50, %v3827_v36  ;;  %v3865_v14 = vadd.f32 %v3857_v37, %v3828_v27  ;;  %v4294_v40 = vmul.f32 -1.442695, %v3863_v29 }
 0x8c8   :  { %4995 = vpow2.f32 %v4291_v56  ;;  %v4293_v10 = vmul.f32 -1.442695, %v3797_v16  ;;  %v3900_v63 = vcombine.high %v3899_v54, %v3899_v54  ;;  %v3907_v17 = vrot.slane %v3899_v54, %v5935_v59 }
 0x8c9   :  { %4997 = vpow2.f32 %v4292_v46  ;;  %v3866_v3 = vadd.f32 %v3858_v20, %v3829_v31  ;;  %v4295_v62 = vmul.f32 -1.442695, %v3864_v11  ;;  %v4296_v18 = vmul.f32 -1.442695, %v3865_v14 }
 0x8ca   :  { %4999 = vpow2.f32 %v4293_v10  ;;  %v3914_v32 = vrot.slane %v3900_v63, %v5935_v59  ;;  %v3926_v9 = vrot.slane %v7493_v0, 2  ;;  %v3915_v41 = vcombine.high %v3907_v17, %v3907_v17 }
 0x8cb   :  { %v4297_v5 = vmul.f32 -1.442695, %v3866_v3  ;;  %5001 = vpow2.f32 %v4294_v40  ;;  %v3927_v60 = vrot.slane %v7495_v28, 2  ;;  %v3928_v48 = vrot.slane %v7500_v52, 2 }
 0x8cc   :  { %5003 = vpow2.f32 %v4295_v62  ;;  %v3916_v44 = vcombine.high %v3914_v32, %v3914_v32 }
 0x8cd   :  { %5005 = vpow2.f32 %v4296_v18 }
 0x8ce   :  { %5007 = vpow2.f32 %v4297_v5 }
 0x8d3   :  { %v4994_v55 = vpop.eup %4993 }
 0x8d4   :  { %v3810_v1 = vadd.f32 1.0, %v4994_v55 }
 0x8d5   :  { %v4996_v53 = vpop.eup %4995 }
 0x8d6   :  { %v4998_v58 = vpop.eup %4997  ;;  %v3811_v39 = vadd.f32 1.0, %v4996_v53  ;;  %5009 = vrcp.f32 %v3810_v1 }
 0x8d7   :  { %v5000_v4 = vpop.eup %4999  ;;  %v3812_v34 = vadd.f32 1.0, %v4998_v58 }
 0x8d8   :  { %v3813_v15 = vadd.f32 1.0, %v5000_v4  ;;  %5011 = vrcp.f32 %v3811_v39  ;;  %v5002_v26 = vpop.eup %5001 }
 0x8d9   :  { %5013 = vrcp.f32 %v3812_v34  ;;  %v5004_v47 = vpop.eup %5003  ;;  %v3879_v57 = vadd.f32 1.0, %v5002_v26 }
 0x8da   :  { %5015 = vrcp.f32 %v3813_v15  ;;  %v5006_v49 = vpop.eup %5005  ;;  %v3880_v30 = vadd.f32 1.0, %v5004_v47 }
 0x8db   :  { %v5008_v8 = vpop.eup %5007  ;;  %v3881_v24 = vadd.f32 1.0, %v5006_v49  ;;  %5017 = vrcp.f32 %v3879_v57 }
 0x8dc   :  { %v3882_v2 = vadd.f32 1.0, %v5008_v8  ;;  %5019 = vrcp.f32 %v3880_v30 }
 0x8dd   :  { %5021 = vrcp.f32 %v3881_v24 }
 0x8de   :  { %5023 = vrcp.f32 %v3882_v2 }
 0x8e3   :  { %v5010_v23 = vpop.eup %5009 }
 0x8e4   :  { %v3921_v61 = vmul.f32 %v5010_v23, %v3907_v17 }
 0x8e5   :  { %v5012_v22 = vpop.eup %5011 }
 0x8e6   :  { %v5014_v33 = vpop.eup %5013  ;;  %v3922_v7 = vmul.f32 %v5012_v22, %v3914_v32  ;;  %v3933_v45 = vadd.f32 %v3925_v38, %v3921_v61 }
 0x8e7   :  { %v5016_v42 = vpop.eup %5015  ;;  %v3923_v59 = vmul.f32 %v5014_v33, %v3915_v41 }
 0x8e8   :  { %v3924_v43 = vmul.f32 %v5016_v42, %v3916_v44  ;;  %v3934_v50 = vadd.f32 %v3926_v9, %v3922_v7  ;;  %5025 = vtanh.f32 %v3933_v45  ;;  %v5018_v0 = vpop.eup %5017 }
 0x8e9   :  { %v3935_v37 = vadd.f32 %v3927_v60, %v3923_v59  ;;  %v5020_v56 = vpop.eup %5019  ;;  %v3941_v20 = vsub.f32 1.0, %v5018_v0  ;;  %v3949_v28 = vmul.f32 %v5018_v0, %v7432_v25 }
 0x8ea   :  { %v3936_v16 = vadd.f32 %v3928_v48, %v3924_v43  ;;  %5027 = vtanh.f32 %v3934_v50  ;;  %v5022_v46 = vpop.eup %5021  ;;  %v3942_v27 = vsub.f32 1.0, %v5020_v56  ;;  %v3950_v51 = vmul.f32 %v5020_v56, %v7436_v6 }
 0x8eb   :  { %5029 = vtanh.f32 %v3935_v37  ;;  %v5024_v36 = vpop.eup %5023  ;;  %v3943_v52 = vsub.f32 1.0, %v5022_v46  ;;  %v3951_v18 = vmul.f32 %v5022_v46, %v7439_v13 }
 0x8ec   :  { %5031 = vtanh.f32 %v3936_v16  ;;  %v3944_v14 = vsub.f32 1.0, %v5024_v36  ;;  %v3952_v21 = vmul.f32 %v5024_v36, %v7443_v19  ;;  %v4314_v19 = vld [vmem:[%s7538_s9] ss:$0 sm:$0xff] }
 0x8f5   :  { %v5026_v10 = vpop.eup %5025 }
 0x8f6   :  { %v3945_v29 = vmul.f32 %v5026_v10, %v3941_v20 }
 0x8f7   :  { %v5028_v31 = vpop.eup %5027 }
 0x8f8   :  { %v5030_v11 = vpop.eup %5029  ;;  %v3946_v3 = vmul.f32 %v5028_v31, %v3942_v27  ;;  %v3953_v40 = vadd.f32 %v3949_v28, %v3945_v29 }
 0x8f9   :  { %v5032_v62 = vpop.eup %5031  ;;  %v3947_v5 = vmul.f32 %v5030_v11, %v3943_v52 }
 0x8fa   :  { %v3948_v12 = vmul.f32 %v5032_v62, %v3944_v14  ;;  %v3954_v55 = vadd.f32 %v3950_v51, %v3946_v3  ;;  %3957 = vst [vmem:[#allocation3 + $0x7] sm:$0x1] %v3953_v40 }
 0x8fb   :  { %v3955_v1 = vadd.f32 %v3951_v18, %v3947_v5 }
 0x8fc   :  { %v3956_v25 = vadd.f32 %v3952_v21, %v3948_v12  ;;  %3958 = vst [vmem:[#allocation3 + $0xf] sm:$0x1] %v3954_v55 }
 0x8fd   :  { %3959 = vst [vmem:[#allocation4] sm:$0x1] %v3955_v1 }
 0x8fe   :  { %3960 = vst [vmem:[#allocation4 + $0x8] sm:$0x1] %v3956_v25 }
 0x901   :  { %v3961_v53 = vld [vmem:[#allocation3] sm:$0xff] }
 0x903   :  { %v3962_v58 = vld [vmem:[#allocation3 + $0x8] sm:$0xff] }
 0x904   :  { %v3963_v39 = vpack.c.bf16 %v3962_v58, %v3961_v53  ;;  %v3964_v6 = vld [vmem:[#allocation4] sm:$0xff] }
 0x905   :  { %v3965_v35 = vld [vmem:[#allocation4 + $0x8] sm:$0xff] }
 0x906   :  { %4666 = vmatmul.mubr.bf16.vlgmr.msra.gmra.mxu1 %v3963_v39  ;;  %v3966_v4 = vpack.c.bf16 %v3965_v35, %v3964_v6 }
 0x908   :  { %4646 = vmatmul.mubr.bf16.vlgmr.msra.gmra.mxu0 %v3966_v4 }
 0x9c6   :  { %v4170_v13 = vpop.f32.mrf.mxu1 }
 0x9c8   :  { %v4081_v34 = vpop.f32.mrf.mxu0  ;;  %v4667_v15 = vpop.f32.mrf.mxu1 }
 0x9c9   :  { %v4171_v54 = vadd.f32 %v4170_v13, %v4081_v34 }
 0x9ca   :  { %v4647_v26 = vpop.f32.mrf.mxu0  ;;  %v4173_v47 = vpop.f32.mrf.mxu1 }
 0x9cb   :  { %v4184_v63 = vadd.f32 %v4314_v19, %v4171_v54 }
 0x9cc   :  { %v4084_v49 = vpop.f32.mrf.mxu0  ;;  %v4668_v8 = vpop.f32.mrf.mxu1 }
 0x9cd   :  { %4186 = vst [vmem:[#allocation17] sm:$0xff] %v4184_v63  ;;  %v4174_v57 = vadd.f32 %v4173_v47, %v4084_v49 }
 0x9ce   :  { %v4648_v30 = vpop.f32.mrf.mxu0 }
 0x9cf   :  { %v4185_v17 = vadd.f32 %v4314_v19, %v4174_v57 }
 0x9d1   :  { %4187 = vst [vmem:[#allocation17 + $0x8] sm:$0xff] %v4185_v17 }
 0x9d2   :  { %5378 = shalt.err (!%p5375_p11)
}
 0x9d3   :  { %4199 = dma.vmem_to_hbm [thread:$0]  %s4194_s7, 256, %s7539_s10, [#allocation7], %s5407_s15, %s5407_s15, %s5408_s18  }
 0x9d4   :  { %5395 = dma.done.wait [#allocation7], 256  }
 0x9d5   :  { %5396 = vsyncadd [#allocation7], 4294967040 }
 0x9d6   :  { %4203 = vsyncpa [#allocation6], 1 }
 0x9d7   :  { %4204 = vsyncpa [#allocation9], 1 }
 0x9d8   :  { %4205 = vsyncpa [#allocation12], 1 }
 0x9d9   :  { %4206 = vsyncpa [#allocation15], 1 }
 0x9da   :  { %4207 = vsyncpa [#allocation7], 1 }

</bundles_post_ra>
